<compile_context>
chip_gen: v7x
topology: tpu7x:2x2x1
jax: 0.10.0
libtpu: 0.0.40
codegen_flags: <defaults>
</compile_context>

<pallas_src>
import functools
import math

import jax
import jax.numpy as jnp
from jax import lax
from jax.experimental import pallas as pl
from jax.experimental.pallas import tpu as pltpu


# ----------------------------------------------------------------------------
# Fused Pallas kernel: embedding + bidirectional multi-layer LSTM + FC head
# ----------------------------------------------------------------------------
def _fused_lstm_classifier_kernel(ids_ref, emb_wih0_ref, *refs,
                                  seq_len, batch, hidden, num_layers, vocab):
    T, B, H = seq_len, batch, hidden
    H2, H8 = 2 * H, 8 * H

    n_layer_refs = 2 + 3 * (num_layers - 1)
    layer_refs = refs[:n_layer_refs]
    (fc1_w_ref, fc1_b_ref, fc2_w_ref, fc2_b_ref,
     out_ref, xg_scr, x_scr) = refs[n_layer_refs:]

    # ---- embedding lookup fused with the layer-0 input projection ----------------------------
    # onehot (T*B, V) @ (embedding @ W_ih0) (V, 8H): gather stays on the MXU, in-kernel.
    ids = ids_ref[...]                                               # (T*B, 1) int32, time-major
    col = lax.broadcasted_iota(jnp.int32, (T * B, vocab), 1)
    onehot = (col == ids).astype(jnp.bfloat16)                       # (T*B, V)
    # TODO(synk): one-hot embedding is only sensible for toy vocabularies (V <= ~512); for a
    #             real vocab switch to scalar-prefetched ids + row gathers of the composed mat.

    # ---- static masks / affine constants, hoisted out of every loop --------------------------
    lane = lax.broadcasted_iota(jnp.int32, (B, H8), 1)
    fwd_mask = (lane % H2) < H                       # forward-direction columns of each gate blk
    g_blk = (lane >= 4 * H) & (lane < 6 * H)         # the "g" (tanh) gate block
    # sigmoid-gate columns were pre-scaled by 0.5 at pack time: sigmoid(x) = 0.5*tanh(x/2)+0.5,
    # so a SINGLE tanh pass + this masked affine recovers all four activated gates.
    act_scale = jnp.where(g_blk, 1.0, 0.5).astype(jnp.float32)
    act_off = jnp.where(g_blk, 0.0, 0.5).astype(jnp.float32)

    h = None
    ref_pos = 0
    for layer in range(num_layers):
        # ---- hoisted input projection for all timesteps / both directions (one MXU matmul) ---
        if layer == 0:
            whh_ref, b_ref = layer_refs[0], layer_refs[1]
            ref_pos = 2
            xg = jnp.dot(onehot, emb_wih0_ref[...],
                         preferred_element_type=jnp.float32) + b_ref[...]       # (T*B, 8H) f32
        else:
            wih_ref, whh_ref, b_ref = layer_refs[ref_pos:ref_pos + 3]
            ref_pos += 3
            x = x_scr[...].astype(jnp.bfloat16)                                 # (T*B, 2H)
            xg = jnp.dot(x, wih_ref[...],
                         preferred_element_type=jnp.float32) + b_ref[...]       # (T*B, 8H) f32
        whh = whh_ref[...]                                                      # (2H, 8H) bf16

        # ---- pre-blend fwd/bwd time reversal into a VMEM scratch, off the serial chain -------
        for s in range(T):
            xg_scr[s] = jnp.where(fwd_mask,
                                  xg[s * B:(s + 1) * B, :],
                                  xg[(T - 1 - s) * B:(T - s) * B, :])

        # ---- fully unrolled merged-direction recurrence ---------------------------------------
        last_layer = (layer + 1 == num_layers)
        h = jnp.zeros((B, H2), jnp.float32)                          # [h_fwd | h_bwd]
        c = jnp.zeros((B, H2), jnp.float32)
        for s in range(T):
            gates = xg_scr[s] + jnp.dot(h.astype(jnp.bfloat16), whh,
                                        preferred_element_type=jnp.float32)     # (B, 8H) f32
            act = jnp.tanh(gates) * act_scale + act_off             # one EUP pass per step
            i_g = act[:, 0 * H2:1 * H2]                              # [i_f | i_b]
            f_g = act[:, 1 * H2:2 * H2]                              # [f_f | f_b]
            g_g = act[:, 2 * H2:3 * H2]                              # [g_f | g_b]
            o_g = act[:, 3 * H2:4 * H2]                              # [o_f | o_b]
            c = f_g * c + i_g * g_g
            h = o_g * jnp.tanh(c)
            if not last_layer:
                # next-layer input at time t = [h_fwd(t) | h_bwd(t)] (time-major rows)
                x_scr[s * B:(s + 1) * B, :H] = h[:, :H]
                x_scr[(T - 1 - s) * B:(T - s) * B, H:] = h[:, H:]

    # final hidden = torch.cat((hidden[-1], hidden[-2])) = [backward_final | forward_final]
    final_hidden = jnp.concatenate([h[:, H:], h[:, :H]], axis=-1)    # (B, 2H)

    # FC head: Linear(2H -> H) -> ReLU -> Linear(H -> num_class)
    z = jnp.dot(final_hidden.astype(jnp.bfloat16), fc1_w_ref[...],
                preferred_element_type=jnp.float32) + fc1_b_ref[...]
    z = jnp.maximum(z, 0.0)
    out_ref[...] = (jnp.dot(z.astype(jnp.bfloat16), fc2_w_ref[...],
                            preferred_element_type=jnp.float32) + fc2_b_ref[...])


# ----------------------------------------------------------------------------
# Wrapper around pallas_call
# ----------------------------------------------------------------------------
_VMEM = pl.BlockSpec(memory_space=pltpu.MemorySpace.VMEM)


def lstm_classifier_forward(input_ids, params):
    B, T = input_ids.shape
    V = params["emb_wih0"].shape[0]
    H = params["fc1_b"].shape[1]
    C = params["fc2_b"].shape[1]
    num_layers = 1 + len(params["upper_layers"])

    # time-major (row = t*B + b) token ids; tiny int reshape, everything else is in-kernel
    ids_tm = jnp.transpose(input_ids).reshape(T * B, 1).astype(jnp.int32)
    # TODO(synk): dropout is eval-mode identity; train-mode stochastic dropout not implemented.

    layer_args = [params["l0_whh"], params["l0_b"]]
    for (wih, whh, b) in params["upper_layers"]:
        layer_args += [wih, whh, b]

    kernel = functools.partial(
        _fused_lstm_classifier_kernel,
        seq_len=T, batch=B, hidden=H, num_layers=num_layers, vocab=V)

    n_in = 2 + len(layer_args) + 4
    return pl.pallas_call(
        kernel,
        out_shape=jax.ShapeDtypeStruct((B, C), jnp.float32),
        in_specs=[_VMEM] * n_in,
        out_specs=_VMEM,
        scratch_shapes=[
            pltpu.VMEM((T, B, 8 * H), jnp.float32),    # pre-blended xg, one slice per step
            pltpu.VMEM((T * B, 2 * H), jnp.float32),   # time-major layer-handoff activations
        ],
    )(ids_tm, params["emb_wih0"], *layer_args,
      params["fc1_w"], params["fc1_b"], params["fc2_w"], params["fc2_b"])


# ----------------------------------------------------------------------------
# Parameter init (PyTorch layouts) + packing into the kernel's merged layout
# ----------------------------------------------------------------------------
def _pack_gate_cols(m_f, m_b, H):
    """Interleave the 4 gate blocks of two directions: [i_f,i_b | f_f,f_b | g_f,g_b | o_f,o_b]."""
    cols = []
    for k in range(4):
        cols.append(m_f[:, k * H:(k + 1) * H])
        cols.append(m_b[:, k * H:(k + 1) * H])
    return jnp.concatenate(cols, axis=1)


def _fold_sigmoid_prescale(m, H):
    """Pre-scale the sigmoid-gate (i, f, o) columns by 0.5; the g (tanh) block keeps scale 1.

    Lets the kernel run a single tanh pass: sigmoid(x) = 0.5 * tanh(x/2) + 0.5.
    """
    scale = jnp.concatenate([jnp.full((4 * H,), 0.5, jnp.float32),
                             jnp.ones((2 * H,), jnp.float32),
                             jnp.full((2 * H,), 0.5, jnp.float32)])
    return m * scale[None, :]


def pack_bidir_layer(fwd, bwd, H):
    """fwd/bwd = (w_ih (4H,D), w_hh (4H,H), b_ih (4H,), b_hh (4H,)) in PyTorch layout."""
    (wih_f, whh_f, bih_f, bhh_f) = fwd
    (wih_b, whh_b, bih_b, bhh_b) = bwd
    wih_cat = _pack_gate_cols(wih_f.T, wih_b.T, H)                          # (D, 8H)
    z = jnp.zeros((H, H), jnp.float32)
    whh_fT, whh_bT = whh_f.T, whh_b.T                                       # (H, 4H)
    cols = []
    for k in range(4):
        cols.append(jnp.concatenate([whh_fT[:, k * H:(k + 1) * H], z], axis=0))  # rows for h_fwd
        cols.append(jnp.concatenate([z, whh_bT[:, k * H:(k + 1) * H]], axis=0))  # rows for h_bwd
    whh_cat = jnp.concatenate(cols, axis=1)                                 # (2H, 8H) block-diag
    b_cat = _pack_gate_cols((bih_f + bhh_f)[None, :], (bih_b + bhh_b)[None, :], H)   # (1, 8H)
    # fold the tanh-everywhere prescale into the packed parameters (free at init time)
    wih_cat = _fold_sigmoid_prescale(wih_cat, H)
    whh_cat = _fold_sigmoid_prescale(whh_cat, H)
    b_cat = _fold_sigmoid_prescale(b_cat, H)
    return wih_cat, whh_cat, b_cat


def init_params(key, vocab_size, max_len, hidden_dim, num_layer, num_class=5):
    keys = iter(jax.random.split(key, 8 * num_layer + 8))

    def unif(shape, bound):
        return jax.random.uniform(next(keys), shape, jnp.float32, -bound, bound)

    embedding = jax.random.normal(next(keys), (vocab_size, max_len), jnp.float32)

    k = 1.0 / math.sqrt(hidden_dim)
    packed = []
    for layer in range(num_layer):
        d_in = max_len if layer == 0 else 2 * hidden_dim
        dirs = []
        for _direction in range(2):
            w_ih = unif((4 * hidden_dim, d_in), k)          # PyTorch layout (4H, D_in)
            w_hh = unif((4 * hidden_dim, hidden_dim), k)    # (4H, H)
            b_ih = unif((4 * hidden_dim,), k)
            b_hh = unif((4 * hidden_dim,), k)
            dirs.append((w_ih, w_hh, b_ih, b_hh))
        packed.append(pack_bidir_layer(dirs[0], dirs[1], hidden_dim))

    params = {}
    wih0, whh0, b0 = packed[0]
    # fuse embedding lookup with the layer-0 input projection at pack time: (V, 8H) composed mat
    params["emb_wih0"] = jnp.dot(embedding, wih0).astype(jnp.bfloat16)
    params["l0_whh"] = whh0.astype(jnp.bfloat16)
    params["l0_b"] = b0                                              # (1, 8H) f32
    params["upper_layers"] = [
        (wih.astype(jnp.bfloat16), whh.astype(jnp.bfloat16), b)
        for (wih, whh, b) in packed[1:]]

    k1 = 1.0 / math.sqrt(2 * hidden_dim)
    params["fc1_w"] = unif((hidden_dim, 2 * hidden_dim), k1).T.astype(jnp.bfloat16)  # (2H, H)
    params["fc1_b"] = unif((hidden_dim,), k1)[None, :]                               # (1, H)
    k2 = 1.0 / math.sqrt(hidden_dim)
    params["fc2_w"] = unif((num_class, hidden_dim), k2).T.astype(jnp.bfloat16)       # (H, C)
    params["fc2_b"] = unif((num_class,), k2)[None, :]                                # (1, C)
    return params


# ----------------------------------------------------------------------------
if __name__ == "__main__":
    BATCH = 2
    MAX_LEN = 16       # seq length == embedding dim (as in the module)
    HIDDEN = 32
    NUM_LAYER = 2
    VOCAB = 64
    NUM_CLASS = 5

    key = jax.random.PRNGKey(0)
    k_ids, k_params = jax.random.split(key)
    input_ids = jax.random.randint(k_ids, (BATCH, MAX_LEN), 0, VOCAB, dtype=jnp.int32)
    params = init_params(k_params, VOCAB, MAX_LEN, HIDDEN, NUM_LAYER, NUM_CLASS)

    fwd = jax.jit(lstm_classifier_forward)
    logits = fwd(input_ids, params)
    logits = jax.block_until_ready(logits)
    assert logits.shape == (BATCH, NUM_CLASS), logits.shape
    assert bool(jnp.all(jnp.isfinite(logits)))
    print("KERNEL_OK")
</pallas_src>

<mosaic_0001>
module attributes {stable_mosaic.version = 11 : i64} {
  func.func @_fused_lstm_classifier_kernel(%arg0: memref<32x1xi32, #tpu.memory_space<vmem>>, %arg1: memref<64x256xbf16, #tpu.memory_space<vmem>>, %arg2: memref<64x256xbf16, #tpu.memory_space<vmem>>, %arg3: memref<1x256xf32, #tpu.memory_space<vmem>>, %arg4: memref<64x256xbf16, #tpu.memory_space<vmem>>, %arg5: memref<64x256xbf16, #tpu.memory_space<vmem>>, %arg6: memref<1x256xf32, #tpu.memory_space<vmem>>, %arg7: memref<64x32xbf16, #tpu.memory_space<vmem>>, %arg8: memref<1x32xf32, #tpu.memory_space<vmem>>, %arg9: memref<32x5xbf16, #tpu.memory_space<vmem>>, %arg10: memref<1x5xf32, #tpu.memory_space<vmem>>, %arg11: memref<2x5xf32, #tpu.memory_space<vmem>>, %arg12: memref<16x2x256xf32, #tpu.memory_space<vmem>>, %arg13: memref<32x64xf32, #tpu.memory_space<vmem>>) attributes {dimension_semantics = [], scalar_prefetch = 0 : i64, scratch_operands = 2 : i64, tpu.core_type = #tpu.core_type<tc>} {
    %c0 = arith.constant 0 : index
    %c0_0 = arith.constant 0 : index
    %0 = vector.load %arg0[%c0, %c0_0] : memref<32x1xi32, #tpu.memory_space<vmem>>, vector<32x1xi32>
    %1 = tpu.iota {dimensions = array<i32: 1>} : vector<32x64xi32>
    %2 = vector.broadcast %0 : vector<32x1xi32> to vector<32x64xi32>
    %3 = arith.cmpi eq, %1, %2 : vector<32x64xi32>
    %4 = arith.extui %3 : vector<32x64xi1> to vector<32x64xi32>
    %5 = arith.sitofp %4 : vector<32x64xi32> to vector<32x64xf32>
    %6 = arith.truncf %5 : vector<32x64xf32> to vector<32x64xbf16>
    %7 = tpu.iota {dimensions = array<i32: 1>} : vector<2x256xi32>
    %c64_i32 = arith.constant 64 : i32
    %c0_i32 = arith.constant 0 : i32
    %8 = arith.cmpi eq, %c64_i32, %c0_i32 : i32
    %c1_i32 = arith.constant 1 : i32
    %9 = arith.select %8, %c1_i32, %c64_i32 : i32
    %10 = vector.broadcast %9 : i32 to vector<2x256xi32>
    %11 = arith.remsi %7, %10 : vector<2x256xi32>
    %c0_i32_1 = arith.constant 0 : i32
    %12 = vector.broadcast %c0_i32_1 : i32 to vector<2x256xi32>
    %13 = arith.cmpi ne, %11, %12 : vector<2x256xi32>
    %c0_i32_2 = arith.constant 0 : i32
    %14 = vector.broadcast %c0_i32_2 : i32 to vector<2x256xi32>
    %15 = arith.cmpi slt, %11, %14 : vector<2x256xi32>
    %c0_i32_3 = arith.constant 0 : i32
    %16 = arith.cmpi slt, %9, %c0_i32_3 : i32
    %17 = vector.broadcast %16 : i1 to vector<2x256xi1>
    %18 = vector.broadcast %17 : vector<2x256xi1> to vector<2x256xi1>
    %19 = arith.xori %15, %18 : vector<2x256xi1>
    %20 = arith.andi %19, %13 : vector<2x256xi1>
    %21 = vector.broadcast %9 : i32 to vector<2x256xi32>
    %22 = arith.addi %11, %21 : vector<2x256xi32>
    %23 = arith.select %20, %22, %11 : vector<2x256xi1>, vector<2x256xi32>
    %c32_i32 = arith.constant 32 : i32
    %24 = vector.broadcast %c32_i32 : i32 to vector<2x256xi32>
    %25 = arith.cmpi slt, %23, %24 : vector<2x256xi32>
    %c128_i32 = arith.constant 128 : i32
    %26 = vector.broadcast %c128_i32 : i32 to vector<2x256xi32>
    %27 = arith.cmpi sge, %7, %26 : vector<2x256xi32>
    %c192_i32 = arith.constant 192 : i32
    %28 = vector.broadcast %c192_i32 : i32 to vector<2x256xi32>
    %29 = arith.cmpi slt, %7, %28 : vector<2x256xi32>
    %30 = arith.andi %27, %29 : vector<2x256xi1>
    %cst = arith.constant 1.000000e+00 : f32
    %cst_4 = arith.constant 5.000000e-01 : f32
    %31 = vector.broadcast %cst : f32 to vector<2x256xf32>
    %32 = vector.broadcast %cst_4 : f32 to vector<2x256xf32>
    %33 = arith.select %30, %31, %32 : vector<2x256xi1>, vector<2x256xf32>
    %cst_5 = arith.constant 0.000000e+00 : f32
    %cst_6 = arith.constant 5.000000e-01 : f32
    %34 = vector.broadcast %cst_5 : f32 to vector<2x256xf32>
    %35 = vector.broadcast %cst_6 : f32 to vector<2x256xf32>
    %36 = arith.select %30, %34, %35 : vector<2x256xi1>, vector<2x256xf32>
    %c0_7 = arith.constant 0 : index
    %c0_8 = arith.constant 0 : index
    %37 = vector.load %arg1[%c0_7, %c0_8] : memref<64x256xbf16, #tpu.memory_space<vmem>>, vector<64x256xbf16>
    %cst_9 = arith.constant dense<0.000000e+00> : vector<32x256xf32>
    %38 = tpu.matmul %6, %37, %cst_9 {dimension_numbers = #tpu.dot_dimension_numbers<[1], [0], [0], [1], [0, 0, 1, 1], [], []>} : vector<32x64xbf16>, vector<64x256xbf16>, vector<32x256xf32> -> vector<32x256xf32>
    %c0_10 = arith.constant 0 : index
    %c0_11 = arith.constant 0 : index
    %39 = vector.load %arg3[%c0_10, %c0_11] : memref<1x256xf32, #tpu.memory_space<vmem>>, vector<1x256xf32>
    %40 = vector.broadcast %39 : vector<1x256xf32> to vector<32x256xf32>
    %41 = arith.addf %38, %40 : vector<32x256xf32>
    %c0_12 = arith.constant 0 : index
    %c0_13 = arith.constant 0 : index
    %42 = vector.load %arg2[%c0_12, %c0_13] : memref<64x256xbf16, #tpu.memory_space<vmem>>, vector<64x256xbf16>
    %43 = vector.extract_strided_slice %41 {offsets = [0, 0], sizes = [2, 256], strides = [1, 1]} : vector<32x256xf32> to vector<2x256xf32>
    %44 = vector.extract_strided_slice %41 {offsets = [30, 0], sizes = [2, 256], strides = [1, 1]} : vector<32x256xf32> to vector<2x256xf32>
    %45 = arith.select %25, %43, %44 : vector<2x256xi1>, vector<2x256xf32>
    %c0_14 = arith.constant 0 : index
    %c0_15 = arith.constant 0 : index
    %c0_16 = arith.constant 0 : index
    %46 = vector.load %arg12[%c0_14, %c0_15, %c0_16] : memref<16x2x256xf32, #tpu.memory_space<vmem>>, vector<1x2x256xf32>
    %47 = vector.shape_cast %46 : vector<1x2x256xf32> to vector<2x256xf32>
    %48 = vector.shape_cast %45 : vector<2x256xf32> to vector<1x2x256xf32>
    tpu.vector_store %arg12[%c0_14, %c0_15, %c0_16], %48 {strides = array<i32>} : memref<16x2x256xf32, #tpu.memory_space<vmem>>, vector<1x2x256xf32>,
    %49 = vector.extract_strided_slice %41 {offsets = [2, 0], sizes = [2, 256], strides = [1, 1]} : vector<32x256xf32> to vector<2x256xf32>
    %50 = vector.extract_strided_slice %41 {offsets = [28, 0], sizes = [2, 256], strides = [1, 1]} : vector<32x256xf32> to vector<2x256xf32>
    %51 = arith.select %25, %49, %50 : vector<2x256xi1>, vector<2x256xf32>
    %c1 = arith.constant 1 : index
    %c0_17 = arith.constant 0 : index
    %c0_18 = arith.constant 0 : index
    %52 = vector.load %arg12[%c1, %c0_17, %c0_18] : memref<16x2x256xf32, #tpu.memory_space<vmem>>, vector<1x2x256xf32>
    %53 = vector.shape_cast %52 : vector<1x2x256xf32> to vector<2x256xf32>
    %54 = vector.shape_cast %51 : vector<2x256xf32> to vector<1x2x256xf32>
    tpu.vector_store %arg12[%c1, %c0_17, %c0_18], %54 {strides = array<i32>} : memref<16x2x256xf32, #tpu.memory_space<vmem>>, vector<1x2x256xf32>,
    %55 = vector.extract_strided_slice %41 {offsets = [4, 0], sizes = [2, 256], strides = [1, 1]} : vector<32x256xf32> to vector<2x256xf32>
    %56 = vector.extract_strided_slice %41 {offsets = [26, 0], sizes = [2, 256], strides = [1, 1]} : vector<32x256xf32> to vector<2x256xf32>
    %57 = arith.select %25, %55, %56 : vector<2x256xi1>, vector<2x256xf32>
    %c2 = arith.constant 2 : index
    %c0_19 = arith.constant 0 : index
    %c0_20 = arith.constant 0 : index
    %58 = vector.load %arg12[%c2, %c0_19, %c0_20] : memref<16x2x256xf32, #tpu.memory_space<vmem>>, vector<1x2x256xf32>
    %59 = vector.shape_cast %58 : vector<1x2x256xf32> to vector<2x256xf32>
    %60 = vector.shape_cast %57 : vector<2x256xf32> to vector<1x2x256xf32>
    tpu.vector_store %arg12[%c2, %c0_19, %c0_20], %60 {strides = array<i32>} : memref<16x2x256xf32, #tpu.memory_space<vmem>>, vector<1x2x256xf32>,
    %61 = vector.extract_strided_slice %41 {offsets = [6, 0], sizes = [2, 256], strides = [1, 1]} : vector<32x256xf32> to vector<2x256xf32>
    %62 = vector.extract_strided_slice %41 {offsets = [24, 0], sizes = [2, 256], strides = [1, 1]} : vector<32x256xf32> to vector<2x256xf32>
    %63 = arith.select %25, %61, %62 : vector<2x256xi1>, vector<2x256xf32>
    %c3 = arith.constant 3 : index
    %c0_21 = arith.constant 0 : index
    %c0_22 = arith.constant 0 : index
    %64 = vector.load %arg12[%c3, %c0_21, %c0_22] : memref<16x2x256xf32, #tpu.memory_space<vmem>>, vector<1x2x256xf32>
    %65 = vector.shape_cast %64 : vector<1x2x256xf32> to vector<2x256xf32>
    %66 = vector.shape_cast %63 : vector<2x256xf32> to vector<1x2x256xf32>
    tpu.vector_store %arg12[%c3, %c0_21, %c0_22], %66 {strides = array<i32>} : memref<16x2x256xf32, #tpu.memory_space<vmem>>, vector<1x2x256xf32>,
    %67 = vector.extract_strided_slice %41 {offsets = [8, 0], sizes = [2, 256], strides = [1, 1]} : vector<32x256xf32> to vector<2x256xf32>
    %68 = vector.extract_strided_slice %41 {offsets = [22, 0], sizes = [2, 256], strides = [1, 1]} : vector<32x256xf32> to vector<2x256xf32>
    %69 = arith.select %25, %67, %68 : vector<2x256xi1>, vector<2x256xf32>
    %c4 = arith.constant 4 : index
    %c0_23 = arith.constant 0 : index
    %c0_24 = arith.constant 0 : index
    %70 = vector.load %arg12[%c4, %c0_23, %c0_24] : memref<16x2x256xf32, #tpu.memory_space<vmem>>, vector<1x2x256xf32>
    %71 = vector.shape_cast %70 : vector<1x2x256xf32> to vector<2x256xf32>
    %72 = vector.shape_cast %69 : vector<2x256xf32> to vector<1x2x256xf32>
    tpu.vector_store %arg12[%c4, %c0_23, %c0_24], %72 {strides = array<i32>} : memref<16x2x256xf32, #tpu.memory_space<vmem>>, vector<1x2x256xf32>,
    %73 = vector.extract_strided_slice %41 {offsets = [10, 0], sizes = [2, 256], strides = [1, 1]} : vector<32x256xf32> to vector<2x256xf32>
    %74 = vector.extract_strided_slice %41 {offsets = [20, 0], sizes = [2, 256], strides = [1, 1]} : vector<32x256xf32> to vector<2x256xf32>
    %75 = arith.select %25, %73, %74 : vector<2x256xi1>, vector<2x256xf32>
    %c5 = arith.constant 5 : index
    %c0_25 = arith.constant 0 : index
    %c0_26 = arith.constant 0 : index
    %76 = vector.load %arg12[%c5, %c0_25, %c0_26] : memref<16x2x256xf32, #tpu.memory_space<vmem>>, vector<1x2x256xf32>
    %77 = vector.shape_cast %76 : vector<1x2x256xf32> to vector<2x256xf32>
    %78 = vector.shape_cast %75 : vector<2x256xf32> to vector<1x2x256xf32>
    tpu.vector_store %arg12[%c5, %c0_25, %c0_26], %78 {strides = array<i32>} : memref<16x2x256xf32, #tpu.memory_space<vmem>>, vector<1x2x256xf32>,
    %79 = vector.extract_strided_slice %41 {offsets = [12, 0], sizes = [2, 256], strides = [1, 1]} : vector<32x256xf32> to vector<2x256xf32>
    %80 = vector.extract_strided_slice %41 {offsets = [18, 0], sizes = [2, 256], strides = [1, 1]} : vector<32x256xf32> to vector<2x256xf32>
    %81 = arith.select %25, %79, %80 : vector<2x256xi1>, vector<2x256xf32>
    %c6 = arith.constant 6 : index
    %c0_27 = arith.constant 0 : index
    %c0_28 = arith.constant 0 : index
    %82 = vector.load %arg12[%c6, %c0_27, %c0_28] : memref<16x2x256xf32, #tpu.memory_space<vmem>>, vector<1x2x256xf32>
    %83 = vector.shape_cast %82 : vector<1x2x256xf32> to vector<2x256xf32>
    %84 = vector.shape_cast %81 : vector<2x256xf32> to vector<1x2x256xf32>
    tpu.vector_store %arg12[%c6, %c0_27, %c0_28], %84 {strides = array<i32>} : memref<16x2x256xf32, #tpu.memory_space<vmem>>, vector<1x2x256xf32>,
    %85 = vector.extract_strided_slice %41 {offsets = [14, 0], sizes = [2, 256], strides = [1, 1]} : vector<32x256xf32> to vector<2x256xf32>
    %86 = vector.extract_strided_slice %41 {offsets = [16, 0], sizes = [2, 256], strides = [1, 1]} : vector<32x256xf32> to vector<2x256xf32>
    %87 = arith.select %25, %85, %86 : vector<2x256xi1>, vector<2x256xf32>
    %c7 = arith.constant 7 : index
    %c0_29 = arith.constant 0 : index
    %c0_30 = arith.constant 0 : index
    %88 = vector.load %arg12[%c7, %c0_29, %c0_30] : memref<16x2x256xf32, #tpu.memory_space<vmem>>, vector<1x2x256xf32>
    %89 = vector.shape_cast %88 : vector<1x2x256xf32> to vector<2x256xf32>
    %90 = vector.shape_cast %87 : vector<2x256xf32> to vector<1x2x256xf32>
    tpu.vector_store %arg12[%c7, %c0_29, %c0_30], %90 {strides = array<i32>} : memref<16x2x256xf32, #tpu.memory_space<vmem>>, vector<1x2x256xf32>,
    %91 = vector.extract_strided_slice %41 {offsets = [16, 0], sizes = [2, 256], strides = [1, 1]} : vector<32x256xf32> to vector<2x256xf32>
    %92 = vector.extract_strided_slice %41 {offsets = [14, 0], sizes = [2, 256], strides = [1, 1]} : vector<32x256xf32> to vector<2x256xf32>
    %93 = arith.select %25, %91, %92 : vector<2x256xi1>, vector<2x256xf32>
    %c8 = arith.constant 8 : index
    %c0_31 = arith.constant 0 : index
    %c0_32 = arith.constant 0 : index
    %94 = vector.load %arg12[%c8, %c0_31, %c0_32] : memref<16x2x256xf32, #tpu.memory_space<vmem>>, vector<1x2x256xf32>
    %95 = vector.shape_cast %94 : vector<1x2x256xf32> to vector<2x256xf32>
    %96 = vector.shape_cast %93 : vector<2x256xf32> to vector<1x2x256xf32>
    tpu.vector_store %arg12[%c8, %c0_31, %c0_32], %96 {strides = array<i32>} : memref<16x2x256xf32, #tpu.memory_space<vmem>>, vector<1x2x256xf32>,
    %97 = vector.extract_strided_slice %41 {offsets = [18, 0], sizes = [2, 256], strides = [1, 1]} : vector<32x256xf32> to vector<2x256xf32>
    %98 = vector.extract_strided_slice %41 {offsets = [12, 0], sizes = [2, 256], strides = [1, 1]} : vector<32x256xf32> to vector<2x256xf32>
    %99 = arith.select %25, %97, %98 : vector<2x256xi1>, vector<2x256xf32>
    %c9 = arith.constant 9 : index
    %c0_33 = arith.constant 0 : index
    %c0_34 = arith.constant 0 : index
    %100 = vector.load %arg12[%c9, %c0_33, %c0_34] : memref<16x2x256xf32, #tpu.memory_space<vmem>>, vector<1x2x256xf32>
    %101 = vector.shape_cast %100 : vector<1x2x256xf32> to vector<2x256xf32>
    %102 = vector.shape_cast %99 : vector<2x256xf32> to vector<1x2x256xf32>
    tpu.vector_store %arg12[%c9, %c0_33, %c0_34], %102 {strides = array<i32>} : memref<16x2x256xf32, #tpu.memory_space<vmem>>, vector<1x2x256xf32>,
    %103 = vector.extract_strided_slice %41 {offsets = [20, 0], sizes = [2, 256], strides = [1, 1]} : vector<32x256xf32> to vector<2x256xf32>
    %104 = vector.extract_strided_slice %41 {offsets = [10, 0], sizes = [2, 256], strides = [1, 1]} : vector<32x256xf32> to vector<2x256xf32>
    %105 = arith.select %25, %103, %104 : vector<2x256xi1>, vector<2x256xf32>
    %c10 = arith.constant 10 : index
    %c0_35 = arith.constant 0 : index
    %c0_36 = arith.constant 0 : index
    %106 = vector.load %arg12[%c10, %c0_35, %c0_36] : memref<16x2x256xf32, #tpu.memory_space<vmem>>, vector<1x2x256xf32>
    %107 = vector.shape_cast %106 : vector<1x2x256xf32> to vector<2x256xf32>
    %108 = vector.shape_cast %105 : vector<2x256xf32> to vector<1x2x256xf32>
    tpu.vector_store %arg12[%c10, %c0_35, %c0_36], %108 {strides = array<i32>} : memref<16x2x256xf32, #tpu.memory_space<vmem>>, vector<1x2x256xf32>,
    %109 = vector.extract_strided_slice %41 {offsets = [22, 0], sizes = [2, 256], strides = [1, 1]} : vector<32x256xf32> to vector<2x256xf32>
    %110 = vector.extract_strided_slice %41 {offsets = [8, 0], sizes = [2, 256], strides = [1, 1]} : vector<32x256xf32> to vector<2x256xf32>
    %111 = arith.select %25, %109, %110 : vector<2x256xi1>, vector<2x256xf32>
    %c11 = arith.constant 11 : index
    %c0_37 = arith.constant 0 : index
    %c0_38 = arith.constant 0 : index
    %112 = vector.load %arg12[%c11, %c0_37, %c0_38] : memref<16x2x256xf32, #tpu.memory_space<vmem>>, vector<1x2x256xf32>
    %113 = vector.shape_cast %112 : vector<1x2x256xf32> to vector<2x256xf32>
    %114 = vector.shape_cast %111 : vector<2x256xf32> to vector<1x2x256xf32>
    tpu.vector_store %arg12[%c11, %c0_37, %c0_38], %114 {strides = array<i32>} : memref<16x2x256xf32, #tpu.memory_space<vmem>>, vector<1x2x256xf32>,
    %115 = vector.extract_strided_slice %41 {offsets = [24, 0], sizes = [2, 256], strides = [1, 1]} : vector<32x256xf32> to vector<2x256xf32>
    %116 = vector.extract_strided_slice %41 {offsets = [6, 0], sizes = [2, 256], strides = [1, 1]} : vector<32x256xf32> to vector<2x256xf32>
    %117 = arith.select %25, %115, %116 : vector<2x256xi1>, vector<2x256xf32>
    %c12 = arith.constant 12 : index
    %c0_39 = arith.constant 0 : index
    %c0_40 = arith.constant 0 : index
    %118 = vector.load %arg12[%c12, %c0_39, %c0_40] : memref<16x2x256xf32, #tpu.memory_space<vmem>>, vector<1x2x256xf32>
    %119 = vector.shape_cast %118 : vector<1x2x256xf32> to vector<2x256xf32>
    %120 = vector.shape_cast %117 : vector<2x256xf32> to vector<1x2x256xf32>
    tpu.vector_store %arg12[%c12, %c0_39, %c0_40], %120 {strides = array<i32>} : memref<16x2x256xf32, #tpu.memory_space<vmem>>, vector<1x2x256xf32>,
    %121 = vector.extract_strided_slice %41 {offsets = [26, 0], sizes = [2, 256], strides = [1, 1]} : vector<32x256xf32> to vector<2x256xf32>
    %122 = vector.extract_strided_slice %41 {offsets = [4, 0], sizes = [2, 256], strides = [1, 1]} : vector<32x256xf32> to vector<2x256xf32>
    %123 = arith.select %25, %121, %122 : vector<2x256xi1>, vector<2x256xf32>
    %c13 = arith.constant 13 : index
    %c0_41 = arith.constant 0 : index
    %c0_42 = arith.constant 0 : index
    %124 = vector.load %arg12[%c13, %c0_41, %c0_42] : memref<16x2x256xf32, #tpu.memory_space<vmem>>, vector<1x2x256xf32>
    %125 = vector.shape_cast %124 : vector<1x2x256xf32> to vector<2x256xf32>
    %126 = vector.shape_cast %123 : vector<2x256xf32> to vector<1x2x256xf32>
    tpu.vector_store %arg12[%c13, %c0_41, %c0_42], %126 {strides = array<i32>} : memref<16x2x256xf32, #tpu.memory_space<vmem>>, vector<1x2x256xf32>,
    %127 = vector.extract_strided_slice %41 {offsets = [28, 0], sizes = [2, 256], strides = [1, 1]} : vector<32x256xf32> to vector<2x256xf32>
    %128 = vector.extract_strided_slice %41 {offsets = [2, 0], sizes = [2, 256], strides = [1, 1]} : vector<32x256xf32> to vector<2x256xf32>
    %129 = arith.select %25, %127, %128 : vector<2x256xi1>, vector<2x256xf32>
    %c14 = arith.constant 14 : index
    %c0_43 = arith.constant 0 : index
    %c0_44 = arith.constant 0 : index
    %130 = vector.load %arg12[%c14, %c0_43, %c0_44] : memref<16x2x256xf32, #tpu.memory_space<vmem>>, vector<1x2x256xf32>
    %131 = vector.shape_cast %130 : vector<1x2x256xf32> to vector<2x256xf32>
    %132 = vector.shape_cast %129 : vector<2x256xf32> to vector<1x2x256xf32>
    tpu.vector_store %arg12[%c14, %c0_43, %c0_44], %132 {strides = array<i32>} : memref<16x2x256xf32, #tpu.memory_space<vmem>>, vector<1x2x256xf32>,
    %133 = vector.extract_strided_slice %41 {offsets = [30, 0], sizes = [2, 256], strides = [1, 1]} : vector<32x256xf32> to vector<2x256xf32>
    %134 = vector.extract_strided_slice %41 {offsets = [0, 0], sizes = [2, 256], strides = [1, 1]} : vector<32x256xf32> to vector<2x256xf32>
    %135 = arith.select %25, %133, %134 : vector<2x256xi1>, vector<2x256xf32>
    %c15 = arith.constant 15 : index
    %c0_45 = arith.constant 0 : index
    %c0_46 = arith.constant 0 : index
    %136 = vector.load %arg12[%c15, %c0_45, %c0_46] : memref<16x2x256xf32, #tpu.memory_space<vmem>>, vector<1x2x256xf32>
    %137 = vector.shape_cast %136 : vector<1x2x256xf32> to vector<2x256xf32>
    %138 = vector.shape_cast %135 : vector<2x256xf32> to vector<1x2x256xf32>
    tpu.vector_store %arg12[%c15, %c0_45, %c0_46], %138 {strides = array<i32>} : memref<16x2x256xf32, #tpu.memory_space<vmem>>, vector<1x2x256xf32>,
    %cst_47 = arith.constant 0.000000e+00 : f32
    %139 = vector.broadcast %cst_47 : f32 to vector<2x64xf32>
    %cst_48 = arith.constant 0.000000e+00 : f32
    %140 = vector.broadcast %cst_48 : f32 to vector<2x64xf32>
    %c0_49 = arith.constant 0 : index
    %c0_50 = arith.constant 0 : index
    %c0_51 = arith.constant 0 : index
    %141 = vector.load %arg12[%c0_49, %c0_50, %c0_51] : memref<16x2x256xf32, #tpu.memory_space<vmem>>, vector<1x2x256xf32>
    %142 = vector.shape_cast %141 : vector<1x2x256xf32> to vector<2x256xf32>
    %143 = arith.truncf %139 : vector<2x64xf32> to vector<2x64xbf16>
    %cst_52 = arith.constant dense<0.000000e+00> : vector<2x256xf32>
    %144 = tpu.matmul %143, %42, %cst_52 {dimension_numbers = #tpu.dot_dimension_numbers<[1], [0], [0], [1], [0, 0, 1, 1], [], []>} : vector<2x64xbf16>, vector<64x256xbf16>, vector<2x256xf32> -> vector<2x256xf32>
    %145 = arith.addf %142, %144 : vector<2x256xf32>
    %146 = math.tanh %145 : vector<2x256xf32>
    %147 = arith.mulf %146, %33 : vector<2x256xf32>
    %148 = arith.addf %147, %36 : vector<2x256xf32>
    %149 = vector.extract_strided_slice %148 {offsets = [0, 0], sizes = [2, 64], strides = [1, 1]} : vector<2x256xf32> to vector<2x64xf32>
    %150 = vector.extract_strided_slice %148 {offsets = [0, 64], sizes = [2, 64], strides = [1, 1]} : vector<2x256xf32> to vector<2x64xf32>
    %151 = vector.extract_strided_slice %148 {offsets = [0, 128], sizes = [2, 64], strides = [1, 1]} : vector<2x256xf32> to vector<2x64xf32>
    %152 = vector.extract_strided_slice %148 {offsets = [0, 192], sizes = [2, 64], strides = [1, 1]} : vector<2x256xf32> to vector<2x64xf32>
    %153 = arith.mulf %150, %140 : vector<2x64xf32>
    %154 = arith.mulf %149, %151 : vector<2x64xf32>
    %155 = arith.addf %153, %154 : vector<2x64xf32>
    %156 = math.tanh %155 : vector<2x64xf32>
    %157 = arith.mulf %152, %156 : vector<2x64xf32>
    %158 = vector.extract_strided_slice %157 {offsets = [0, 0], sizes = [2, 32], strides = [1, 1]} : vector<2x64xf32> to vector<2x32xf32>
    %c0_53 = arith.constant 0 : index
    %c0_54 = arith.constant 0 : index
    %159 = vector.load %arg13[%c0_53, %c0_54] : memref<32x64xf32, #tpu.memory_space<vmem>>, vector<2x32xf32>
    tpu.vector_store %arg13[%c0_53, %c0_54], %158 {strides = array<i32>} : memref<32x64xf32, #tpu.memory_space<vmem>>, vector<2x32xf32>,
    %160 = vector.extract_strided_slice %157 {offsets = [0, 32], sizes = [2, 32], strides = [1, 1]} : vector<2x64xf32> to vector<2x32xf32>
    %c30 = arith.constant 30 : index
    %c32 = arith.constant 32 : index
    %161 = vector.load %arg13[%c30, %c32] : memref<32x64xf32, #tpu.memory_space<vmem>>, vector<2x32xf32>
    tpu.vector_store %arg13[%c30, %c32], %160 {strides = array<i32>} : memref<32x64xf32, #tpu.memory_space<vmem>>, vector<2x32xf32>,
    %c1_55 = arith.constant 1 : index
    %c0_56 = arith.constant 0 : index
    %c0_57 = arith.constant 0 : index
    %162 = vector.load %arg12[%c1_55, %c0_56, %c0_57] : memref<16x2x256xf32, #tpu.memory_space<vmem>>, vector<1x2x256xf32>
    %163 = vector.shape_cast %162 : vector<1x2x256xf32> to vector<2x256xf32>
    %164 = arith.truncf %157 : vector<2x64xf32> to vector<2x64xbf16>
    %cst_58 = arith.constant dense<0.000000e+00> : vector<2x256xf32>
    %165 = tpu.matmul %164, %42, %cst_58 {dimension_numbers = #tpu.dot_dimension_numbers<[1], [0], [0], [1], [0, 0, 1, 1], [], []>} : vector<2x64xbf16>, vector<64x256xbf16>, vector<2x256xf32> -> vector<2x256xf32>
    %166 = arith.addf %163, %165 : vector<2x256xf32>
    %167 = math.tanh %166 : vector<2x256xf32>
    %168 = arith.mulf %167, %33 : vector<2x256xf32>
    %169 = arith.addf %168, %36 : vector<2x256xf32>
    %170 = vector.extract_strided_slice %169 {offsets = [0, 0], sizes = [2, 64], strides = [1, 1]} : vector<2x256xf32> to vector<2x64xf32>
    %171 = vector.extract_strided_slice %169 {offsets = [0, 64], sizes = [2, 64], strides = [1, 1]} : vector<2x256xf32> to vector<2x64xf32>
    %172 = vector.extract_strided_slice %169 {offsets = [0, 128], sizes = [2, 64], strides = [1, 1]} : vector<2x256xf32> to vector<2x64xf32>
    %173 = vector.extract_strided_slice %169 {offsets = [0, 192], sizes = [2, 64], strides = [1, 1]} : vector<2x256xf32> to vector<2x64xf32>
    %174 = arith.mulf %171, %155 : vector<2x64xf32>
    %175 = arith.mulf %170, %172 : vector<2x64xf32>
    %176 = arith.addf %174, %175 : vector<2x64xf32>
    %177 = math.tanh %176 : vector<2x64xf32>
    %178 = arith.mulf %173, %177 : vector<2x64xf32>
    %179 = vector.extract_strided_slice %178 {offsets = [0, 0], sizes = [2, 32], strides = [1, 1]} : vector<2x64xf32> to vector<2x32xf32>
    %c2_59 = arith.constant 2 : index
    %c0_60 = arith.constant 0 : index
    %180 = vector.load %arg13[%c2_59, %c0_60] : memref<32x64xf32, #tpu.memory_space<vmem>>, vector<2x32xf32>
    tpu.vector_store %arg13[%c2_59, %c0_60], %179 {strides = array<i32>} : memref<32x64xf32, #tpu.memory_space<vmem>>, vector<2x32xf32>,
    %181 = vector.extract_strided_slice %178 {offsets = [0, 32], sizes = [2, 32], strides = [1, 1]} : vector<2x64xf32> to vector<2x32xf32>
    %c28 = arith.constant 28 : index
    %c32_61 = arith.constant 32 : index
    %182 = vector.load %arg13[%c28, %c32_61] : memref<32x64xf32, #tpu.memory_space<vmem>>, vector<2x32xf32>
    tpu.vector_store %arg13[%c28, %c32_61], %181 {strides = array<i32>} : memref<32x64xf32, #tpu.memory_space<vmem>>, vector<2x32xf32>,
    %c2_62 = arith.constant 2 : index
    %c0_63 = arith.constant 0 : index
    %c0_64 = arith.constant 0 : index
    %183 = vector.load %arg12[%c2_62, %c0_63, %c0_64] : memref<16x2x256xf32, #tpu.memory_space<vmem>>, vector<1x2x256xf32>
    %184 = vector.shape_cast %183 : vector<1x2x256xf32> to vector<2x256xf32>
    %185 = arith.truncf %178 : vector<2x64xf32> to vector<2x64xbf16>
    %cst_65 = arith.constant dense<0.000000e+00> : vector<2x256xf32>
    %186 = tpu.matmul %185, %42, %cst_65 {dimension_numbers = #tpu.dot_dimension_numbers<[1], [0], [0], [1], [0, 0, 1, 1], [], []>} : vector<2x64xbf16>, vector<64x256xbf16>, vector<2x256xf32> -> vector<2x256xf32>
    %187 = arith.addf %184, %186 : vector<2x256xf32>
    %188 = math.tanh %187 : vector<2x256xf32>
    %189 = arith.mulf %188, %33 : vector<2x256xf32>
    %190 = arith.addf %189, %36 : vector<2x256xf32>
    %191 = vector.extract_strided_slice %190 {offsets = [0, 0], sizes = [2, 64], strides = [1, 1]} : vector<2x256xf32> to vector<2x64xf32>
    %192 = vector.extract_strided_slice %190 {offsets = [0, 64], sizes = [2, 64], strides = [1, 1]} : vector<2x256xf32> to vector<2x64xf32>
    %193 = vector.extract_strided_slice %190 {offsets = [0, 128], sizes = [2, 64], strides = [1, 1]} : vector<2x256xf32> to vector<2x64xf32>
    %194 = vector.extract_strided_slice %190 {offsets = [0, 192], sizes = [2, 64], strides = [1, 1]} : vector<2x256xf32> to vector<2x64xf32>
    %195 = arith.mulf %192, %176 : vector<2x64xf32>
    %196 = arith.mulf %191, %193 : vector<2x64xf32>
    %197 = arith.addf %195, %196 : vector<2x64xf32>
    %198 = math.tanh %197 : vector<2x64xf32>
    %199 = arith.mulf %194, %198 : vector<2x64xf32>
    %200 = vector.extract_strided_slice %199 {offsets = [0, 0], sizes = [2, 32], strides = [1, 1]} : vector<2x64xf32> to vector<2x32xf32>
    %c4_66 = arith.constant 4 : index
    %c0_67 = arith.constant 0 : index
    %201 = vector.load %arg13[%c4_66, %c0_67] : memref<32x64xf32, #tpu.memory_space<vmem>>, vector<2x32xf32>
    tpu.vector_store %arg13[%c4_66, %c0_67], %200 {strides = array<i32>} : memref<32x64xf32, #tpu.memory_space<vmem>>, vector<2x32xf32>,
    %202 = vector.extract_strided_slice %199 {offsets = [0, 32], sizes = [2, 32], strides = [1, 1]} : vector<2x64xf32> to vector<2x32xf32>
    %c26 = arith.constant 26 : index
    %c32_68 = arith.constant 32 : index
    %203 = vector.load %arg13[%c26, %c32_68] : memref<32x64xf32, #tpu.memory_space<vmem>>, vector<2x32xf32>
    tpu.vector_store %arg13[%c26, %c32_68], %202 {strides = array<i32>} : memref<32x64xf32, #tpu.memory_space<vmem>>, vector<2x32xf32>,
    %c3_69 = arith.constant 3 : index
    %c0_70 = arith.constant 0 : index
    %c0_71 = arith.constant 0 : index
    %204 = vector.load %arg12[%c3_69, %c0_70, %c0_71] : memref<16x2x256xf32, #tpu.memory_space<vmem>>, vector<1x2x256xf32>
    %205 = vector.shape_cast %204 : vector<1x2x256xf32> to vector<2x256xf32>
    %206 = arith.truncf %199 : vector<2x64xf32> to vector<2x64xbf16>
    %cst_72 = arith.constant dense<0.000000e+00> : vector<2x256xf32>
    %207 = tpu.matmul %206, %42, %cst_72 {dimension_numbers = #tpu.dot_dimension_numbers<[1], [0], [0], [1], [0, 0, 1, 1], [], []>} : vector<2x64xbf16>, vector<64x256xbf16>, vector<2x256xf32> -> vector<2x256xf32>
    %208 = arith.addf %205, %207 : vector<2x256xf32>
    %209 = math.tanh %208 : vector<2x256xf32>
    %210 = arith.mulf %209, %33 : vector<2x256xf32>
    %211 = arith.addf %210, %36 : vector<2x256xf32>
    %212 = vector.extract_strided_slice %211 {offsets = [0, 0], sizes = [2, 64], strides = [1, 1]} : vector<2x256xf32> to vector<2x64xf32>
    %213 = vector.extract_strided_slice %211 {offsets = [0, 64], sizes = [2, 64], strides = [1, 1]} : vector<2x256xf32> to vector<2x64xf32>
    %214 = vector.extract_strided_slice %211 {offsets = [0, 128], sizes = [2, 64], strides = [1, 1]} : vector<2x256xf32> to vector<2x64xf32>
    %215 = vector.extract_strided_slice %211 {offsets = [0, 192], sizes = [2, 64], strides = [1, 1]} : vector<2x256xf32> to vector<2x64xf32>
    %216 = arith.mulf %213, %197 : vector<2x64xf32>
    %217 = arith.mulf %212, %214 : vector<2x64xf32>
    %218 = arith.addf %216, %217 : vector<2x64xf32>
    %219 = math.tanh %218 : vector<2x64xf32>
    %220 = arith.mulf %215, %219 : vector<2x64xf32>
    %221 = vector.extract_strided_slice %220 {offsets = [0, 0], sizes = [2, 32], strides = [1, 1]} : vector<2x64xf32> to vector<2x32xf32>
    %c6_73 = arith.constant 6 : index
    %c0_74 = arith.constant 0 : index
    %222 = vector.load %arg13[%c6_73, %c0_74] : memref<32x64xf32, #tpu.memory_space<vmem>>, vector<2x32xf32>
    tpu.vector_store %arg13[%c6_73, %c0_74], %221 {strides = array<i32>} : memref<32x64xf32, #tpu.memory_space<vmem>>, vector<2x32xf32>,
    %223 = vector.extract_strided_slice %220 {offsets = [0, 32], sizes = [2, 32], strides = [1, 1]} : vector<2x64xf32> to vector<2x32xf32>
    %c24 = arith.constant 24 : index
    %c32_75 = arith.constant 32 : index
    %224 = vector.load %arg13[%c24, %c32_75] : memref<32x64xf32, #tpu.memory_space<vmem>>, vector<2x32xf32>
    tpu.vector_store %arg13[%c24, %c32_75], %223 {strides = array<i32>} : memref<32x64xf32, #tpu.memory_space<vmem>>, vector<2x32xf32>,
    %c4_76 = arith.constant 4 : index
    %c0_77 = arith.constant 0 : index
    %c0_78 = arith.constant 0 : index
    %225 = vector.load %arg12[%c4_76, %c0_77, %c0_78] : memref<16x2x256xf32, #tpu.memory_space<vmem>>, vector<1x2x256xf32>
    %226 = vector.shape_cast %225 : vector<1x2x256xf32> to vector<2x256xf32>
    %227 = arith.truncf %220 : vector<2x64xf32> to vector<2x64xbf16>
    %cst_79 = arith.constant dense<0.000000e+00> : vector<2x256xf32>
    %228 = tpu.matmul %227, %42, %cst_79 {dimension_numbers = #tpu.dot_dimension_numbers<[1], [0], [0], [1], [0, 0, 1, 1], [], []>} : vector<2x64xbf16>, vector<64x256xbf16>, vector<2x256xf32> -> vector<2x256xf32>
    %229 = arith.addf %226, %228 : vector<2x256xf32>
    %230 = math.tanh %229 : vector<2x256xf32>
    %231 = arith.mulf %230, %33 : vector<2x256xf32>
    %232 = arith.addf %231, %36 : vector<2x256xf32>
    %233 = vector.extract_strided_slice %232 {offsets = [0, 0], sizes = [2, 64], strides = [1, 1]} : vector<2x256xf32> to vector<2x64xf32>
    %234 = vector.extract_strided_slice %232 {offsets = [0, 64], sizes = [2, 64], strides = [1, 1]} : vector<2x256xf32> to vector<2x64xf32>
    %235 = vector.extract_strided_slice %232 {offsets = [0, 128], sizes = [2, 64], strides = [1, 1]} : vector<2x256xf32> to vector<2x64xf32>
    %236 = vector.extract_strided_slice %232 {offsets = [0, 192], sizes = [2, 64], strides = [1, 1]} : vector<2x256xf32> to vector<2x64xf32>
    %237 = arith.mulf %234, %218 : vector<2x64xf32>
    %238 = arith.mulf %233, %235 : vector<2x64xf32>
    %239 = arith.addf %237, %238 : vector<2x64xf32>
    %240 = math.tanh %239 : vector<2x64xf32>
    %241 = arith.mulf %236, %240 : vector<2x64xf32>
    %242 = vector.extract_strided_slice %241 {offsets = [0, 0], sizes = [2, 32], strides = [1, 1]} : vector<2x64xf32> to vector<2x32xf32>
    %c8_80 = arith.constant 8 : index
    %c0_81 = arith.constant 0 : index
    %243 = vector.load %arg13[%c8_80, %c0_81] : memref<32x64xf32, #tpu.memory_space<vmem>>, vector<2x32xf32>
    tpu.vector_store %arg13[%c8_80, %c0_81], %242 {strides = array<i32>} : memref<32x64xf32, #tpu.memory_space<vmem>>, vector<2x32xf32>,
    %244 = vector.extract_strided_slice %241 {offsets = [0, 32], sizes = [2, 32], strides = [1, 1]} : vector<2x64xf32> to vector<2x32xf32>
    %c22 = arith.constant 22 : index
    %c32_82 = arith.constant 32 : index
    %245 = vector.load %arg13[%c22, %c32_82] : memref<32x64xf32, #tpu.memory_space<vmem>>, vector<2x32xf32>
    tpu.vector_store %arg13[%c22, %c32_82], %244 {strides = array<i32>} : memref<32x64xf32, #tpu.memory_space<vmem>>, vector<2x32xf32>,
    %c5_83 = arith.constant 5 : index
    %c0_84 = arith.constant 0 : index
    %c0_85 = arith.constant 0 : index
    %246 = vector.load %arg12[%c5_83, %c0_84, %c0_85] : memref<16x2x256xf32, #tpu.memory_space<vmem>>, vector<1x2x256xf32>
    %247 = vector.shape_cast %246 : vector<1x2x256xf32> to vector<2x256xf32>
    %248 = arith.truncf %241 : vector<2x64xf32> to vector<2x64xbf16>
    %cst_86 = arith.constant dense<0.000000e+00> : vector<2x256xf32>
    %249 = tpu.matmul %248, %42, %cst_86 {dimension_numbers = #tpu.dot_dimension_numbers<[1], [0], [0], [1], [0, 0, 1, 1], [], []>} : vector<2x64xbf16>, vector<64x256xbf16>, vector<2x256xf32> -> vector<2x256xf32>
    %250 = arith.addf %247, %249 : vector<2x256xf32>
    %251 = math.tanh %250 : vector<2x256xf32>
    %252 = arith.mulf %251, %33 : vector<2x256xf32>
    %253 = arith.addf %252, %36 : vector<2x256xf32>
    %254 = vector.extract_strided_slice %253 {offsets = [0, 0], sizes = [2, 64], strides = [1, 1]} : vector<2x256xf32> to vector<2x64xf32>
    %255 = vector.extract_strided_slice %253 {offsets = [0, 64], sizes = [2, 64], strides = [1, 1]} : vector<2x256xf32> to vector<2x64xf32>
    %256 = vector.extract_strided_slice %253 {offsets = [0, 128], sizes = [2, 64], strides = [1, 1]} : vector<2x256xf32> to vector<2x64xf32>
    %257 = vector.extract_strided_slice %253 {offsets = [0, 192], sizes = [2, 64], strides = [1, 1]} : vector<2x256xf32> to vector<2x64xf32>
    %258 = arith.mulf %255, %239 : vector<2x64xf32>
    %259 = arith.mulf %254, %256 : vector<2x64xf32>
    %260 = arith.addf %258, %259 : vector<2x64xf32>
    %261 = math.tanh %260 : vector<2x64xf32>
    %262 = arith.mulf %257, %261 : vector<2x64xf32>
    %263 = vector.extract_strided_slice %262 {offsets = [0, 0], sizes = [2, 32], strides = [1, 1]} : vector<2x64xf32> to vector<2x32xf32>
    %c10_87 = arith.constant 10 : index
    %c0_88 = arith.constant 0 : index
    %264 = vector.load %arg13[%c10_87, %c0_88] : memref<32x64xf32, #tpu.memory_space<vmem>>, vector<2x32xf32>
    tpu.vector_store %arg13[%c10_87, %c0_88], %263 {strides = array<i32>} : memref<32x64xf32, #tpu.memory_space<vmem>>, vector<2x32xf32>,
    %265 = vector.extract_strided_slice %262 {offsets = [0, 32], sizes = [2, 32], strides = [1, 1]} : vector<2x64xf32> to vector<2x32xf32>
    %c20 = arith.constant 20 : index
    %c32_89 = arith.constant 32 : index
    %266 = vector.load %arg13[%c20, %c32_89] : memref<32x64xf32, #tpu.memory_space<vmem>>, vector<2x32xf32>
    tpu.vector_store %arg13[%c20, %c32_89], %265 {strides = array<i32>} : memref<32x64xf32, #tpu.memory_space<vmem>>, vector<2x32xf32>,
    %c6_90 = arith.constant 6 : index
    %c0_91 = arith.constant 0 : index
    %c0_92 = arith.constant 0 : index
    %267 = vector.load %arg12[%c6_90, %c0_91, %c0_92] : memref<16x2x256xf32, #tpu.memory_space<vmem>>, vector<1x2x256xf32>
    %268 = vector.shape_cast %267 : vector<1x2x256xf32> to vector<2x256xf32>
    %269 = arith.truncf %262 : vector<2x64xf32> to vector<2x64xbf16>
    %cst_93 = arith.constant dense<0.000000e+00> : vector<2x256xf32>
    %270 = tpu.matmul %269, %42, %cst_93 {dimension_numbers = #tpu.dot_dimension_numbers<[1], [0], [0], [1], [0, 0, 1, 1], [], []>} : vector<2x64xbf16>, vector<64x256xbf16>, vector<2x256xf32> -> vector<2x256xf32>
    %271 = arith.addf %268, %270 : vector<2x256xf32>
    %272 = math.tanh %271 : vector<2x256xf32>
    %273 = arith.mulf %272, %33 : vector<2x256xf32>
    %274 = arith.addf %273, %36 : vector<2x256xf32>
    %275 = vector.extract_strided_slice %274 {offsets = [0, 0], sizes = [2, 64], strides = [1, 1]} : vector<2x256xf32> to vector<2x64xf32>
    %276 = vector.extract_strided_slice %274 {offsets = [0, 64], sizes = [2, 64], strides = [1, 1]} : vector<2x256xf32> to vector<2x64xf32>
    %277 = vector.extract_strided_slice %274 {offsets = [0, 128], sizes = [2, 64], strides = [1, 1]} : vector<2x256xf32> to vector<2x64xf32>
    %278 = vector.extract_strided_slice %274 {offsets = [0, 192], sizes = [2, 64], strides = [1, 1]} : vector<2x256xf32> to vector<2x64xf32>
    %279 = arith.mulf %276, %260 : vector<2x64xf32>
    %280 = arith.mulf %275, %277 : vector<2x64xf32>
    %281 = arith.addf %279, %280 : vector<2x64xf32>
    %282 = math.tanh %281 : vector<2x64xf32>
    %283 = arith.mulf %278, %282 : vector<2x64xf32>
    %284 = vector.extract_strided_slice %283 {offsets = [0, 0], sizes = [2, 32], strides = [1, 1]} : vector<2x64xf32> to vector<2x32xf32>
    %c12_94 = arith.constant 12 : index
    %c0_95 = arith.constant 0 : index
    %285 = vector.load %arg13[%c12_94, %c0_95] : memref<32x64xf32, #tpu.memory_space<vmem>>, vector<2x32xf32>
    tpu.vector_store %arg13[%c12_94, %c0_95], %284 {strides = array<i32>} : memref<32x64xf32, #tpu.memory_space<vmem>>, vector<2x32xf32>,
    %286 = vector.extract_strided_slice %283 {offsets = [0, 32], sizes = [2, 32], strides = [1, 1]} : vector<2x64xf32> to vector<2x32xf32>
    %c18 = arith.constant 18 : index
    %c32_96 = arith.constant 32 : index
    %287 = vector.load %arg13[%c18, %c32_96] : memref<32x64xf32, #tpu.memory_space<vmem>>, vector<2x32xf32>
    tpu.vector_store %arg13[%c18, %c32_96], %286 {strides = array<i32>} : memref<32x64xf32, #tpu.memory_space<vmem>>, vector<2x32xf32>,
    %c7_97 = arith.constant 7 : index
    %c0_98 = arith.constant 0 : index
    %c0_99 = arith.constant 0 : index
    %288 = vector.load %arg12[%c7_97, %c0_98, %c0_99] : memref<16x2x256xf32, #tpu.memory_space<vmem>>, vector<1x2x256xf32>
    %289 = vector.shape_cast %288 : vector<1x2x256xf32> to vector<2x256xf32>
    %290 = arith.truncf %283 : vector<2x64xf32> to vector<2x64xbf16>
    %cst_100 = arith.constant dense<0.000000e+00> : vector<2x256xf32>
    %291 = tpu.matmul %290, %42, %cst_100 {dimension_numbers = #tpu.dot_dimension_numbers<[1], [0], [0], [1], [0, 0, 1, 1], [], []>} : vector<2x64xbf16>, vector<64x256xbf16>, vector<2x256xf32> -> vector<2x256xf32>
    %292 = arith.addf %289, %291 : vector<2x256xf32>
    %293 = math.tanh %292 : vector<2x256xf32>
    %294 = arith.mulf %293, %33 : vector<2x256xf32>
    %295 = arith.addf %294, %36 : vector<2x256xf32>
    %296 = vector.extract_strided_slice %295 {offsets = [0, 0], sizes = [2, 64], strides = [1, 1]} : vector<2x256xf32> to vector<2x64xf32>
    %297 = vector.extract_strided_slice %295 {offsets = [0, 64], sizes = [2, 64], strides = [1, 1]} : vector<2x256xf32> to vector<2x64xf32>
    %298 = vector.extract_strided_slice %295 {offsets = [0, 128], sizes = [2, 64], strides = [1, 1]} : vector<2x256xf32> to vector<2x64xf32>
    %299 = vector.extract_strided_slice %295 {offsets = [0, 192], sizes = [2, 64], strides = [1, 1]} : vector<2x256xf32> to vector<2x64xf32>
    %300 = arith.mulf %297, %281 : vector<2x64xf32>
    %301 = arith.mulf %296, %298 : vector<2x64xf32>
    %302 = arith.addf %300, %301 : vector<2x64xf32>
    %303 = math.tanh %302 : vector<2x64xf32>
    %304 = arith.mulf %299, %303 : vector<2x64xf32>
    %305 = vector.extract_strided_slice %304 {offsets = [0, 0], sizes = [2, 32], strides = [1, 1]} : vector<2x64xf32> to vector<2x32xf32>
    %c14_101 = arith.constant 14 : index
    %c0_102 = arith.constant 0 : index
    %306 = vector.load %arg13[%c14_101, %c0_102] : memref<32x64xf32, #tpu.memory_space<vmem>>, vector<2x32xf32>
    tpu.vector_store %arg13[%c14_101, %c0_102], %305 {strides = array<i32>} : memref<32x64xf32, #tpu.memory_space<vmem>>, vector<2x32xf32>,
    %307 = vector.extract_strided_slice %304 {offsets = [0, 32], sizes = [2, 32], strides = [1, 1]} : vector<2x64xf32> to vector<2x32xf32>
    %c16 = arith.constant 16 : index
    %c32_103 = arith.constant 32 : index
    %308 = vector.load %arg13[%c16, %c32_103] : memref<32x64xf32, #tpu.memory_space<vmem>>, vector<2x32xf32>
    tpu.vector_store %arg13[%c16, %c32_103], %307 {strides = array<i32>} : memref<32x64xf32, #tpu.memory_space<vmem>>, vector<2x32xf32>,
    %c8_104 = arith.constant 8 : index
    %c0_105 = arith.constant 0 : index
    %c0_106 = arith.constant 0 : index
    %309 = vector.load %arg12[%c8_104, %c0_105, %c0_106] : memref<16x2x256xf32, #tpu.memory_space<vmem>>, vector<1x2x256xf32>
    %310 = vector.shape_cast %309 : vector<1x2x256xf32> to vector<2x256xf32>
    %311 = arith.truncf %304 : vector<2x64xf32> to vector<2x64xbf16>
    %cst_107 = arith.constant dense<0.000000e+00> : vector<2x256xf32>
    %312 = tpu.matmul %311, %42, %cst_107 {dimension_numbers = #tpu.dot_dimension_numbers<[1], [0], [0], [1], [0, 0, 1, 1], [], []>} : vector<2x64xbf16>, vector<64x256xbf16>, vector<2x256xf32> -> vector<2x256xf32>
    %313 = arith.addf %310, %312 : vector<2x256xf32>
    %314 = math.tanh %313 : vector<2x256xf32>
    %315 = arith.mulf %314, %33 : vector<2x256xf32>
    %316 = arith.addf %315, %36 : vector<2x256xf32>
    %317 = vector.extract_strided_slice %316 {offsets = [0, 0], sizes = [2, 64], strides = [1, 1]} : vector<2x256xf32> to vector<2x64xf32>
    %318 = vector.extract_strided_slice %316 {offsets = [0, 64], sizes = [2, 64], strides = [1, 1]} : vector<2x256xf32> to vector<2x64xf32>
    %319 = vector.extract_strided_slice %316 {offsets = [0, 128], sizes = [2, 64], strides = [1, 1]} : vector<2x256xf32> to vector<2x64xf32>
    %320 = vector.extract_strided_slice %316 {offsets = [0, 192], sizes = [2, 64], strides = [1, 1]} : vector<2x256xf32> to vector<2x64xf32>
    %321 = arith.mulf %318, %302 : vector<2x64xf32>
    %322 = arith.mulf %317, %319 : vector<2x64xf32>
    %323 = arith.addf %321, %322 : vector<2x64xf32>
    %324 = math.tanh %323 : vector<2x64xf32>
    %325 = arith.mulf %320, %324 : vector<2x64xf32>
    %326 = vector.extract_strided_slice %325 {offsets = [0, 0], sizes = [2, 32], strides = [1, 1]} : vector<2x64xf32> to vector<2x32xf32>
    %c16_108 = arith.constant 16 : index
    %c0_109 = arith.constant 0 : index
    %327 = vector.load %arg13[%c16_108, %c0_109] : memref<32x64xf32, #tpu.memory_space<vmem>>, vector<2x32xf32>
    tpu.vector_store %arg13[%c16_108, %c0_109], %326 {strides = array<i32>} : memref<32x64xf32, #tpu.memory_space<vmem>>, vector<2x32xf32>,
    %328 = vector.extract_strided_slice %325 {offsets = [0, 32], sizes = [2, 32], strides = [1, 1]} : vector<2x64xf32> to vector<2x32xf32>
    %c14_110 = arith.constant 14 : index
    %c32_111 = arith.constant 32 : index
    %329 = vector.load %arg13[%c14_110, %c32_111] : memref<32x64xf32, #tpu.memory_space<vmem>>, vector<2x32xf32>
    tpu.vector_store %arg13[%c14_110, %c32_111], %328 {strides = array<i32>} : memref<32x64xf32, #tpu.memory_space<vmem>>, vector<2x32xf32>,
    %c9_112 = arith.constant 9 : index
    %c0_113 = arith.constant 0 : index
    %c0_114 = arith.constant 0 : index
    %330 = vector.load %arg12[%c9_112, %c0_113, %c0_114] : memref<16x2x256xf32, #tpu.memory_space<vmem>>, vector<1x2x256xf32>
    %331 = vector.shape_cast %330 : vector<1x2x256xf32> to vector<2x256xf32>
    %332 = arith.truncf %325 : vector<2x64xf32> to vector<2x64xbf16>
    %cst_115 = arith.constant dense<0.000000e+00> : vector<2x256xf32>
    %333 = tpu.matmul %332, %42, %cst_115 {dimension_numbers = #tpu.dot_dimension_numbers<[1], [0], [0], [1], [0, 0, 1, 1], [], []>} : vector<2x64xbf16>, vector<64x256xbf16>, vector<2x256xf32> -> vector<2x256xf32>
    %334 = arith.addf %331, %333 : vector<2x256xf32>
    %335 = math.tanh %334 : vector<2x256xf32>
    %336 = arith.mulf %335, %33 : vector<2x256xf32>
    %337 = arith.addf %336, %36 : vector<2x256xf32>
    %338 = vector.extract_strided_slice %337 {offsets = [0, 0], sizes = [2, 64], strides = [1, 1]} : vector<2x256xf32> to vector<2x64xf32>
    %339 = vector.extract_strided_slice %337 {offsets = [0, 64], sizes = [2, 64], strides = [1, 1]} : vector<2x256xf32> to vector<2x64xf32>
    %340 = vector.extract_strided_slice %337 {offsets = [0, 128], sizes = [2, 64], strides = [1, 1]} : vector<2x256xf32> to vector<2x64xf32>
    %341 = vector.extract_strided_slice %337 {offsets = [0, 192], sizes = [2, 64], strides = [1, 1]} : vector<2x256xf32> to vector<2x64xf32>
    %342 = arith.mulf %339, %323 : vector<2x64xf32>
    %343 = arith.mulf %338, %340 : vector<2x64xf32>
    %344 = arith.addf %342, %343 : vector<2x64xf32>
    %345 = math.tanh %344 : vector<2x64xf32>
    %346 = arith.mulf %341, %345 : vector<2x64xf32>
    %347 = vector.extract_strided_slice %346 {offsets = [0, 0], sizes = [2, 32], strides = [1, 1]} : vector<2x64xf32> to vector<2x32xf32>
    %c18_116 = arith.constant 18 : index
    %c0_117 = arith.constant 0 : index
    %348 = vector.load %arg13[%c18_116, %c0_117] : memref<32x64xf32, #tpu.memory_space<vmem>>, vector<2x32xf32>
    tpu.vector_store %arg13[%c18_116, %c0_117], %347 {strides = array<i32>} : memref<32x64xf32, #tpu.memory_space<vmem>>, vector<2x32xf32>,
    %349 = vector.extract_strided_slice %346 {offsets = [0, 32], sizes = [2, 32], strides = [1, 1]} : vector<2x64xf32> to vector<2x32xf32>
    %c12_118 = arith.constant 12 : index
    %c32_119 = arith.constant 32 : index
    %350 = vector.load %arg13[%c12_118, %c32_119] : memref<32x64xf32, #tpu.memory_space<vmem>>, vector<2x32xf32>
    tpu.vector_store %arg13[%c12_118, %c32_119], %349 {strides = array<i32>} : memref<32x64xf32, #tpu.memory_space<vmem>>, vector<2x32xf32>,
    %c10_120 = arith.constant 10 : index
    %c0_121 = arith.constant 0 : index
    %c0_122 = arith.constant 0 : index
    %351 = vector.load %arg12[%c10_120, %c0_121, %c0_122] : memref<16x2x256xf32, #tpu.memory_space<vmem>>, vector<1x2x256xf32>
    %352 = vector.shape_cast %351 : vector<1x2x256xf32> to vector<2x256xf32>
    %353 = arith.truncf %346 : vector<2x64xf32> to vector<2x64xbf16>
    %cst_123 = arith.constant dense<0.000000e+00> : vector<2x256xf32>
    %354 = tpu.matmul %353, %42, %cst_123 {dimension_numbers = #tpu.dot_dimension_numbers<[1], [0], [0], [1], [0, 0, 1, 1], [], []>} : vector<2x64xbf16>, vector<64x256xbf16>, vector<2x256xf32> -> vector<2x256xf32>
    %355 = arith.addf %352, %354 : vector<2x256xf32>
    %356 = math.tanh %355 : vector<2x256xf32>
    %357 = arith.mulf %356, %33 : vector<2x256xf32>
    %358 = arith.addf %357, %36 : vector<2x256xf32>
    %359 = vector.extract_strided_slice %358 {offsets = [0, 0], sizes = [2, 64], strides = [1, 1]} : vector<2x256xf32> to vector<2x64xf32>
    %360 = vector.extract_strided_slice %358 {offsets = [0, 64], sizes = [2, 64], strides = [1, 1]} : vector<2x256xf32> to vector<2x64xf32>
    %361 = vector.extract_strided_slice %358 {offsets = [0, 128], sizes = [2, 64], strides = [1, 1]} : vector<2x256xf32> to vector<2x64xf32>
    %362 = vector.extract_strided_slice %358 {offsets = [0, 192], sizes = [2, 64], strides = [1, 1]} : vector<2x256xf32> to vector<2x64xf32>
    %363 = arith.mulf %360, %344 : vector<2x64xf32>
    %364 = arith.mulf %359, %361 : vector<2x64xf32>
    %365 = arith.addf %363, %364 : vector<2x64xf32>
    %366 = math.tanh %365 : vector<2x64xf32>
    %367 = arith.mulf %362, %366 : vector<2x64xf32>
    %368 = vector.extract_strided_slice %367 {offsets = [0, 0], sizes = [2, 32], strides = [1, 1]} : vector<2x64xf32> to vector<2x32xf32>
    %c20_124 = arith.constant 20 : index
    %c0_125 = arith.constant 0 : index
    %369 = vector.load %arg13[%c20_124, %c0_125] : memref<32x64xf32, #tpu.memory_space<vmem>>, vector<2x32xf32>
    tpu.vector_store %arg13[%c20_124, %c0_125], %368 {strides = array<i32>} : memref<32x64xf32, #tpu.memory_space<vmem>>, vector<2x32xf32>,
    %370 = vector.extract_strided_slice %367 {offsets = [0, 32], sizes = [2, 32], strides = [1, 1]} : vector<2x64xf32> to vector<2x32xf32>
    %c10_126 = arith.constant 10 : index
    %c32_127 = arith.constant 32 : index
    %371 = vector.load %arg13[%c10_126, %c32_127] : memref<32x64xf32, #tpu.memory_space<vmem>>, vector<2x32xf32>
    tpu.vector_store %arg13[%c10_126, %c32_127], %370 {strides = array<i32>} : memref<32x64xf32, #tpu.memory_space<vmem>>, vector<2x32xf32>,
    %c11_128 = arith.constant 11 : index
    %c0_129 = arith.constant 0 : index
    %c0_130 = arith.constant 0 : index
    %372 = vector.load %arg12[%c11_128, %c0_129, %c0_130] : memref<16x2x256xf32, #tpu.memory_space<vmem>>, vector<1x2x256xf32>
    %373 = vector.shape_cast %372 : vector<1x2x256xf32> to vector<2x256xf32>
    %374 = arith.truncf %367 : vector<2x64xf32> to vector<2x64xbf16>
    %cst_131 = arith.constant dense<0.000000e+00> : vector<2x256xf32>
    %375 = tpu.matmul %374, %42, %cst_131 {dimension_numbers = #tpu.dot_dimension_numbers<[1], [0], [0], [1], [0, 0, 1, 1], [], []>} : vector<2x64xbf16>, vector<64x256xbf16>, vector<2x256xf32> -> vector<2x256xf32>
    %376 = arith.addf %373, %375 : vector<2x256xf32>
    %377 = math.tanh %376 : vector<2x256xf32>
    %378 = arith.mulf %377, %33 : vector<2x256xf32>
    %379 = arith.addf %378, %36 : vector<2x256xf32>
    %380 = vector.extract_strided_slice %379 {offsets = [0, 0], sizes = [2, 64], strides = [1, 1]} : vector<2x256xf32> to vector<2x64xf32>
    %381 = vector.extract_strided_slice %379 {offsets = [0, 64], sizes = [2, 64], strides = [1, 1]} : vector<2x256xf32> to vector<2x64xf32>
    %382 = vector.extract_strided_slice %379 {offsets = [0, 128], sizes = [2, 64], strides = [1, 1]} : vector<2x256xf32> to vector<2x64xf32>
    %383 = vector.extract_strided_slice %379 {offsets = [0, 192], sizes = [2, 64], strides = [1, 1]} : vector<2x256xf32> to vector<2x64xf32>
    %384 = arith.mulf %381, %365 : vector<2x64xf32>
    %385 = arith.mulf %380, %382 : vector<2x64xf32>
    %386 = arith.addf %384, %385 : vector<2x64xf32>
    %387 = math.tanh %386 : vector<2x64xf32>
    %388 = arith.mulf %383, %387 : vector<2x64xf32>
    %389 = vector.extract_strided_slice %388 {offsets = [0, 0], sizes = [2, 32], strides = [1, 1]} : vector<2x64xf32> to vector<2x32xf32>
    %c22_132 = arith.constant 22 : index
    %c0_133 = arith.constant 0 : index
    %390 = vector.load %arg13[%c22_132, %c0_133] : memref<32x64xf32, #tpu.memory_space<vmem>>, vector<2x32xf32>
    tpu.vector_store %arg13[%c22_132, %c0_133], %389 {strides = array<i32>} : memref<32x64xf32, #tpu.memory_space<vmem>>, vector<2x32xf32>,
    %391 = vector.extract_strided_slice %388 {offsets = [0, 32], sizes = [2, 32], strides = [1, 1]} : vector<2x64xf32> to vector<2x32xf32>
    %c8_134 = arith.constant 8 : index
    %c32_135 = arith.constant 32 : index
    %392 = vector.load %arg13[%c8_134, %c32_135] : memref<32x64xf32, #tpu.memory_space<vmem>>, vector<2x32xf32>
    tpu.vector_store %arg13[%c8_134, %c32_135], %391 {strides = array<i32>} : memref<32x64xf32, #tpu.memory_space<vmem>>, vector<2x32xf32>,
    %c12_136 = arith.constant 12 : index
    %c0_137 = arith.constant 0 : index
    %c0_138 = arith.constant 0 : index
    %393 = vector.load %arg12[%c12_136, %c0_137, %c0_138] : memref<16x2x256xf32, #tpu.memory_space<vmem>>, vector<1x2x256xf32>
    %394 = vector.shape_cast %393 : vector<1x2x256xf32> to vector<2x256xf32>
    %395 = arith.truncf %388 : vector<2x64xf32> to vector<2x64xbf16>
    %cst_139 = arith.constant dense<0.000000e+00> : vector<2x256xf32>
    %396 = tpu.matmul %395, %42, %cst_139 {dimension_numbers = #tpu.dot_dimension_numbers<[1], [0], [0], [1], [0, 0, 1, 1], [], []>} : vector<2x64xbf16>, vector<64x256xbf16>, vector<2x256xf32> -> vector<2x256xf32>
    %397 = arith.addf %394, %396 : vector<2x256xf32>
    %398 = math.tanh %397 : vector<2x256xf32>
    %399 = arith.mulf %398, %33 : vector<2x256xf32>
    %400 = arith.addf %399, %36 : vector<2x256xf32>
    %401 = vector.extract_strided_slice %400 {offsets = [0, 0], sizes = [2, 64], strides = [1, 1]} : vector<2x256xf32> to vector<2x64xf32>
    %402 = vector.extract_strided_slice %400 {offsets = [0, 64], sizes = [2, 64], strides = [1, 1]} : vector<2x256xf32> to vector<2x64xf32>
    %403 = vector.extract_strided_slice %400 {offsets = [0, 128], sizes = [2, 64], strides = [1, 1]} : vector<2x256xf32> to vector<2x64xf32>
    %404 = vector.extract_strided_slice %400 {offsets = [0, 192], sizes = [2, 64], strides = [1, 1]} : vector<2x256xf32> to vector<2x64xf32>
    %405 = arith.mulf %402, %386 : vector<2x64xf32>
    %406 = arith.mulf %401, %403 : vector<2x64xf32>
    %407 = arith.addf %405, %406 : vector<2x64xf32>
    %408 = math.tanh %407 : vector<2x64xf32>
    %409 = arith.mulf %404, %408 : vector<2x64xf32>
    %410 = vector.extract_strided_slice %409 {offsets = [0, 0], sizes = [2, 32], strides = [1, 1]} : vector<2x64xf32> to vector<2x32xf32>
    %c24_140 = arith.constant 24 : index
    %c0_141 = arith.constant 0 : index
    %411 = vector.load %arg13[%c24_140, %c0_141] : memref<32x64xf32, #tpu.memory_space<vmem>>, vector<2x32xf32>
    tpu.vector_store %arg13[%c24_140, %c0_141], %410 {strides = array<i32>} : memref<32x64xf32, #tpu.memory_space<vmem>>, vector<2x32xf32>,
    %412 = vector.extract_strided_slice %409 {offsets = [0, 32], sizes = [2, 32], strides = [1, 1]} : vector<2x64xf32> to vector<2x32xf32>
    %c6_142 = arith.constant 6 : index
    %c32_143 = arith.constant 32 : index
    %413 = vector.load %arg13[%c6_142, %c32_143] : memref<32x64xf32, #tpu.memory_space<vmem>>, vector<2x32xf32>
    tpu.vector_store %arg13[%c6_142, %c32_143], %412 {strides = array<i32>} : memref<32x64xf32, #tpu.memory_space<vmem>>, vector<2x32xf32>,
    %c13_144 = arith.constant 13 : index
    %c0_145 = arith.constant 0 : index
    %c0_146 = arith.constant 0 : index
    %414 = vector.load %arg12[%c13_144, %c0_145, %c0_146] : memref<16x2x256xf32, #tpu.memory_space<vmem>>, vector<1x2x256xf32>
    %415 = vector.shape_cast %414 : vector<1x2x256xf32> to vector<2x256xf32>
    %416 = arith.truncf %409 : vector<2x64xf32> to vector<2x64xbf16>
    %cst_147 = arith.constant dense<0.000000e+00> : vector<2x256xf32>
    %417 = tpu.matmul %416, %42, %cst_147 {dimension_numbers = #tpu.dot_dimension_numbers<[1], [0], [0], [1], [0, 0, 1, 1], [], []>} : vector<2x64xbf16>, vector<64x256xbf16>, vector<2x256xf32> -> vector<2x256xf32>
    %418 = arith.addf %415, %417 : vector<2x256xf32>
    %419 = math.tanh %418 : vector<2x256xf32>
    %420 = arith.mulf %419, %33 : vector<2x256xf32>
    %421 = arith.addf %420, %36 : vector<2x256xf32>
    %422 = vector.extract_strided_slice %421 {offsets = [0, 0], sizes = [2, 64], strides = [1, 1]} : vector<2x256xf32> to vector<2x64xf32>
    %423 = vector.extract_strided_slice %421 {offsets = [0, 64], sizes = [2, 64], strides = [1, 1]} : vector<2x256xf32> to vector<2x64xf32>
    %424 = vector.extract_strided_slice %421 {offsets = [0, 128], sizes = [2, 64], strides = [1, 1]} : vector<2x256xf32> to vector<2x64xf32>
    %425 = vector.extract_strided_slice %421 {offsets = [0, 192], sizes = [2, 64], strides = [1, 1]} : vector<2x256xf32> to vector<2x64xf32>
    %426 = arith.mulf %423, %407 : vector<2x64xf32>
    %427 = arith.mulf %422, %424 : vector<2x64xf32>
    %428 = arith.addf %426, %427 : vector<2x64xf32>
    %429 = math.tanh %428 : vector<2x64xf32>
    %430 = arith.mulf %425, %429 : vector<2x64xf32>
    %431 = vector.extract_strided_slice %430 {offsets = [0, 0], sizes = [2, 32], strides = [1, 1]} : vector<2x64xf32> to vector<2x32xf32>
    %c26_148 = arith.constant 26 : index
    %c0_149 = arith.constant 0 : index
    %432 = vector.load %arg13[%c26_148, %c0_149] : memref<32x64xf32, #tpu.memory_space<vmem>>, vector<2x32xf32>
    tpu.vector_store %arg13[%c26_148, %c0_149], %431 {strides = array<i32>} : memref<32x64xf32, #tpu.memory_space<vmem>>, vector<2x32xf32>,
    %433 = vector.extract_strided_slice %430 {offsets = [0, 32], sizes = [2, 32], strides = [1, 1]} : vector<2x64xf32> to vector<2x32xf32>
    %c4_150 = arith.constant 4 : index
    %c32_151 = arith.constant 32 : index
    %434 = vector.load %arg13[%c4_150, %c32_151] : memref<32x64xf32, #tpu.memory_space<vmem>>, vector<2x32xf32>
    tpu.vector_store %arg13[%c4_150, %c32_151], %433 {strides = array<i32>} : memref<32x64xf32, #tpu.memory_space<vmem>>, vector<2x32xf32>,
    %c14_152 = arith.constant 14 : index
    %c0_153 = arith.constant 0 : index
    %c0_154 = arith.constant 0 : index
    %435 = vector.load %arg12[%c14_152, %c0_153, %c0_154] : memref<16x2x256xf32, #tpu.memory_space<vmem>>, vector<1x2x256xf32>
    %436 = vector.shape_cast %435 : vector<1x2x256xf32> to vector<2x256xf32>
    %437 = arith.truncf %430 : vector<2x64xf32> to vector<2x64xbf16>
    %cst_155 = arith.constant dense<0.000000e+00> : vector<2x256xf32>
    %438 = tpu.matmul %437, %42, %cst_155 {dimension_numbers = #tpu.dot_dimension_numbers<[1], [0], [0], [1], [0, 0, 1, 1], [], []>} : vector<2x64xbf16>, vector<64x256xbf16>, vector<2x256xf32> -> vector<2x256xf32>
    %439 = arith.addf %436, %438 : vector<2x256xf32>
    %440 = math.tanh %439 : vector<2x256xf32>
    %441 = arith.mulf %440, %33 : vector<2x256xf32>
    %442 = arith.addf %441, %36 : vector<2x256xf32>
    %443 = vector.extract_strided_slice %442 {offsets = [0, 0], sizes = [2, 64], strides = [1, 1]} : vector<2x256xf32> to vector<2x64xf32>
    %444 = vector.extract_strided_slice %442 {offsets = [0, 64], sizes = [2, 64], strides = [1, 1]} : vector<2x256xf32> to vector<2x64xf32>
    %445 = vector.extract_strided_slice %442 {offsets = [0, 128], sizes = [2, 64], strides = [1, 1]} : vector<2x256xf32> to vector<2x64xf32>
    %446 = vector.extract_strided_slice %442 {offsets = [0, 192], sizes = [2, 64], strides = [1, 1]} : vector<2x256xf32> to vector<2x64xf32>
    %447 = arith.mulf %444, %428 : vector<2x64xf32>
    %448 = arith.mulf %443, %445 : vector<2x64xf32>
    %449 = arith.addf %447, %448 : vector<2x64xf32>
    %450 = math.tanh %449 : vector<2x64xf32>
    %451 = arith.mulf %446, %450 : vector<2x64xf32>
    %452 = vector.extract_strided_slice %451 {offsets = [0, 0], sizes = [2, 32], strides = [1, 1]} : vector<2x64xf32> to vector<2x32xf32>
    %c28_156 = arith.constant 28 : index
    %c0_157 = arith.constant 0 : index
    %453 = vector.load %arg13[%c28_156, %c0_157] : memref<32x64xf32, #tpu.memory_space<vmem>>, vector<2x32xf32>
    tpu.vector_store %arg13[%c28_156, %c0_157], %452 {strides = array<i32>} : memref<32x64xf32, #tpu.memory_space<vmem>>, vector<2x32xf32>,
    %454 = vector.extract_strided_slice %451 {offsets = [0, 32], sizes = [2, 32], strides = [1, 1]} : vector<2x64xf32> to vector<2x32xf32>
    %c2_158 = arith.constant 2 : index
    %c32_159 = arith.constant 32 : index
    %455 = vector.load %arg13[%c2_158, %c32_159] : memref<32x64xf32, #tpu.memory_space<vmem>>, vector<2x32xf32>
    tpu.vector_store %arg13[%c2_158, %c32_159], %454 {strides = array<i32>} : memref<32x64xf32, #tpu.memory_space<vmem>>, vector<2x32xf32>,
    %c15_160 = arith.constant 15 : index
    %c0_161 = arith.constant 0 : index
    %c0_162 = arith.constant 0 : index
    %456 = vector.load %arg12[%c15_160, %c0_161, %c0_162] : memref<16x2x256xf32, #tpu.memory_space<vmem>>, vector<1x2x256xf32>
    %457 = vector.shape_cast %456 : vector<1x2x256xf32> to vector<2x256xf32>
    %458 = arith.truncf %451 : vector<2x64xf32> to vector<2x64xbf16>
    %cst_163 = arith.constant dense<0.000000e+00> : vector<2x256xf32>
    %459 = tpu.matmul %458, %42, %cst_163 {dimension_numbers = #tpu.dot_dimension_numbers<[1], [0], [0], [1], [0, 0, 1, 1], [], []>} : vector<2x64xbf16>, vector<64x256xbf16>, vector<2x256xf32> -> vector<2x256xf32>
    %460 = arith.addf %457, %459 : vector<2x256xf32>
    %461 = math.tanh %460 : vector<2x256xf32>
    %462 = arith.mulf %461, %33 : vector<2x256xf32>
    %463 = arith.addf %462, %36 : vector<2x256xf32>
    %464 = vector.extract_strided_slice %463 {offsets = [0, 0], sizes = [2, 64], strides = [1, 1]} : vector<2x256xf32> to vector<2x64xf32>
    %465 = vector.extract_strided_slice %463 {offsets = [0, 64], sizes = [2, 64], strides = [1, 1]} : vector<2x256xf32> to vector<2x64xf32>
    %466 = vector.extract_strided_slice %463 {offsets = [0, 128], sizes = [2, 64], strides = [1, 1]} : vector<2x256xf32> to vector<2x64xf32>
    %467 = vector.extract_strided_slice %463 {offsets = [0, 192], sizes = [2, 64], strides = [1, 1]} : vector<2x256xf32> to vector<2x64xf32>
    %468 = arith.mulf %465, %449 : vector<2x64xf32>
    %469 = arith.mulf %464, %466 : vector<2x64xf32>
    %470 = arith.addf %468, %469 : vector<2x64xf32>
    %471 = math.tanh %470 : vector<2x64xf32>
    %472 = arith.mulf %467, %471 : vector<2x64xf32>
    %473 = vector.extract_strided_slice %472 {offsets = [0, 0], sizes = [2, 32], strides = [1, 1]} : vector<2x64xf32> to vector<2x32xf32>
    %c30_164 = arith.constant 30 : index
    %c0_165 = arith.constant 0 : index
    %474 = vector.load %arg13[%c30_164, %c0_165] : memref<32x64xf32, #tpu.memory_space<vmem>>, vector<2x32xf32>
    tpu.vector_store %arg13[%c30_164, %c0_165], %473 {strides = array<i32>} : memref<32x64xf32, #tpu.memory_space<vmem>>, vector<2x32xf32>,
    %475 = vector.extract_strided_slice %472 {offsets = [0, 32], sizes = [2, 32], strides = [1, 1]} : vector<2x64xf32> to vector<2x32xf32>
    %c0_166 = arith.constant 0 : index
    %c32_167 = arith.constant 32 : index
    %476 = vector.load %arg13[%c0_166, %c32_167] : memref<32x64xf32, #tpu.memory_space<vmem>>, vector<2x32xf32>
    tpu.vector_store %arg13[%c0_166, %c32_167], %475 {strides = array<i32>} : memref<32x64xf32, #tpu.memory_space<vmem>>, vector<2x32xf32>,
    %c0_168 = arith.constant 0 : index
    %c0_169 = arith.constant 0 : index
    %477 = vector.load %arg13[%c0_168, %c0_169] : memref<32x64xf32, #tpu.memory_space<vmem>>, vector<32x64xf32>
    %478 = arith.truncf %477 : vector<32x64xf32> to vector<32x64xbf16>
    %c0_170 = arith.constant 0 : index
    %c0_171 = arith.constant 0 : index
    %479 = vector.load %arg4[%c0_170, %c0_171] : memref<64x256xbf16, #tpu.memory_space<vmem>>, vector<64x256xbf16>
    %cst_172 = arith.constant dense<0.000000e+00> : vector<32x256xf32>
    %480 = tpu.matmul %478, %479, %cst_172 {dimension_numbers = #tpu.dot_dimension_numbers<[1], [0], [0], [1], [0, 0, 1, 1], [], []>} : vector<32x64xbf16>, vector<64x256xbf16>, vector<32x256xf32> -> vector<32x256xf32>
    %c0_173 = arith.constant 0 : index
    %c0_174 = arith.constant 0 : index
    %481 = vector.load %arg6[%c0_173, %c0_174] : memref<1x256xf32, #tpu.memory_space<vmem>>, vector<1x256xf32>
    %482 = vector.broadcast %481 : vector<1x256xf32> to vector<32x256xf32>
    %483 = arith.addf %480, %482 : vector<32x256xf32>
    %c0_175 = arith.constant 0 : index
    %c0_176 = arith.constant 0 : index
    %484 = vector.load %arg5[%c0_175, %c0_176] : memref<64x256xbf16, #tpu.memory_space<vmem>>, vector<64x256xbf16>
    %485 = vector.extract_strided_slice %483 {offsets = [0, 0], sizes = [2, 256], strides = [1, 1]} : vector<32x256xf32> to vector<2x256xf32>
    %486 = vector.extract_strided_slice %483 {offsets = [30, 0], sizes = [2, 256], strides = [1, 1]} : vector<32x256xf32> to vector<2x256xf32>
    %487 = arith.select %25, %485, %486 : vector<2x256xi1>, vector<2x256xf32>
    %c0_177 = arith.constant 0 : index
    %c0_178 = arith.constant 0 : index
    %c0_179 = arith.constant 0 : index
    %488 = vector.load %arg12[%c0_177, %c0_178, %c0_179] : memref<16x2x256xf32, #tpu.memory_space<vmem>>, vector<1x2x256xf32>
    %489 = vector.shape_cast %488 : vector<1x2x256xf32> to vector<2x256xf32>
    %490 = vector.shape_cast %487 : vector<2x256xf32> to vector<1x2x256xf32>
    tpu.vector_store %arg12[%c0_177, %c0_178, %c0_179], %490 {strides = array<i32>} : memref<16x2x256xf32, #tpu.memory_space<vmem>>, vector<1x2x256xf32>,
    %491 = vector.extract_strided_slice %483 {offsets = [2, 0], sizes = [2, 256], strides = [1, 1]} : vector<32x256xf32> to vector<2x256xf32>
    %492 = vector.extract_strided_slice %483 {offsets = [28, 0], sizes = [2, 256], strides = [1, 1]} : vector<32x256xf32> to vector<2x256xf32>
    %493 = arith.select %25, %491, %492 : vector<2x256xi1>, vector<2x256xf32>
    %c1_180 = arith.constant 1 : index
    %c0_181 = arith.constant 0 : index
    %c0_182 = arith.constant 0 : index
    %494 = vector.load %arg12[%c1_180, %c0_181, %c0_182] : memref<16x2x256xf32, #tpu.memory_space<vmem>>, vector<1x2x256xf32>
    %495 = vector.shape_cast %494 : vector<1x2x256xf32> to vector<2x256xf32>
    %496 = vector.shape_cast %493 : vector<2x256xf32> to vector<1x2x256xf32>
    tpu.vector_store %arg12[%c1_180, %c0_181, %c0_182], %496 {strides = array<i32>} : memref<16x2x256xf32, #tpu.memory_space<vmem>>, vector<1x2x256xf32>,
    %497 = vector.extract_strided_slice %483 {offsets = [4, 0], sizes = [2, 256], strides = [1, 1]} : vector<32x256xf32> to vector<2x256xf32>
    %498 = vector.extract_strided_slice %483 {offsets = [26, 0], sizes = [2, 256], strides = [1, 1]} : vector<32x256xf32> to vector<2x256xf32>
    %499 = arith.select %25, %497, %498 : vector<2x256xi1>, vector<2x256xf32>
    %c2_183 = arith.constant 2 : index
    %c0_184 = arith.constant 0 : index
    %c0_185 = arith.constant 0 : index
    %500 = vector.load %arg12[%c2_183, %c0_184, %c0_185] : memref<16x2x256xf32, #tpu.memory_space<vmem>>, vector<1x2x256xf32>
    %501 = vector.shape_cast %500 : vector<1x2x256xf32> to vector<2x256xf32>
    %502 = vector.shape_cast %499 : vector<2x256xf32> to vector<1x2x256xf32>
    tpu.vector_store %arg12[%c2_183, %c0_184, %c0_185], %502 {strides = array<i32>} : memref<16x2x256xf32, #tpu.memory_space<vmem>>, vector<1x2x256xf32>,
    %503 = vector.extract_strided_slice %483 {offsets = [6, 0], sizes = [2, 256], strides = [1, 1]} : vector<32x256xf32> to vector<2x256xf32>
    %504 = vector.extract_strided_slice %483 {offsets = [24, 0], sizes = [2, 256], strides = [1, 1]} : vector<32x256xf32> to vector<2x256xf32>
    %505 = arith.select %25, %503, %504 : vector<2x256xi1>, vector<2x256xf32>
    %c3_186 = arith.constant 3 : index
    %c0_187 = arith.constant 0 : index
    %c0_188 = arith.constant 0 : index
    %506 = vector.load %arg12[%c3_186, %c0_187, %c0_188] : memref<16x2x256xf32, #tpu.memory_space<vmem>>, vector<1x2x256xf32>
    %507 = vector.shape_cast %506 : vector<1x2x256xf32> to vector<2x256xf32>
    %508 = vector.shape_cast %505 : vector<2x256xf32> to vector<1x2x256xf32>
    tpu.vector_store %arg12[%c3_186, %c0_187, %c0_188], %508 {strides = array<i32>} : memref<16x2x256xf32, #tpu.memory_space<vmem>>, vector<1x2x256xf32>,
    %509 = vector.extract_strided_slice %483 {offsets = [8, 0], sizes = [2, 256], strides = [1, 1]} : vector<32x256xf32> to vector<2x256xf32>
    %510 = vector.extract_strided_slice %483 {offsets = [22, 0], sizes = [2, 256], strides = [1, 1]} : vector<32x256xf32> to vector<2x256xf32>
    %511 = arith.select %25, %509, %510 : vector<2x256xi1>, vector<2x256xf32>
    %c4_189 = arith.constant 4 : index
    %c0_190 = arith.constant 0 : index
    %c0_191 = arith.constant 0 : index
    %512 = vector.load %arg12[%c4_189, %c0_190, %c0_191] : memref<16x2x256xf32, #tpu.memory_space<vmem>>, vector<1x2x256xf32>
    %513 = vector.shape_cast %512 : vector<1x2x256xf32> to vector<2x256xf32>
    %514 = vector.shape_cast %511 : vector<2x256xf32> to vector<1x2x256xf32>
    tpu.vector_store %arg12[%c4_189, %c0_190, %c0_191], %514 {strides = array<i32>} : memref<16x2x256xf32, #tpu.memory_space<vmem>>, vector<1x2x256xf32>,
    %515 = vector.extract_strided_slice %483 {offsets = [10, 0], sizes = [2, 256], strides = [1, 1]} : vector<32x256xf32> to vector<2x256xf32>
    %516 = vector.extract_strided_slice %483 {offsets = [20, 0], sizes = [2, 256], strides = [1, 1]} : vector<32x256xf32> to vector<2x256xf32>
    %517 = arith.select %25, %515, %516 : vector<2x256xi1>, vector<2x256xf32>
    %c5_192 = arith.constant 5 : index
    %c0_193 = arith.constant 0 : index
    %c0_194 = arith.constant 0 : index
    %518 = vector.load %arg12[%c5_192, %c0_193, %c0_194] : memref<16x2x256xf32, #tpu.memory_space<vmem>>, vector<1x2x256xf32>
    %519 = vector.shape_cast %518 : vector<1x2x256xf32> to vector<2x256xf32>
    %520 = vector.shape_cast %517 : vector<2x256xf32> to vector<1x2x256xf32>
    tpu.vector_store %arg12[%c5_192, %c0_193, %c0_194], %520 {strides = array<i32>} : memref<16x2x256xf32, #tpu.memory_space<vmem>>, vector<1x2x256xf32>,
    %521 = vector.extract_strided_slice %483 {offsets = [12, 0], sizes = [2, 256], strides = [1, 1]} : vector<32x256xf32> to vector<2x256xf32>
    %522 = vector.extract_strided_slice %483 {offsets = [18, 0], sizes = [2, 256], strides = [1, 1]} : vector<32x256xf32> to vector<2x256xf32>
    %523 = arith.select %25, %521, %522 : vector<2x256xi1>, vector<2x256xf32>
    %c6_195 = arith.constant 6 : index
    %c0_196 = arith.constant 0 : index
    %c0_197 = arith.constant 0 : index
    %524 = vector.load %arg12[%c6_195, %c0_196, %c0_197] : memref<16x2x256xf32, #tpu.memory_space<vmem>>, vector<1x2x256xf32>
    %525 = vector.shape_cast %524 : vector<1x2x256xf32> to vector<2x256xf32>
    %526 = vector.shape_cast %523 : vector<2x256xf32> to vector<1x2x256xf32>
    tpu.vector_store %arg12[%c6_195, %c0_196, %c0_197], %526 {strides = array<i32>} : memref<16x2x256xf32, #tpu.memory_space<vmem>>, vector<1x2x256xf32>,
    %527 = vector.extract_strided_slice %483 {offsets = [14, 0], sizes = [2, 256], strides = [1, 1]} : vector<32x256xf32> to vector<2x256xf32>
    %528 = vector.extract_strided_slice %483 {offsets = [16, 0], sizes = [2, 256], strides = [1, 1]} : vector<32x256xf32> to vector<2x256xf32>
    %529 = arith.select %25, %527, %528 : vector<2x256xi1>, vector<2x256xf32>
    %c7_198 = arith.constant 7 : index
    %c0_199 = arith.constant 0 : index
    %c0_200 = arith.constant 0 : index
    %530 = vector.load %arg12[%c7_198, %c0_199, %c0_200] : memref<16x2x256xf32, #tpu.memory_space<vmem>>, vector<1x2x256xf32>
    %531 = vector.shape_cast %530 : vector<1x2x256xf32> to vector<2x256xf32>
    %532 = vector.shape_cast %529 : vector<2x256xf32> to vector<1x2x256xf32>
    tpu.vector_store %arg12[%c7_198, %c0_199, %c0_200], %532 {strides = array<i32>} : memref<16x2x256xf32, #tpu.memory_space<vmem>>, vector<1x2x256xf32>,
    %533 = vector.extract_strided_slice %483 {offsets = [16, 0], sizes = [2, 256], strides = [1, 1]} : vector<32x256xf32> to vector<2x256xf32>
    %534 = vector.extract_strided_slice %483 {offsets = [14, 0], sizes = [2, 256], strides = [1, 1]} : vector<32x256xf32> to vector<2x256xf32>
    %535 = arith.select %25, %533, %534 : vector<2x256xi1>, vector<2x256xf32>
    %c8_201 = arith.constant 8 : index
    %c0_202 = arith.constant 0 : index
    %c0_203 = arith.constant 0 : index
    %536 = vector.load %arg12[%c8_201, %c0_202, %c0_203] : memref<16x2x256xf32, #tpu.memory_space<vmem>>, vector<1x2x256xf32>
    %537 = vector.shape_cast %536 : vector<1x2x256xf32> to vector<2x256xf32>
    %538 = vector.shape_cast %535 : vector<2x256xf32> to vector<1x2x256xf32>
    tpu.vector_store %arg12[%c8_201, %c0_202, %c0_203], %538 {strides = array<i32>} : memref<16x2x256xf32, #tpu.memory_space<vmem>>, vector<1x2x256xf32>,
    %539 = vector.extract_strided_slice %483 {offsets = [18, 0], sizes = [2, 256], strides = [1, 1]} : vector<32x256xf32> to vector<2x256xf32>
    %540 = vector.extract_strided_slice %483 {offsets = [12, 0], sizes = [2, 256], strides = [1, 1]} : vector<32x256xf32> to vector<2x256xf32>
    %541 = arith.select %25, %539, %540 : vector<2x256xi1>, vector<2x256xf32>
    %c9_204 = arith.constant 9 : index
    %c0_205 = arith.constant 0 : index
    %c0_206 = arith.constant 0 : index
    %542 = vector.load %arg12[%c9_204, %c0_205, %c0_206] : memref<16x2x256xf32, #tpu.memory_space<vmem>>, vector<1x2x256xf32>
    %543 = vector.shape_cast %542 : vector<1x2x256xf32> to vector<2x256xf32>
    %544 = vector.shape_cast %541 : vector<2x256xf32> to vector<1x2x256xf32>
    tpu.vector_store %arg12[%c9_204, %c0_205, %c0_206], %544 {strides = array<i32>} : memref<16x2x256xf32, #tpu.memory_space<vmem>>, vector<1x2x256xf32>,
    %545 = vector.extract_strided_slice %483 {offsets = [20, 0], sizes = [2, 256], strides = [1, 1]} : vector<32x256xf32> to vector<2x256xf32>
    %546 = vector.extract_strided_slice %483 {offsets = [10, 0], sizes = [2, 256], strides = [1, 1]} : vector<32x256xf32> to vector<2x256xf32>
    %547 = arith.select %25, %545, %546 : vector<2x256xi1>, vector<2x256xf32>
    %c10_207 = arith.constant 10 : index
    %c0_208 = arith.constant 0 : index
    %c0_209 = arith.constant 0 : index
    %548 = vector.load %arg12[%c10_207, %c0_208, %c0_209] : memref<16x2x256xf32, #tpu.memory_space<vmem>>, vector<1x2x256xf32>
    %549 = vector.shape_cast %548 : vector<1x2x256xf32> to vector<2x256xf32>
    %550 = vector.shape_cast %547 : vector<2x256xf32> to vector<1x2x256xf32>
    tpu.vector_store %arg12[%c10_207, %c0_208, %c0_209], %550 {strides = array<i32>} : memref<16x2x256xf32, #tpu.memory_space<vmem>>, vector<1x2x256xf32>,
    %551 = vector.extract_strided_slice %483 {offsets = [22, 0], sizes = [2, 256], strides = [1, 1]} : vector<32x256xf32> to vector<2x256xf32>
    %552 = vector.extract_strided_slice %483 {offsets = [8, 0], sizes = [2, 256], strides = [1, 1]} : vector<32x256xf32> to vector<2x256xf32>
    %553 = arith.select %25, %551, %552 : vector<2x256xi1>, vector<2x256xf32>
    %c11_210 = arith.constant 11 : index
    %c0_211 = arith.constant 0 : index
    %c0_212 = arith.constant 0 : index
    %554 = vector.load %arg12[%c11_210, %c0_211, %c0_212] : memref<16x2x256xf32, #tpu.memory_space<vmem>>, vector<1x2x256xf32>
    %555 = vector.shape_cast %554 : vector<1x2x256xf32> to vector<2x256xf32>
    %556 = vector.shape_cast %553 : vector<2x256xf32> to vector<1x2x256xf32>
    tpu.vector_store %arg12[%c11_210, %c0_211, %c0_212], %556 {strides = array<i32>} : memref<16x2x256xf32, #tpu.memory_space<vmem>>, vector<1x2x256xf32>,
    %557 = vector.extract_strided_slice %483 {offsets = [24, 0], sizes = [2, 256], strides = [1, 1]} : vector<32x256xf32> to vector<2x256xf32>
    %558 = vector.extract_strided_slice %483 {offsets = [6, 0], sizes = [2, 256], strides = [1, 1]} : vector<32x256xf32> to vector<2x256xf32>
    %559 = arith.select %25, %557, %558 : vector<2x256xi1>, vector<2x256xf32>
    %c12_213 = arith.constant 12 : index
    %c0_214 = arith.constant 0 : index
    %c0_215 = arith.constant 0 : index
    %560 = vector.load %arg12[%c12_213, %c0_214, %c0_215] : memref<16x2x256xf32, #tpu.memory_space<vmem>>, vector<1x2x256xf32>
    %561 = vector.shape_cast %560 : vector<1x2x256xf32> to vector<2x256xf32>
    %562 = vector.shape_cast %559 : vector<2x256xf32> to vector<1x2x256xf32>
    tpu.vector_store %arg12[%c12_213, %c0_214, %c0_215], %562 {strides = array<i32>} : memref<16x2x256xf32, #tpu.memory_space<vmem>>, vector<1x2x256xf32>,
    %563 = vector.extract_strided_slice %483 {offsets = [26, 0], sizes = [2, 256], strides = [1, 1]} : vector<32x256xf32> to vector<2x256xf32>
    %564 = vector.extract_strided_slice %483 {offsets = [4, 0], sizes = [2, 256], strides = [1, 1]} : vector<32x256xf32> to vector<2x256xf32>
    %565 = arith.select %25, %563, %564 : vector<2x256xi1>, vector<2x256xf32>
    %c13_216 = arith.constant 13 : index
    %c0_217 = arith.constant 0 : index
    %c0_218 = arith.constant 0 : index
    %566 = vector.load %arg12[%c13_216, %c0_217, %c0_218] : memref<16x2x256xf32, #tpu.memory_space<vmem>>, vector<1x2x256xf32>
    %567 = vector.shape_cast %566 : vector<1x2x256xf32> to vector<2x256xf32>
    %568 = vector.shape_cast %565 : vector<2x256xf32> to vector<1x2x256xf32>
    tpu.vector_store %arg12[%c13_216, %c0_217, %c0_218], %568 {strides = array<i32>} : memref<16x2x256xf32, #tpu.memory_space<vmem>>, vector<1x2x256xf32>,
    %569 = vector.extract_strided_slice %483 {offsets = [28, 0], sizes = [2, 256], strides = [1, 1]} : vector<32x256xf32> to vector<2x256xf32>
    %570 = vector.extract_strided_slice %483 {offsets = [2, 0], sizes = [2, 256], strides = [1, 1]} : vector<32x256xf32> to vector<2x256xf32>
    %571 = arith.select %25, %569, %570 : vector<2x256xi1>, vector<2x256xf32>
    %c14_219 = arith.constant 14 : index
    %c0_220 = arith.constant 0 : index
    %c0_221 = arith.constant 0 : index
    %572 = vector.load %arg12[%c14_219, %c0_220, %c0_221] : memref<16x2x256xf32, #tpu.memory_space<vmem>>, vector<1x2x256xf32>
    %573 = vector.shape_cast %572 : vector<1x2x256xf32> to vector<2x256xf32>
    %574 = vector.shape_cast %571 : vector<2x256xf32> to vector<1x2x256xf32>
    tpu.vector_store %arg12[%c14_219, %c0_220, %c0_221], %574 {strides = array<i32>} : memref<16x2x256xf32, #tpu.memory_space<vmem>>, vector<1x2x256xf32>,
    %575 = vector.extract_strided_slice %483 {offsets = [30, 0], sizes = [2, 256], strides = [1, 1]} : vector<32x256xf32> to vector<2x256xf32>
    %576 = vector.extract_strided_slice %483 {offsets = [0, 0], sizes = [2, 256], strides = [1, 1]} : vector<32x256xf32> to vector<2x256xf32>
    %577 = arith.select %25, %575, %576 : vector<2x256xi1>, vector<2x256xf32>
    %c15_222 = arith.constant 15 : index
    %c0_223 = arith.constant 0 : index
    %c0_224 = arith.constant 0 : index
    %578 = vector.load %arg12[%c15_222, %c0_223, %c0_224] : memref<16x2x256xf32, #tpu.memory_space<vmem>>, vector<1x2x256xf32>
    %579 = vector.shape_cast %578 : vector<1x2x256xf32> to vector<2x256xf32>
    %580 = vector.shape_cast %577 : vector<2x256xf32> to vector<1x2x256xf32>
    tpu.vector_store %arg12[%c15_222, %c0_223, %c0_224], %580 {strides = array<i32>} : memref<16x2x256xf32, #tpu.memory_space<vmem>>, vector<1x2x256xf32>,
    %cst_225 = arith.constant 0.000000e+00 : f32
    %581 = vector.broadcast %cst_225 : f32 to vector<2x64xf32>
    %cst_226 = arith.constant 0.000000e+00 : f32
    %582 = vector.broadcast %cst_226 : f32 to vector<2x64xf32>
    %c0_227 = arith.constant 0 : index
    %c0_228 = arith.constant 0 : index
    %c0_229 = arith.constant 0 : index
    %583 = vector.load %arg12[%c0_227, %c0_228, %c0_229] : memref<16x2x256xf32, #tpu.memory_space<vmem>>, vector<1x2x256xf32>
    %584 = vector.shape_cast %583 : vector<1x2x256xf32> to vector<2x256xf32>
    %585 = arith.truncf %581 : vector<2x64xf32> to vector<2x64xbf16>
    %cst_230 = arith.constant dense<0.000000e+00> : vector<2x256xf32>
    %586 = tpu.matmul %585, %484, %cst_230 {dimension_numbers = #tpu.dot_dimension_numbers<[1], [0], [0], [1], [0, 0, 1, 1], [], []>} : vector<2x64xbf16>, vector<64x256xbf16>, vector<2x256xf32> -> vector<2x256xf32>
    %587 = arith.addf %584, %586 : vector<2x256xf32>
    %588 = math.tanh %587 : vector<2x256xf32>
    %589 = arith.mulf %588, %33 : vector<2x256xf32>
    %590 = arith.addf %589, %36 : vector<2x256xf32>
    %591 = vector.extract_strided_slice %590 {offsets = [0, 0], sizes = [2, 64], strides = [1, 1]} : vector<2x256xf32> to vector<2x64xf32>
    %592 = vector.extract_strided_slice %590 {offsets = [0, 64], sizes = [2, 64], strides = [1, 1]} : vector<2x256xf32> to vector<2x64xf32>
    %593 = vector.extract_strided_slice %590 {offsets = [0, 128], sizes = [2, 64], strides = [1, 1]} : vector<2x256xf32> to vector<2x64xf32>
    %594 = vector.extract_strided_slice %590 {offsets = [0, 192], sizes = [2, 64], strides = [1, 1]} : vector<2x256xf32> to vector<2x64xf32>
    %595 = arith.mulf %592, %582 : vector<2x64xf32>
    %596 = arith.mulf %591, %593 : vector<2x64xf32>
    %597 = arith.addf %595, %596 : vector<2x64xf32>
    %598 = math.tanh %597 : vector<2x64xf32>
    %599 = arith.mulf %594, %598 : vector<2x64xf32>
    %c1_231 = arith.constant 1 : index
    %c0_232 = arith.constant 0 : index
    %c0_233 = arith.constant 0 : index
    %600 = vector.load %arg12[%c1_231, %c0_232, %c0_233] : memref<16x2x256xf32, #tpu.memory_space<vmem>>, vector<1x2x256xf32>
    %601 = vector.shape_cast %600 : vector<1x2x256xf32> to vector<2x256xf32>
    %602 = arith.truncf %599 : vector<2x64xf32> to vector<2x64xbf16>
    %cst_234 = arith.constant dense<0.000000e+00> : vector<2x256xf32>
    %603 = tpu.matmul %602, %484, %cst_234 {dimension_numbers = #tpu.dot_dimension_numbers<[1], [0], [0], [1], [0, 0, 1, 1], [], []>} : vector<2x64xbf16>, vector<64x256xbf16>, vector<2x256xf32> -> vector<2x256xf32>
    %604 = arith.addf %601, %603 : vector<2x256xf32>
    %605 = math.tanh %604 : vector<2x256xf32>
    %606 = arith.mulf %605, %33 : vector<2x256xf32>
    %607 = arith.addf %606, %36 : vector<2x256xf32>
    %608 = vector.extract_strided_slice %607 {offsets = [0, 0], sizes = [2, 64], strides = [1, 1]} : vector<2x256xf32> to vector<2x64xf32>
    %609 = vector.extract_strided_slice %607 {offsets = [0, 64], sizes = [2, 64], strides = [1, 1]} : vector<2x256xf32> to vector<2x64xf32>
    %610 = vector.extract_strided_slice %607 {offsets = [0, 128], sizes = [2, 64], strides = [1, 1]} : vector<2x256xf32> to vector<2x64xf32>
    %611 = vector.extract_strided_slice %607 {offsets = [0, 192], sizes = [2, 64], strides = [1, 1]} : vector<2x256xf32> to vector<2x64xf32>
    %612 = arith.mulf %609, %597 : vector<2x64xf32>
    %613 = arith.mulf %608, %610 : vector<2x64xf32>
    %614 = arith.addf %612, %613 : vector<2x64xf32>
    %615 = math.tanh %614 : vector<2x64xf32>
    %616 = arith.mulf %611, %615 : vector<2x64xf32>
    %c2_235 = arith.constant 2 : index
    %c0_236 = arith.constant 0 : index
    %c0_237 = arith.constant 0 : index
    %617 = vector.load %arg12[%c2_235, %c0_236, %c0_237] : memref<16x2x256xf32, #tpu.memory_space<vmem>>, vector<1x2x256xf32>
    %618 = vector.shape_cast %617 : vector<1x2x256xf32> to vector<2x256xf32>
    %619 = arith.truncf %616 : vector<2x64xf32> to vector<2x64xbf16>
    %cst_238 = arith.constant dense<0.000000e+00> : vector<2x256xf32>
    %620 = tpu.matmul %619, %484, %cst_238 {dimension_numbers = #tpu.dot_dimension_numbers<[1], [0], [0], [1], [0, 0, 1, 1], [], []>} : vector<2x64xbf16>, vector<64x256xbf16>, vector<2x256xf32> -> vector<2x256xf32>
    %621 = arith.addf %618, %620 : vector<2x256xf32>
    %622 = math.tanh %621 : vector<2x256xf32>
    %623 = arith.mulf %622, %33 : vector<2x256xf32>
    %624 = arith.addf %623, %36 : vector<2x256xf32>
    %625 = vector.extract_strided_slice %624 {offsets = [0, 0], sizes = [2, 64], strides = [1, 1]} : vector<2x256xf32> to vector<2x64xf32>
    %626 = vector.extract_strided_slice %624 {offsets = [0, 64], sizes = [2, 64], strides = [1, 1]} : vector<2x256xf32> to vector<2x64xf32>
    %627 = vector.extract_strided_slice %624 {offsets = [0, 128], sizes = [2, 64], strides = [1, 1]} : vector<2x256xf32> to vector<2x64xf32>
    %628 = vector.extract_strided_slice %624 {offsets = [0, 192], sizes = [2, 64], strides = [1, 1]} : vector<2x256xf32> to vector<2x64xf32>
    %629 = arith.mulf %626, %614 : vector<2x64xf32>
    %630 = arith.mulf %625, %627 : vector<2x64xf32>
    %631 = arith.addf %629, %630 : vector<2x64xf32>
    %632 = math.tanh %631 : vector<2x64xf32>
    %633 = arith.mulf %628, %632 : vector<2x64xf32>
    %c3_239 = arith.constant 3 : index
    %c0_240 = arith.constant 0 : index
    %c0_241 = arith.constant 0 : index
    %634 = vector.load %arg12[%c3_239, %c0_240, %c0_241] : memref<16x2x256xf32, #tpu.memory_space<vmem>>, vector<1x2x256xf32>
    %635 = vector.shape_cast %634 : vector<1x2x256xf32> to vector<2x256xf32>
    %636 = arith.truncf %633 : vector<2x64xf32> to vector<2x64xbf16>
    %cst_242 = arith.constant dense<0.000000e+00> : vector<2x256xf32>
    %637 = tpu.matmul %636, %484, %cst_242 {dimension_numbers = #tpu.dot_dimension_numbers<[1], [0], [0], [1], [0, 0, 1, 1], [], []>} : vector<2x64xbf16>, vector<64x256xbf16>, vector<2x256xf32> -> vector<2x256xf32>
    %638 = arith.addf %635, %637 : vector<2x256xf32>
    %639 = math.tanh %638 : vector<2x256xf32>
    %640 = arith.mulf %639, %33 : vector<2x256xf32>
    %641 = arith.addf %640, %36 : vector<2x256xf32>
    %642 = vector.extract_strided_slice %641 {offsets = [0, 0], sizes = [2, 64], strides = [1, 1]} : vector<2x256xf32> to vector<2x64xf32>
    %643 = vector.extract_strided_slice %641 {offsets = [0, 64], sizes = [2, 64], strides = [1, 1]} : vector<2x256xf32> to vector<2x64xf32>
    %644 = vector.extract_strided_slice %641 {offsets = [0, 128], sizes = [2, 64], strides = [1, 1]} : vector<2x256xf32> to vector<2x64xf32>
    %645 = vector.extract_strided_slice %641 {offsets = [0, 192], sizes = [2, 64], strides = [1, 1]} : vector<2x256xf32> to vector<2x64xf32>
    %646 = arith.mulf %643, %631 : vector<2x64xf32>
    %647 = arith.mulf %642, %644 : vector<2x64xf32>
    %648 = arith.addf %646, %647 : vector<2x64xf32>
    %649 = math.tanh %648 : vector<2x64xf32>
    %650 = arith.mulf %645, %649 : vector<2x64xf32>
    %c4_243 = arith.constant 4 : index
    %c0_244 = arith.constant 0 : index
    %c0_245 = arith.constant 0 : index
    %651 = vector.load %arg12[%c4_243, %c0_244, %c0_245] : memref<16x2x256xf32, #tpu.memory_space<vmem>>, vector<1x2x256xf32>
    %652 = vector.shape_cast %651 : vector<1x2x256xf32> to vector<2x256xf32>
    %653 = arith.truncf %650 : vector<2x64xf32> to vector<2x64xbf16>
    %cst_246 = arith.constant dense<0.000000e+00> : vector<2x256xf32>
    %654 = tpu.matmul %653, %484, %cst_246 {dimension_numbers = #tpu.dot_dimension_numbers<[1], [0], [0], [1], [0, 0, 1, 1], [], []>} : vector<2x64xbf16>, vector<64x256xbf16>, vector<2x256xf32> -> vector<2x256xf32>
    %655 = arith.addf %652, %654 : vector<2x256xf32>
    %656 = math.tanh %655 : vector<2x256xf32>
    %657 = arith.mulf %656, %33 : vector<2x256xf32>
    %658 = arith.addf %657, %36 : vector<2x256xf32>
    %659 = vector.extract_strided_slice %658 {offsets = [0, 0], sizes = [2, 64], strides = [1, 1]} : vector<2x256xf32> to vector<2x64xf32>
    %660 = vector.extract_strided_slice %658 {offsets = [0, 64], sizes = [2, 64], strides = [1, 1]} : vector<2x256xf32> to vector<2x64xf32>
    %661 = vector.extract_strided_slice %658 {offsets = [0, 128], sizes = [2, 64], strides = [1, 1]} : vector<2x256xf32> to vector<2x64xf32>
    %662 = vector.extract_strided_slice %658 {offsets = [0, 192], sizes = [2, 64], strides = [1, 1]} : vector<2x256xf32> to vector<2x64xf32>
    %663 = arith.mulf %660, %648 : vector<2x64xf32>
    %664 = arith.mulf %659, %661 : vector<2x64xf32>
    %665 = arith.addf %663, %664 : vector<2x64xf32>
    %666 = math.tanh %665 : vector<2x64xf32>
    %667 = arith.mulf %662, %666 : vector<2x64xf32>
    %c5_247 = arith.constant 5 : index
    %c0_248 = arith.constant 0 : index
    %c0_249 = arith.constant 0 : index
    %668 = vector.load %arg12[%c5_247, %c0_248, %c0_249] : memref<16x2x256xf32, #tpu.memory_space<vmem>>, vector<1x2x256xf32>
    %669 = vector.shape_cast %668 : vector<1x2x256xf32> to vector<2x256xf32>
    %670 = arith.truncf %667 : vector<2x64xf32> to vector<2x64xbf16>
    %cst_250 = arith.constant dense<0.000000e+00> : vector<2x256xf32>
    %671 = tpu.matmul %670, %484, %cst_250 {dimension_numbers = #tpu.dot_dimension_numbers<[1], [0], [0], [1], [0, 0, 1, 1], [], []>} : vector<2x64xbf16>, vector<64x256xbf16>, vector<2x256xf32> -> vector<2x256xf32>
    %672 = arith.addf %669, %671 : vector<2x256xf32>
    %673 = math.tanh %672 : vector<2x256xf32>
    %674 = arith.mulf %673, %33 : vector<2x256xf32>
    %675 = arith.addf %674, %36 : vector<2x256xf32>
    %676 = vector.extract_strided_slice %675 {offsets = [0, 0], sizes = [2, 64], strides = [1, 1]} : vector<2x256xf32> to vector<2x64xf32>
    %677 = vector.extract_strided_slice %675 {offsets = [0, 64], sizes = [2, 64], strides = [1, 1]} : vector<2x256xf32> to vector<2x64xf32>
    %678 = vector.extract_strided_slice %675 {offsets = [0, 128], sizes = [2, 64], strides = [1, 1]} : vector<2x256xf32> to vector<2x64xf32>
    %679 = vector.extract_strided_slice %675 {offsets = [0, 192], sizes = [2, 64], strides = [1, 1]} : vector<2x256xf32> to vector<2x64xf32>
    %680 = arith.mulf %677, %665 : vector<2x64xf32>
    %681 = arith.mulf %676, %678 : vector<2x64xf32>
    %682 = arith.addf %680, %681 : vector<2x64xf32>
    %683 = math.tanh %682 : vector<2x64xf32>
    %684 = arith.mulf %679, %683 : vector<2x64xf32>
    %c6_251 = arith.constant 6 : index
    %c0_252 = arith.constant 0 : index
    %c0_253 = arith.constant 0 : index
    %685 = vector.load %arg12[%c6_251, %c0_252, %c0_253] : memref<16x2x256xf32, #tpu.memory_space<vmem>>, vector<1x2x256xf32>
    %686 = vector.shape_cast %685 : vector<1x2x256xf32> to vector<2x256xf32>
    %687 = arith.truncf %684 : vector<2x64xf32> to vector<2x64xbf16>
    %cst_254 = arith.constant dense<0.000000e+00> : vector<2x256xf32>
    %688 = tpu.matmul %687, %484, %cst_254 {dimension_numbers = #tpu.dot_dimension_numbers<[1], [0], [0], [1], [0, 0, 1, 1], [], []>} : vector<2x64xbf16>, vector<64x256xbf16>, vector<2x256xf32> -> vector<2x256xf32>
    %689 = arith.addf %686, %688 : vector<2x256xf32>
    %690 = math.tanh %689 : vector<2x256xf32>
    %691 = arith.mulf %690, %33 : vector<2x256xf32>
    %692 = arith.addf %691, %36 : vector<2x256xf32>
    %693 = vector.extract_strided_slice %692 {offsets = [0, 0], sizes = [2, 64], strides = [1, 1]} : vector<2x256xf32> to vector<2x64xf32>
    %694 = vector.extract_strided_slice %692 {offsets = [0, 64], sizes = [2, 64], strides = [1, 1]} : vector<2x256xf32> to vector<2x64xf32>
    %695 = vector.extract_strided_slice %692 {offsets = [0, 128], sizes = [2, 64], strides = [1, 1]} : vector<2x256xf32> to vector<2x64xf32>
    %696 = vector.extract_strided_slice %692 {offsets = [0, 192], sizes = [2, 64], strides = [1, 1]} : vector<2x256xf32> to vector<2x64xf32>
    %697 = arith.mulf %694, %682 : vector<2x64xf32>
    %698 = arith.mulf %693, %695 : vector<2x64xf32>
    %699 = arith.addf %697, %698 : vector<2x64xf32>
    %700 = math.tanh %699 : vector<2x64xf32>
    %701 = arith.mulf %696, %700 : vector<2x64xf32>
    %c7_255 = arith.constant 7 : index
    %c0_256 = arith.constant 0 : index
    %c0_257 = arith.constant 0 : index
    %702 = vector.load %arg12[%c7_255, %c0_256, %c0_257] : memref<16x2x256xf32, #tpu.memory_space<vmem>>, vector<1x2x256xf32>
    %703 = vector.shape_cast %702 : vector<1x2x256xf32> to vector<2x256xf32>
    %704 = arith.truncf %701 : vector<2x64xf32> to vector<2x64xbf16>
    %cst_258 = arith.constant dense<0.000000e+00> : vector<2x256xf32>
    %705 = tpu.matmul %704, %484, %cst_258 {dimension_numbers = #tpu.dot_dimension_numbers<[1], [0], [0], [1], [0, 0, 1, 1], [], []>} : vector<2x64xbf16>, vector<64x256xbf16>, vector<2x256xf32> -> vector<2x256xf32>
    %706 = arith.addf %703, %705 : vector<2x256xf32>
    %707 = math.tanh %706 : vector<2x256xf32>
    %708 = arith.mulf %707, %33 : vector<2x256xf32>
    %709 = arith.addf %708, %36 : vector<2x256xf32>
    %710 = vector.extract_strided_slice %709 {offsets = [0, 0], sizes = [2, 64], strides = [1, 1]} : vector<2x256xf32> to vector<2x64xf32>
    %711 = vector.extract_strided_slice %709 {offsets = [0, 64], sizes = [2, 64], strides = [1, 1]} : vector<2x256xf32> to vector<2x64xf32>
    %712 = vector.extract_strided_slice %709 {offsets = [0, 128], sizes = [2, 64], strides = [1, 1]} : vector<2x256xf32> to vector<2x64xf32>
    %713 = vector.extract_strided_slice %709 {offsets = [0, 192], sizes = [2, 64], strides = [1, 1]} : vector<2x256xf32> to vector<2x64xf32>
    %714 = arith.mulf %711, %699 : vector<2x64xf32>
    %715 = arith.mulf %710, %712 : vector<2x64xf32>
    %716 = arith.addf %714, %715 : vector<2x64xf32>
    %717 = math.tanh %716 : vector<2x64xf32>
    %718 = arith.mulf %713, %717 : vector<2x64xf32>
    %c8_259 = arith.constant 8 : index
    %c0_260 = arith.constant 0 : index
    %c0_261 = arith.constant 0 : index
    %719 = vector.load %arg12[%c8_259, %c0_260, %c0_261] : memref<16x2x256xf32, #tpu.memory_space<vmem>>, vector<1x2x256xf32>
    %720 = vector.shape_cast %719 : vector<1x2x256xf32> to vector<2x256xf32>
    %721 = arith.truncf %718 : vector<2x64xf32> to vector<2x64xbf16>
    %cst_262 = arith.constant dense<0.000000e+00> : vector<2x256xf32>
    %722 = tpu.matmul %721, %484, %cst_262 {dimension_numbers = #tpu.dot_dimension_numbers<[1], [0], [0], [1], [0, 0, 1, 1], [], []>} : vector<2x64xbf16>, vector<64x256xbf16>, vector<2x256xf32> -> vector<2x256xf32>
    %723 = arith.addf %720, %722 : vector<2x256xf32>
    %724 = math.tanh %723 : vector<2x256xf32>
    %725 = arith.mulf %724, %33 : vector<2x256xf32>
    %726 = arith.addf %725, %36 : vector<2x256xf32>
    %727 = vector.extract_strided_slice %726 {offsets = [0, 0], sizes = [2, 64], strides = [1, 1]} : vector<2x256xf32> to vector<2x64xf32>
    %728 = vector.extract_strided_slice %726 {offsets = [0, 64], sizes = [2, 64], strides = [1, 1]} : vector<2x256xf32> to vector<2x64xf32>
    %729 = vector.extract_strided_slice %726 {offsets = [0, 128], sizes = [2, 64], strides = [1, 1]} : vector<2x256xf32> to vector<2x64xf32>
    %730 = vector.extract_strided_slice %726 {offsets = [0, 192], sizes = [2, 64], strides = [1, 1]} : vector<2x256xf32> to vector<2x64xf32>
    %731 = arith.mulf %728, %716 : vector<2x64xf32>
    %732 = arith.mulf %727, %729 : vector<2x64xf32>
    %733 = arith.addf %731, %732 : vector<2x64xf32>
    %734 = math.tanh %733 : vector<2x64xf32>
    %735 = arith.mulf %730, %734 : vector<2x64xf32>
    %c9_263 = arith.constant 9 : index
    %c0_264 = arith.constant 0 : index
    %c0_265 = arith.constant 0 : index
    %736 = vector.load %arg12[%c9_263, %c0_264, %c0_265] : memref<16x2x256xf32, #tpu.memory_space<vmem>>, vector<1x2x256xf32>
    %737 = vector.shape_cast %736 : vector<1x2x256xf32> to vector<2x256xf32>
    %738 = arith.truncf %735 : vector<2x64xf32> to vector<2x64xbf16>
    %cst_266 = arith.constant dense<0.000000e+00> : vector<2x256xf32>
    %739 = tpu.matmul %738, %484, %cst_266 {dimension_numbers = #tpu.dot_dimension_numbers<[1], [0], [0], [1], [0, 0, 1, 1], [], []>} : vector<2x64xbf16>, vector<64x256xbf16>, vector<2x256xf32> -> vector<2x256xf32>
    %740 = arith.addf %737, %739 : vector<2x256xf32>
    %741 = math.tanh %740 : vector<2x256xf32>
    %742 = arith.mulf %741, %33 : vector<2x256xf32>
    %743 = arith.addf %742, %36 : vector<2x256xf32>
    %744 = vector.extract_strided_slice %743 {offsets = [0, 0], sizes = [2, 64], strides = [1, 1]} : vector<2x256xf32> to vector<2x64xf32>
    %745 = vector.extract_strided_slice %743 {offsets = [0, 64], sizes = [2, 64], strides = [1, 1]} : vector<2x256xf32> to vector<2x64xf32>
    %746 = vector.extract_strided_slice %743 {offsets = [0, 128], sizes = [2, 64], strides = [1, 1]} : vector<2x256xf32> to vector<2x64xf32>
    %747 = vector.extract_strided_slice %743 {offsets = [0, 192], sizes = [2, 64], strides = [1, 1]} : vector<2x256xf32> to vector<2x64xf32>
    %748 = arith.mulf %745, %733 : vector<2x64xf32>
    %749 = arith.mulf %744, %746 : vector<2x64xf32>
    %750 = arith.addf %748, %749 : vector<2x64xf32>
    %751 = math.tanh %750 : vector<2x64xf32>
    %752 = arith.mulf %747, %751 : vector<2x64xf32>
    %c10_267 = arith.constant 10 : index
    %c0_268 = arith.constant 0 : index
    %c0_269 = arith.constant 0 : index
    %753 = vector.load %arg12[%c10_267, %c0_268, %c0_269] : memref<16x2x256xf32, #tpu.memory_space<vmem>>, vector<1x2x256xf32>
    %754 = vector.shape_cast %753 : vector<1x2x256xf32> to vector<2x256xf32>
    %755 = arith.truncf %752 : vector<2x64xf32> to vector<2x64xbf16>
    %cst_270 = arith.constant dense<0.000000e+00> : vector<2x256xf32>
    %756 = tpu.matmul %755, %484, %cst_270 {dimension_numbers = #tpu.dot_dimension_numbers<[1], [0], [0], [1], [0, 0, 1, 1], [], []>} : vector<2x64xbf16>, vector<64x256xbf16>, vector<2x256xf32> -> vector<2x256xf32>
    %757 = arith.addf %754, %756 : vector<2x256xf32>
    %758 = math.tanh %757 : vector<2x256xf32>
    %759 = arith.mulf %758, %33 : vector<2x256xf32>
    %760 = arith.addf %759, %36 : vector<2x256xf32>
    %761 = vector.extract_strided_slice %760 {offsets = [0, 0], sizes = [2, 64], strides = [1, 1]} : vector<2x256xf32> to vector<2x64xf32>
    %762 = vector.extract_strided_slice %760 {offsets = [0, 64], sizes = [2, 64], strides = [1, 1]} : vector<2x256xf32> to vector<2x64xf32>
    %763 = vector.extract_strided_slice %760 {offsets = [0, 128], sizes = [2, 64], strides = [1, 1]} : vector<2x256xf32> to vector<2x64xf32>
    %764 = vector.extract_strided_slice %760 {offsets = [0, 192], sizes = [2, 64], strides = [1, 1]} : vector<2x256xf32> to vector<2x64xf32>
    %765 = arith.mulf %762, %750 : vector<2x64xf32>
    %766 = arith.mulf %761, %763 : vector<2x64xf32>
    %767 = arith.addf %765, %766 : vector<2x64xf32>
    %768 = math.tanh %767 : vector<2x64xf32>
    %769 = arith.mulf %764, %768 : vector<2x64xf32>
    %c11_271 = arith.constant 11 : index
    %c0_272 = arith.constant 0 : index
    %c0_273 = arith.constant 0 : index
    %770 = vector.load %arg12[%c11_271, %c0_272, %c0_273] : memref<16x2x256xf32, #tpu.memory_space<vmem>>, vector<1x2x256xf32>
    %771 = vector.shape_cast %770 : vector<1x2x256xf32> to vector<2x256xf32>
    %772 = arith.truncf %769 : vector<2x64xf32> to vector<2x64xbf16>
    %cst_274 = arith.constant dense<0.000000e+00> : vector<2x256xf32>
    %773 = tpu.matmul %772, %484, %cst_274 {dimension_numbers = #tpu.dot_dimension_numbers<[1], [0], [0], [1], [0, 0, 1, 1], [], []>} : vector<2x64xbf16>, vector<64x256xbf16>, vector<2x256xf32> -> vector<2x256xf32>
    %774 = arith.addf %771, %773 : vector<2x256xf32>
    %775 = math.tanh %774 : vector<2x256xf32>
    %776 = arith.mulf %775, %33 : vector<2x256xf32>
    %777 = arith.addf %776, %36 : vector<2x256xf32>
    %778 = vector.extract_strided_slice %777 {offsets = [0, 0], sizes = [2, 64], strides = [1, 1]} : vector<2x256xf32> to vector<2x64xf32>
    %779 = vector.extract_strided_slice %777 {offsets = [0, 64], sizes = [2, 64], strides = [1, 1]} : vector<2x256xf32> to vector<2x64xf32>
    %780 = vector.extract_strided_slice %777 {offsets = [0, 128], sizes = [2, 64], strides = [1, 1]} : vector<2x256xf32> to vector<2x64xf32>
    %781 = vector.extract_strided_slice %777 {offsets = [0, 192], sizes = [2, 64], strides = [1, 1]} : vector<2x256xf32> to vector<2x64xf32>
    %782 = arith.mulf %779, %767 : vector<2x64xf32>
    %783 = arith.mulf %778, %780 : vector<2x64xf32>
    %784 = arith.addf %782, %783 : vector<2x64xf32>
    %785 = math.tanh %784 : vector<2x64xf32>
    %786 = arith.mulf %781, %785 : vector<2x64xf32>
    %c12_275 = arith.constant 12 : index
    %c0_276 = arith.constant 0 : index
    %c0_277 = arith.constant 0 : index
    %787 = vector.load %arg12[%c12_275, %c0_276, %c0_277] : memref<16x2x256xf32, #tpu.memory_space<vmem>>, vector<1x2x256xf32>
    %788 = vector.shape_cast %787 : vector<1x2x256xf32> to vector<2x256xf32>
    %789 = arith.truncf %786 : vector<2x64xf32> to vector<2x64xbf16>
    %cst_278 = arith.constant dense<0.000000e+00> : vector<2x256xf32>
    %790 = tpu.matmul %789, %484, %cst_278 {dimension_numbers = #tpu.dot_dimension_numbers<[1], [0], [0], [1], [0, 0, 1, 1], [], []>} : vector<2x64xbf16>, vector<64x256xbf16>, vector<2x256xf32> -> vector<2x256xf32>
    %791 = arith.addf %788, %790 : vector<2x256xf32>
    %792 = math.tanh %791 : vector<2x256xf32>
    %793 = arith.mulf %792, %33 : vector<2x256xf32>
    %794 = arith.addf %793, %36 : vector<2x256xf32>
    %795 = vector.extract_strided_slice %794 {offsets = [0, 0], sizes = [2, 64], strides = [1, 1]} : vector<2x256xf32> to vector<2x64xf32>
    %796 = vector.extract_strided_slice %794 {offsets = [0, 64], sizes = [2, 64], strides = [1, 1]} : vector<2x256xf32> to vector<2x64xf32>
    %797 = vector.extract_strided_slice %794 {offsets = [0, 128], sizes = [2, 64], strides = [1, 1]} : vector<2x256xf32> to vector<2x64xf32>
    %798 = vector.extract_strided_slice %794 {offsets = [0, 192], sizes = [2, 64], strides = [1, 1]} : vector<2x256xf32> to vector<2x64xf32>
    %799 = arith.mulf %796, %784 : vector<2x64xf32>
    %800 = arith.mulf %795, %797 : vector<2x64xf32>
    %801 = arith.addf %799, %800 : vector<2x64xf32>
    %802 = math.tanh %801 : vector<2x64xf32>
    %803 = arith.mulf %798, %802 : vector<2x64xf32>
    %c13_279 = arith.constant 13 : index
    %c0_280 = arith.constant 0 : index
    %c0_281 = arith.constant 0 : index
    %804 = vector.load %arg12[%c13_279, %c0_280, %c0_281] : memref<16x2x256xf32, #tpu.memory_space<vmem>>, vector<1x2x256xf32>
    %805 = vector.shape_cast %804 : vector<1x2x256xf32> to vector<2x256xf32>
    %806 = arith.truncf %803 : vector<2x64xf32> to vector<2x64xbf16>
    %cst_282 = arith.constant dense<0.000000e+00> : vector<2x256xf32>
    %807 = tpu.matmul %806, %484, %cst_282 {dimension_numbers = #tpu.dot_dimension_numbers<[1], [0], [0], [1], [0, 0, 1, 1], [], []>} : vector<2x64xbf16>, vector<64x256xbf16>, vector<2x256xf32> -> vector<2x256xf32>
    %808 = arith.addf %805, %807 : vector<2x256xf32>
    %809 = math.tanh %808 : vector<2x256xf32>
    %810 = arith.mulf %809, %33 : vector<2x256xf32>
    %811 = arith.addf %810, %36 : vector<2x256xf32>
    %812 = vector.extract_strided_slice %811 {offsets = [0, 0], sizes = [2, 64], strides = [1, 1]} : vector<2x256xf32> to vector<2x64xf32>
    %813 = vector.extract_strided_slice %811 {offsets = [0, 64], sizes = [2, 64], strides = [1, 1]} : vector<2x256xf32> to vector<2x64xf32>
    %814 = vector.extract_strided_slice %811 {offsets = [0, 128], sizes = [2, 64], strides = [1, 1]} : vector<2x256xf32> to vector<2x64xf32>
    %815 = vector.extract_strided_slice %811 {offsets = [0, 192], sizes = [2, 64], strides = [1, 1]} : vector<2x256xf32> to vector<2x64xf32>
    %816 = arith.mulf %813, %801 : vector<2x64xf32>
    %817 = arith.mulf %812, %814 : vector<2x64xf32>
    %818 = arith.addf %816, %817 : vector<2x64xf32>
    %819 = math.tanh %818 : vector<2x64xf32>
    %820 = arith.mulf %815, %819 : vector<2x64xf32>
    %c14_283 = arith.constant 14 : index
    %c0_284 = arith.constant 0 : index
    %c0_285 = arith.constant 0 : index
    %821 = vector.load %arg12[%c14_283, %c0_284, %c0_285] : memref<16x2x256xf32, #tpu.memory_space<vmem>>, vector<1x2x256xf32>
    %822 = vector.shape_cast %821 : vector<1x2x256xf32> to vector<2x256xf32>
    %823 = arith.truncf %820 : vector<2x64xf32> to vector<2x64xbf16>
    %cst_286 = arith.constant dense<0.000000e+00> : vector<2x256xf32>
    %824 = tpu.matmul %823, %484, %cst_286 {dimension_numbers = #tpu.dot_dimension_numbers<[1], [0], [0], [1], [0, 0, 1, 1], [], []>} : vector<2x64xbf16>, vector<64x256xbf16>, vector<2x256xf32> -> vector<2x256xf32>
    %825 = arith.addf %822, %824 : vector<2x256xf32>
    %826 = math.tanh %825 : vector<2x256xf32>
    %827 = arith.mulf %826, %33 : vector<2x256xf32>
    %828 = arith.addf %827, %36 : vector<2x256xf32>
    %829 = vector.extract_strided_slice %828 {offsets = [0, 0], sizes = [2, 64], strides = [1, 1]} : vector<2x256xf32> to vector<2x64xf32>
    %830 = vector.extract_strided_slice %828 {offsets = [0, 64], sizes = [2, 64], strides = [1, 1]} : vector<2x256xf32> to vector<2x64xf32>
    %831 = vector.extract_strided_slice %828 {offsets = [0, 128], sizes = [2, 64], strides = [1, 1]} : vector<2x256xf32> to vector<2x64xf32>
    %832 = vector.extract_strided_slice %828 {offsets = [0, 192], sizes = [2, 64], strides = [1, 1]} : vector<2x256xf32> to vector<2x64xf32>
    %833 = arith.mulf %830, %818 : vector<2x64xf32>
    %834 = arith.mulf %829, %831 : vector<2x64xf32>
    %835 = arith.addf %833, %834 : vector<2x64xf32>
    %836 = math.tanh %835 : vector<2x64xf32>
    %837 = arith.mulf %832, %836 : vector<2x64xf32>
    %c15_287 = arith.constant 15 : index
    %c0_288 = arith.constant 0 : index
    %c0_289 = arith.constant 0 : index
    %838 = vector.load %arg12[%c15_287, %c0_288, %c0_289] : memref<16x2x256xf32, #tpu.memory_space<vmem>>, vector<1x2x256xf32>
    %839 = vector.shape_cast %838 : vector<1x2x256xf32> to vector<2x256xf32>
    %840 = arith.truncf %837 : vector<2x64xf32> to vector<2x64xbf16>
    %cst_290 = arith.constant dense<0.000000e+00> : vector<2x256xf32>
    %841 = tpu.matmul %840, %484, %cst_290 {dimension_numbers = #tpu.dot_dimension_numbers<[1], [0], [0], [1], [0, 0, 1, 1], [], []>} : vector<2x64xbf16>, vector<64x256xbf16>, vector<2x256xf32> -> vector<2x256xf32>
    %842 = arith.addf %839, %841 : vector<2x256xf32>
    %843 = math.tanh %842 : vector<2x256xf32>
    %844 = arith.mulf %843, %33 : vector<2x256xf32>
    %845 = arith.addf %844, %36 : vector<2x256xf32>
    %846 = vector.extract_strided_slice %845 {offsets = [0, 0], sizes = [2, 64], strides = [1, 1]} : vector<2x256xf32> to vector<2x64xf32>
    %847 = vector.extract_strided_slice %845 {offsets = [0, 64], sizes = [2, 64], strides = [1, 1]} : vector<2x256xf32> to vector<2x64xf32>
    %848 = vector.extract_strided_slice %845 {offsets = [0, 128], sizes = [2, 64], strides = [1, 1]} : vector<2x256xf32> to vector<2x64xf32>
    %849 = vector.extract_strided_slice %845 {offsets = [0, 192], sizes = [2, 64], strides = [1, 1]} : vector<2x256xf32> to vector<2x64xf32>
    %850 = arith.mulf %847, %835 : vector<2x64xf32>
    %851 = arith.mulf %846, %848 : vector<2x64xf32>
    %852 = arith.addf %850, %851 : vector<2x64xf32>
    %853 = math.tanh %852 : vector<2x64xf32>
    %854 = arith.mulf %849, %853 : vector<2x64xf32>
    %855 = vector.extract_strided_slice %854 {offsets = [0, 32], sizes = [2, 32], strides = [1, 1]} : vector<2x64xf32> to vector<2x32xf32>
    %856 = vector.extract_strided_slice %854 {offsets = [0, 0], sizes = [2, 32], strides = [1, 1]} : vector<2x64xf32> to vector<2x32xf32>
    %857 = tpu.concatenate %855, %856 in 1 : vector<2x32xf32>, vector<2x32xf32> -> vector<2x64xf32>
    %858 = arith.truncf %857 : vector<2x64xf32> to vector<2x64xbf16>
    %c0_291 = arith.constant 0 : index
    %c0_292 = arith.constant 0 : index
    %859 = vector.load %arg7[%c0_291, %c0_292] : memref<64x32xbf16, #tpu.memory_space<vmem>>, vector<64x32xbf16>
    %cst_293 = arith.constant dense<0.000000e+00> : vector<2x32xf32>
    %860 = tpu.matmul %858, %859, %cst_293 {dimension_numbers = #tpu.dot_dimension_numbers<[1], [0], [0], [1], [0, 0, 1, 1], [], []>} : vector<2x64xbf16>, vector<64x32xbf16>, vector<2x32xf32> -> vector<2x32xf32>
    %c0_294 = arith.constant 0 : index
    %c0_295 = arith.constant 0 : index
    %861 = vector.load %arg8[%c0_294, %c0_295] : memref<1x32xf32, #tpu.memory_space<vmem>>, vector<1x32xf32>
    %862 = vector.broadcast %861 : vector<1x32xf32> to vector<2x32xf32>
    %863 = arith.addf %860, %862 : vector<2x32xf32>
    %cst_296 = arith.constant 0.000000e+00 : f32
    %864 = vector.broadcast %cst_296 : f32 to vector<2x32xf32>
    %865 = arith.maximumf %863, %864 : vector<2x32xf32>
    %866 = arith.truncf %865 : vector<2x32xf32> to vector<2x32xbf16>
    %c0_297 = arith.constant 0 : index
    %c0_298 = arith.constant 0 : index
    %867 = vector.load %arg9[%c0_297, %c0_298] : memref<32x5xbf16, #tpu.memory_space<vmem>>, vector<32x5xbf16>
    %cst_299 = arith.constant dense<0.000000e+00> : vector<2x5xf32>
    %868 = tpu.matmul %866, %867, %cst_299 {dimension_numbers = #tpu.dot_dimension_numbers<[1], [0], [0], [1], [0, 0, 1, 1], [], []>} : vector<2x32xbf16>, vector<32x5xbf16>, vector<2x5xf32> -> vector<2x5xf32>
    %c0_300 = arith.constant 0 : index
    %c0_301 = arith.constant 0 : index
    %869 = vector.load %arg10[%c0_300, %c0_301] : memref<1x5xf32, #tpu.memory_space<vmem>>, vector<1x5xf32>
    %870 = vector.broadcast %869 : vector<1x5xf32> to vector<2x5xf32>
    %871 = arith.addf %868, %870 : vector<2x5xf32>
    %c0_302 = arith.constant 0 : index
    %c0_303 = arith.constant 0 : index
    %872 = vector.load %arg11[%c0_302, %c0_303] : memref<2x5xf32, #tpu.memory_space<vmem>>, vector<2x5xf32>
    tpu.vector_store %arg11[%c0_302, %c0_303], %871 {strides = array<i32>} : memref<2x5xf32, #tpu.memory_space<vmem>>, vector<2x5xf32>,
    return
  }
}

</mosaic_0001>

<bundles_post_ra>
// kernel: lstm_classifier_forward.1
= control target key start
LH: loop header
LB: loop body
LE: loop exit
PB: predicated region body
PF: predicated region fallthrough
CT: control target
= control target key end

     0   :  { %16 = vsyncpa [#allocation5], 0  ;;  %s5311_s0 = inlined_call_operand.vmem [shape: s32[32,1], index: 0, kind: input, shape index: {}]   ;;  %s5312_s1 = inlined_call_operand.vmem [shape: bf16[64,256], index: 1, kind: input, shape index: {}]   ;;  %s5313_s2 = inlined_call_operand.vmem [shape: bf16[64,256], index: 2, kind: input, shape index: {}]   ;;  %s5314_s3 = inlined_call_operand.vmem [shape: f32[1,256], index: 3, kind: input, shape index: {}]   ;;  %s5315_s4 = inlined_call_operand.hbm [shape: bf16[64,256], index: 4, kind: input, shape index: {}]   ;;  %s5316_s5 = inlined_call_operand.hbm [shape: bf16[64,256], index: 5, kind: input, shape index: {}]   ;;  %s5317_s6 = inlined_call_operand.vmem [shape: f32[1,256], index: 6, kind: input, shape index: {}]   ;;  %s5318_s7 = inlined_call_operand.vmem [shape: bf16[64,32], index: 7, kind: input, shape index: {}]   ;;  %s5319_s8 = inlined_call_operand.hbm [shape: f32[1,32], index: 8, kind: input, shape index: {}]   ;;  %s5320_s9 = inlined_call_operand.vmem [shape: bf16[32,5], index: 9, kind: input, shape index: {}]   ;;  %s5321_s10 = inlined_call_operand.hbm [shape: f32[1,5], index: 10, kind: input, shape index: {}]   ;;  %s5322_s11 = inlined_call_operand.hbm [shape: f32[2,5], index: 11, kind: output, shape index: {}]  }
   0x1   :  { %17 = vsyncpa [#allocation8], 0 }
   0x2   :  { %18 = vsyncpa [#allocation11], 0 }
   0x3   :  { %19 = vsyncpa [#allocation6], 0  ;;  %s4282_s17 = smov [#allocation7]   ;;  %s4283_s19 = smov [#allocation4]  }
   0x4   :  { %s45_s18 = sshll.u32 %s4282_s17, 4  ;;  %s33_s20 = sshll.u32 %s4283_s19, 4  ;;  %s46_s18 = int_to_ptr.vmem [resolvable:$true] %s45_s18  ;;  %s4357_s20 = int_to_ptr.vmem [resolvable:$true] %s33_s20 }
   0x5   :  { %s4164_s23 = scalar_lea.hbm %s5316_s5, 1024 }
   0x6   :  { %p4165_p0 = scmp.ne.s32.totalorder %s5316_s5, %s4164_s23  ;;  %p4168_p1 = scmp.lt.u32.totalorder %s4164_s23, %s5316_s5 }
   0x8   :  { %p4170_p2 = pnand %p4168_p1, %p4165_p0 }
   0xa   :  { %4173 = shalt.err (!%p4170_p2)
}
   0xb   :  { %s4174_s28 = scalar_lea.vmem %s46_s18, 1024  ;;  %p4179_p4 = scmp.lt.s32.totalorder %s46_s18, %s46_s18 }
   0xc   :  { %p4175_p3 = scmp.ne.s32.totalorder %s46_s18, %s4174_s28  ;;  %p4180_p5 = scmp.lt.s32.totalorder %s4174_s28, %s4174_s28 }
   0xe   :  { %p4181_p6 = por %p4180_p5, %p4179_p4 }
  0x10   :  { %p4182_p7 = pnand %p4181_p6, %p4175_p3 }
  0x12   :  { %4185 = shalt.err (!%p4182_p7)
}
  0x13   :  { %s4284_s29 = smov 128   ;;  %s4285_s30 = smov 8  }
  0x14   :  { %51 = dma.hbm_to_vmem [thread:$0]  %s5316_s5, 1024, %s46_s18, [#allocation8], %s4284_s29, %s4284_s29, %s4285_s30  }
  0x15   :  { %s4186_s16 = scalar_lea.hbm %s5315_s4, 1024 }
  0x16   :  { %p4187_p8 = scmp.ne.s32.totalorder %s5315_s4, %s4186_s16  ;;  %p4190_p9 = scmp.lt.u32.totalorder %s4186_s16, %s5315_s4 }
  0x18   :  { %p4192_p10 = pnand %p4190_p9, %p4187_p8 }
  0x1a   :  { %4195 = shalt.err (!%p4192_p10)
}
  0x1b   :  { %s4196_s23 = scalar_lea.vmem %s4357_s20, 1024  ;;  %p4201_p12 = scmp.lt.s32.totalorder %s4357_s20, %s4357_s20 }
  0x1c   :  { %p4197_p11 = scmp.ne.s32.totalorder %s4357_s20, %s4196_s23  ;;  %p4202_p13 = scmp.lt.s32.totalorder %s4196_s23, %s4196_s23 }
  0x1e   :  { %p4203_p0 = por %p4202_p13, %p4201_p12 }
  0x20   :  { %p4204_p1 = pnand %p4203_p0, %p4197_p11 }
  0x22   :  { %4207 = shalt.err (!%p4204_p1)
}
  0x23   :  { %39 = dma.hbm_to_vmem [thread:$0]  %s5315_s4, 1024, %s4357_s20, [#allocation5], %s4284_s29, %s4284_s29, %s4285_s30  }
  0x24   :  { %s4286_s24 = smov [#allocation9]   ;;  %s4287_s26 = smov [#allocation10]  }
  0x25   :  { %s62_s25 = sshll.u32 %s4286_s24, 4  ;;  %s74_s27 = sshll.u32 %s4287_s26, 4  ;;  %s63_s25 = int_to_ptr.vmem [resolvable:$true] %s62_s25  ;;  %s75_s27 = int_to_ptr.vmem [resolvable:$true] %s74_s27 }
  0x26   :  { %s4208_s13 = scalar_lea.hbm %s5319_s8, 16 }
  0x27   :  { %p4209_p2 = scmp.ne.s32.totalorder %s5319_s8, %s4208_s13  ;;  %p4212_p3 = scmp.lt.u32.totalorder %s4208_s13, %s5319_s8 }
  0x29   :  { %p4214_p4 = pnand %p4212_p3, %p4209_p2 }
  0x2b   :  { %4217 = shalt.err (!%p4214_p4)
}
  0x2c   :  { %s4218_s4 = scalar_lea.vmem %s63_s25, 16  ;;  %s4222_s20 = scalar_lea.vmem %s63_s25, 32 }
  0x2d   :  { %p4219_p5 = scmp.ne.s32.totalorder %s63_s25, %s4218_s4  ;;  %p4223_p6 = scmp.lt.s32.totalorder %s63_s25, %s63_s25 }
  0x2e   :  { %p4224_p7 = scmp.lt.s32.totalorder %s4222_s20, %s4218_s4 }
  0x30   :  { %p4225_p8 = por %p4224_p7, %p4223_p6 }
  0x32   :  { %p4226_p9 = pnand %p4225_p8, %p4219_p5 }
  0x34   :  { %4229 = shalt.err (!%p4226_p9)
}
  0x35   :  { %65 = dma.hbm_to_vmem [thread:$0]  %s5319_s8, 16, %s63_s25, [#allocation8]  }
  0x36   :  { %s4230_s22 = scalar_lea.hbm %s5321_s10, 16 }
  0x37   :  { %p4231_p10 = scmp.ne.s32.totalorder %s5321_s10, %s4230_s22  ;;  %p4234_p11 = scmp.lt.u32.totalorder %s4230_s22, %s5321_s10 }
  0x39   :  { %p4236_p12 = pnand %p4234_p11, %p4231_p10 }
  0x3b   :  { %4239 = shalt.err (!%p4236_p12)
}
  0x3c   :  { %s4240_s26 = scalar_lea.vmem %s75_s27, 16  ;;  %s4244_s28 = scalar_lea.vmem %s75_s27, 32 }
  0x3d   :  { %p4241_p13 = scmp.ne.s32.totalorder %s75_s27, %s4240_s26  ;;  %p4245_p0 = scmp.lt.s32.totalorder %s75_s27, %s75_s27 }
  0x3e   :  { %p4246_p1 = scmp.lt.s32.totalorder %s4244_s28, %s4240_s26 }
  0x40   :  { %p4247_p2 = por %p4246_p1, %p4245_p0 }
  0x42   :  { %p4248_p3 = pnand %p4247_p2, %p4241_p13 }
  0x44   :  { %4251 = shalt.err (!%p4248_p3)
}
  0x45   :  { %77 = dma.hbm_to_vmem [thread:$0]  %s5321_s10, 16, %s75_s27, [#allocation11]  }
  0x46   :  { %4274 = dma.done.wait [#allocation5], 1024  }
  0x47   :  { %4275 = vsyncadd [#allocation5], 4294966272 }
  0x48   :  { %4276 = dma.done.wait [#allocation8], 1040  }
  0x49   :  { %4277 = vsyncadd [#allocation8], 4294966256 }
  0x4a   :  { %4278 = dma.done.wait [#allocation11], 16  }
  0x4b   :  { %4279 = vsyncadd [#allocation11], 4294967280  ;;  %v4288_v0 = vmov 0   ;;  %v91_v1 = vld [vmem:[%s5311_s0] sm:$0xff]  ;;  %v93_v2 = vld [vmem:[%s5311_s0 + $0x10] sm:$0xff]  ;;  %v95_v21 = vlaneseq  ;;  %v4289_v26 = vmov 0.0  }
  0x4c   :  { %3964 = vset.pattern.permute.xlu0 %v4288_v0  ;;  %3965 = vset.pattern.permute.xlu1 %v4288_v0  ;;  %v92_v3 = vld [vmem:[%s5311_s0 + $0x8] sm:$0xff]  ;;  %v94_v4 = vld [vmem:[%s5311_s0 + $0x18] sm:$0xff]  ;;  %vm220_vm2 = vcmask 523264   ;;  %v168_v41 = vld [vmem:[%s5314_s3] sm:$0x3]  ;;  %s4292_s3 = smov 64  }
  0x4d   :  { %259 = vmatprep.mubr.bf16.mxu0 %v4288_v0  ;;  %619 = vmatprep.mubr.bf16.mxu1 %v4288_v0  ;;  %v3966_v5 = vld [vmem:[%s5312_s1 + $0x4] ss:$8 sps:$4 sm:$0xff]   ;;  %v3968_v6 = vld [vmem:[%s5312_s1] ss:$8 sps:$4 sm:$0xff]   ;;  %v3969_v7 = vld [vmem:[%s5312_s1 + $0x14] ss:$8 sps:$4 sm:$0xff]  }
  0x4e   :  { %98 = vperm.xlu0 %3964, %v91_v1   ;;  %104 = vperm.xlu1 %3965, %v93_v2   ;;  %v3971_v8 = vld [vmem:[%s5312_s1 + $0x10] ss:$8 sps:$4 sm:$0xff]   ;;  %v3972_v9 = vld [vmem:[%s5312_s1 + $0x24] ss:$8 sps:$4 sm:$0xff]   ;;  %v3974_v10 = vld [vmem:[%s5312_s1 + $0x20] ss:$8 sps:$4 sm:$0xff]  }
  0x4f   :  { %227 = vmatprep.subr.bf16.mxu0 %v3966_v5  ;;  %v3975_v11 = vld [vmem:[%s5312_s1 + $0x34] ss:$8 sps:$4 sm:$0xff]   ;;  %v4452_v12 = vld [vmem:[%s5313_s2 + $0x4] ss:$8 sps:$4 sm:$0xff]   ;;  %v4457_v13 = vld [vmem:[%s5313_s2] ss:$8 sps:$4 sm:$0xff]  }
  0x50   :  { %228 = vmatpush1.bf16.msra.mxu0 %v3968_v6  ;;  %v4462_v14 = vld [vmem:[%s5313_s2 + $0x14] ss:$8 sps:$4 sm:$0xff]   ;;  %v4467_v15 = vld [vmem:[%s5313_s2 + $0x10] ss:$8 sps:$4 sm:$0xff]   ;;  %587 = vmatprep.subr.bf16.mxu1 %v4452_v12  ;;  %v4479_v17 = vld [vmem:[%s5313_s2 + $0x24] ss:$8 sps:$4 sm:$0xff]  }
  0x51   :  { %229 = vmatprep.subr.bf16.mxu0 %v3969_v7  ;;  %v3977_v16 = vld [vmem:[%s5312_s1 + $0x30] ss:$8 sps:$4 sm:$0xff]   ;;  %588 = vmatpush1.bf16.msra.mxu1 %v4457_v13  ;;  %v4484_v18 = vld [vmem:[%s5313_s2 + $0x20] ss:$8 sps:$4 sm:$0xff]   ;;  %v4489_v19 = vld [vmem:[%s5313_s2 + $0x34] ss:$8 sps:$4 sm:$0xff]  }
  0x52   :  { %101 = vperm.xlu0 %3964, %v92_v3   ;;  %107 = vperm.xlu1 %3965, %v94_v4   ;;  %v4494_v20 = vld [vmem:[%s5313_s2 + $0x30] ss:$8 sps:$4 sm:$0xff]   ;;  %v96_v22 = vand.u32 127, %v95_v21  ;;  %v4534_v39 = vshrl.u32 %v95_v21, 7  ;;  %v4290_v43 = vmov 1983009808  }
  0x53   :  { %589 = vmatprep.subr.bf16.mxu1 %v4462_v14  ;;  %v318_v44 = vunpack.c.l.s4 %v4290_v43  ;;  %vm685_vm8 = vcmask 254976   ;;  %vm687_vm9 = vcmask 517376   ;;  %vm4293_vm10 = vmmov 0   ;;  %s4296_s26 = smov [#allocation12]  }
  0x54   :  { %230 = vmatpush1.bf16.msra.mxu0 %v3971_v8  ;;  %v172_v40 = vsub.s32 0, %v4534_v39  ;;  %v4540_v42 = vadd.s32 128, %v96_v22  ;;  %v176_v46 = vsub.s32 1, %v4534_v39  ;;  %v128_v51 = vand.u32 63, %v96_v22  ;;  %s3814_s28 = sshll.u32 %s4296_s26, 4  ;;  %s3815_s28 = int_to_ptr.vmem [resolvable:$true] %s3814_s28 }
  0x55   :  { %231 = vmatprep.subr.bf16.mxu0 %v3972_v9  ;;  %590 = vmatpush1.bf16.msra.mxu1 %v4467_v15  ;;  %v319_v53 = vunpack.c.0.s8 %v318_v44  ;;  %vm3653_vm11 = vcmask 261120   ;;  %vm3806_vm12 = vcmask 33792   ;;  %p4257_p5 = scmp.lt.s32.totalorder %s3815_s28, %s3815_s28 }
  0x56   :  { %591 = vmatprep.subr.bf16.mxu1 %v4479_v17  ;;  %v173_v47 = vrot.slane %v168_v41, %v172_v40  ;;  %v135_v52 = vand.u32 63, %v4540_v42  ;;  %v177_v54 = vrot.slane %v168_v41, %v176_v46  ;;  %vm4550_vm5 = vcmp.lt.s32.totalorder %v128_v51, 32 }
  0x57   :  { %v4559_v60 = vsub.s32 %v319_v53, %v4534_v39  ;;  %vm153_vm7 = vcmp.lt.s32.totalorder %v4540_v42, 192 }
  0x58   :  { %232 = vmatpush1.bf16.msra.mxu0 %v3974_v10  ;;  %vm4554_vm6 = vcmp.lt.s32.totalorder %v135_v52, 32 }
  0x59   :  { %233 = vmatprep.subr.bf16.mxu0 %v3975_v11  ;;  %592 = vmatpush1.bf16.msra.mxu1 %v4484_v18 }
  0x5a   :  { %593 = vmatprep.subr.bf16.mxu1 %v4489_v19 }
  0x5c   :  { %234 = vmatpush1.bf16.msra.mxu0 %v3977_v16 }
  0x5d   :  { %694 = vmatprep.subr.bf16.mxu0 %v4452_v12  ;;  %594 = vmatpush1.bf16.msra.mxu1 %v4494_v20 }
  0x5e   :  { %777 = vmatprep.subr.bf16.mxu1 %v4452_v12 }
  0x60   :  { %620 = vmatmul.mubr.bf16.vlgmr.msra.gmra.mrb[0].mxu1 %v4288_v0 }
  0x61   :  { %778 = vmatpush1.bf16.msra.mxu1 %v4457_v13  ;;  %809 = vmatprep.mubr.bf16.mxu1 %v4288_v0 }
  0x62   :  { %779 = vmatprep.subr.bf16.mxu1 %v4462_v14 }
  0x65   :  { %780 = vmatpush1.bf16.msra.mxu1 %v4467_v15 }
  0x66   :  { %781 = vmatprep.subr.bf16.mxu1 %v4479_v17 }
  0x69   :  { %782 = vmatpush1.bf16.msra.mxu1 %v4484_v18 }
  0x6a   :  { %783 = vmatprep.subr.bf16.mxu1 %v4489_v19 }
  0x6d   :  { %784 = vmatpush1.bf16.msra.mxu1 %v4494_v20 }
  0x6e   :  { %943 = vmatprep.subr.bf16.mxu1 %v4452_v12 }
  0xcd   :  { %v99_v23 = vpop.permute.xlu0 %98  ;;  %v105_v24 = vpop.permute.xlu1 %104 }
  0xce   :  { %vm109_vm0 = vcmp.eq.s32.totalorder %v96_v22, %v99_v23  ;;  %vm111_vm3 = vcmp.eq.s32.totalorder %v96_v22, %v105_v24 }
  0xcf   :  { %v3825_v27 = vsel %vm109_vm0, 1.0, %v4289_v26  ;;  %v3827_v31 = vsel %vm111_vm3, 1.0, %v4289_v26 }
  0xd1   :  { %v102_v25 = vpop.permute.xlu0 %101  ;;  %v108_v29 = vpop.permute.xlu1 %107 }
  0xd2   :  { %vm110_vm1 = vcmp.eq.s32.totalorder %v96_v22, %v102_v25  ;;  %vm112_vm4 = vcmp.eq.s32.totalorder %v96_v22, %v108_v29 }
  0xd3   :  { %v3826_v28 = vsel %vm110_vm1, 1.0, %v4289_v26  ;;  %v3828_v32 = vsel %vm112_vm4, 1.0, %v4289_v26 }
  0xd4   :  { %v121_v30 = vpack.c.bf16 %v3826_v28, %v3825_v27  ;;  %v122_v33 = vpack.c.bf16 %v3828_v32, %v3827_v31 }
  0xd6   :  { %3837 = vmatmul.mubr.msk.bf16.vlgmr.msra.gmra.mrb[0].mxu0 %vm220_vm2, %v121_v30 }
  0xd7   :  { %269 = vmatprep.mubr.bf16.mxu0 %v4288_v0  ;;  %695 = vmatpush1.bf16.msra.mxu0 %v4457_v13 }
  0xd8   :  { %696 = vmatprep.subr.bf16.mxu0 %v4462_v14 }
  0xdb   :  { %697 = vmatpush1.bf16.msra.mxu0 %v4467_v15 }
  0xdc   :  { %698 = vmatprep.subr.bf16.mxu0 %v4479_v17 }
  0xde   :  { %3838 = vmatmul.mubr.msk.bf16.gmra.mrb[4].mxu0 %vm220_vm2, %v122_v33 }
  0xdf   :  { %699 = vmatpush1.bf16.msra.mxu0 %v4484_v18  ;;  %726 = vmatprep.mubr.bf16.mxu0 %v4288_v0 }
  0xe0   :  { %700 = vmatprep.subr.bf16.mxu0 %v4489_v19 }
  0xe3   :  { %701 = vmatpush1.bf16.msra.mxu0 %v4494_v20 }
  0xe4   :  { %860 = vmatprep.subr.bf16.mxu0 %v4452_v12 }
 0x133   :  { %v4528_v34 = vpop.f32.mrb[0].mxu1 }
 0x134   :  { %v4530_v35 = vpop.f32.mrb[1].mxu1 }
 0x135   :  { %v625_v36 = vpop.f32.mrb[2].mxu1  ;;  %v630_v38 = vcombine.low %v4528_v34, %v4530_v35 }
 0x136   :  { %v626_v37 = vpop.f32.mrb[3].mxu1 }
 0x1a9   :  { %v261_v45 = vpop.f32.mrb[0].mxu0 }
 0x1aa   :  { %v263_v48 = vpop.f32.mrb[1].mxu0  ;;  %v4548_v55 = vadd.f32 %v261_v45, %v173_v47 }
 0x1ab   :  { %v265_v49 = vpop.f32.mrb[2].mxu0  ;;  %v4561_v61 = vadd.f32 %v263_v48, %v177_v54 }
 0x1ac   :  { %v267_v50 = vpop.f32.mrb[3].mxu0  ;;  %v266_v56 = vadd.f32 %v265_v49, %v173_v47  ;;  %v481_v63 = vrot.slane %v4548_v55, 6  ;;  %v500_v5 = vrot.slane %v4548_v55, 2 }
 0x1ad   :  { %v268_v57 = vadd.f32 %v267_v50, %v177_v54  ;;  %v482_v52 = vrot.slane %v4561_v61, 6  ;;  %v501_v53 = vrot.slane %v4561_v61, 2 }
 0x1ae   :  { %v417_v1 = vrot.slane %v266_v56, 6  ;;  %v436_v2 = vrot.slane %v266_v56, 2 }
 0x1af   :  { %v418_v6 = vrot.slane %v268_v57, 6  ;;  %v437_v7 = vrot.slane %v268_v57, 2 }
 0x1b1   :  { %v271_v62 = vpop.f32.mrb[4].mxu0 }
 0x1b2   :  { %v272_v3 = vadd.f32 %v271_v62, %v173_v47  ;;  %v273_v4 = vpop.f32.mrb[5].mxu0 }
 0x1b3   :  { %v274_v8 = vadd.f32 %v273_v4, %v177_v54  ;;  %v275_v9 = vpop.f32.mrb[6].mxu0 }
 0x1b4   :  { %v353_v10 = vrot.slane %v272_v3, 6  ;;  %v372_v11 = vrot.slane %v272_v3, 2  ;;  %v421_v16 = vsel %vm4550_vm5, %v272_v3, %v417_v1  ;;  %v440_v21 = vsel %vm4550_vm5, %v272_v3, %v436_v2  ;;  %v277_v22 = vpop.f32.mrb[7].mxu0 }
 0x1b5   :  { %v354_v23 = vrot.slane %v274_v8, 6  ;;  %v373_v24 = vrot.slane %v274_v8, 2  ;;  %v422_v25 = vsel %vm4554_vm6, %v274_v8, %v418_v6  ;;  %v441_v27 = vsel %vm4554_vm6, %v274_v8, %v437_v7 }
 0x1b6   :  { %v357_v28 = vsel %vm4550_vm5, %v266_v56, %v353_v10  ;;  %v376_v29 = vsel %vm4550_vm5, %v266_v56, %v372_v11  ;;  %v425_v30 = vcombine.low %v421_v16, %v422_v25  ;;  %v444_v31 = vcombine.low %v440_v21, %v441_v27 }
 0x1b7   :  { %v358_v32 = vsel %vm4554_vm6, %v268_v57, %v354_v23  ;;  %v377_v33 = vsel %vm4554_vm6, %v268_v57, %v373_v24  ;;  %v456_v36 = vcombine.high %v421_v16, %v422_v25  ;;  %v467_v37 = vcombine.high %v440_v21, %v441_v27 }
 0x1b8   :  { %v361_v41 = vcombine.low %v357_v28, %v358_v32  ;;  %v380_v43 = vcombine.low %v376_v29, %v377_v33  ;;  %v392_v44 = vcombine.high %v357_v28, %v358_v32  ;;  %v403_v45 = vcombine.high %v376_v29, %v377_v33  ;;  %3843 = vst.sshfl [vmem:[#allocation2 + $0x20] sm:$0x33 pattern:$0x76325410] %v425_v30 }
 0x1b9   :  { %v451_v48 = vrot.slane %v444_v31, %v4559_v60  ;;  %3844 = vst.sshfl [vmem:[#allocation2 + $0x28] sm:$0x33 pattern:$0x76325410] %v456_v36  ;;  %v474_v49 = vrot.slane %v467_v37, %v4559_v60  ;;  %v276_v50 = vadd.f32 %v275_v9, %v173_v47  ;;  %v278_v51 = vadd.f32 %v277_v22, %v177_v54 }
 0x1ba   :  { %3841 = vst.sshfl [vmem:[#allocation2 + $0x10] sm:$0x33 pattern:$0x76325410] %v361_v41  ;;  %v387_v56 = vrot.slane %v380_v43, %v4559_v60  ;;  %v410_v57 = vrot.slane %v403_v45, %v4559_v60  ;;  %v637_v41 = vrot.slane %v630_v38, %v4559_v60  ;;  %v4291_v45 = vmov 0.5  }
 0x1bb   :  { %3842 = vst.sshfl [vmem:[#allocation2 + $0x18] sm:$0x33 pattern:$0x76325410] %v392_v44  ;;  %v452_v62 = vcombine.high %v451_v48, %v451_v48  ;;  %v475_v1 = vcombine.high %v474_v49, %v474_v49  ;;  %v290_v2 = vrot.slane %v276_v50, 6  ;;  %v308_v3 = vrot.slane %v276_v50, 2 }
 0x1bc   :  { %v388_v4 = vcombine.high %v387_v56, %v387_v56  ;;  %v411_v6 = vcombine.high %v410_v57, %v410_v57  ;;  %v485_v47 = vsel %vm4550_vm5, %v276_v50, %v481_v63  ;;  %v504_v54 = vsel %vm4550_vm5, %v276_v50, %v500_v5 }
 0x1bd   :  { %455 = vst [vmem:[#allocation2 + $0x24] sm:$0xf] %v452_v62  ;;  %478 = vst [vmem:[#allocation2 + $0x2c] sm:$0xf] %v475_v1  ;;  %v294_v7 = vsel %vm4550_vm5, %v4548_v55, %v290_v2  ;;  %v312_v8 = vsel %vm4550_vm5, %v4548_v55, %v308_v3  ;;  %v291_v9 = vrot.slane %v278_v51, 6  ;;  %v309_v10 = vrot.slane %v278_v51, 2 }
 0x1be   :  { %391 = vst [vmem:[#allocation2 + $0x14] sm:$0xf] %v388_v4  ;;  %414 = vst [vmem:[#allocation2 + $0x1c] sm:$0xf] %v411_v6  ;;  %v486_v63 = vsel %vm4554_vm6, %v278_v51, %v482_v52  ;;  %v505_v5 = vsel %vm4554_vm6, %v278_v51, %v501_v53  ;;  %v157_v48 = vsel %vm153_vm7, 1.0, %v4291_v45  ;;  %v159_v49 = vsel %vm153_vm7, 0.0, %v4291_v45 }
 0x1bf   :  { %v295_v11 = vsel %vm4554_vm6, %v4561_v61, %v291_v9  ;;  %v313_v16 = vsel %vm4554_vm6, %v4561_v61, %v309_v10  ;;  %v489_v21 = vcombine.low %v485_v47, %v486_v63  ;;  %v508_v55 = vcombine.low %v504_v54, %v505_v5 }
 0x1c0   :  { %v298_v22 = vcombine.low %v294_v7, %v295_v11  ;;  %v316_v23 = vcombine.low %v312_v8, %v313_v16  ;;  %v328_v24 = vcombine.high %v294_v7, %v295_v11  ;;  %v339_v25 = vcombine.high %v312_v8, %v313_v16 }
 0x1c1   :  { %3845 = vst.sshfl [vmem:[#allocation2 + $0x30] sm:$0x33 pattern:$0x76325410] %v489_v21  ;;  %v515_v27 = vrot.slane %v508_v55, %v4559_v60  ;;  %v520_v28 = vcombine.high %v485_v47, %v486_v63  ;;  %v531_v29 = vcombine.high %v504_v54, %v505_v5  ;;  %v643_v50 = vcombine.low %v4291_v45, %v157_v48 }
 0x1c2   :  { %3839 = vst.sshfl [vmem:[#allocation2] sm:$0x33 pattern:$0x76325410] %v298_v22  ;;  %v323_v30 = vrot.slane %v316_v23, %v4559_v60  ;;  %v346_v31 = vrot.slane %v339_v25, %v4559_v60  ;;  %v655_v51 = vcombine.low %v4291_v45, %v159_v49 }
 0x1c3   :  { %3840 = vst.sshfl [vmem:[#allocation2 + $0x8] sm:$0x33 pattern:$0x76325410] %v328_v24  ;;  %v516_v32 = vcombine.high %v515_v27, %v515_v27  ;;  %v538_v61 = vrot.slane %v531_v29, %v4559_v60  ;;  %v4617_v52 = vrot.slane %v643_v50, %v4559_v60 }
 0x1c4   :  { %3846 = vst.sshfl [vmem:[#allocation2 + $0x38] sm:$0x33 pattern:$0x76325410] %v520_v28  ;;  %v324_v33 = vcombine.high %v323_v30, %v323_v30  ;;  %v347_v36 = vcombine.high %v346_v31, %v346_v31  ;;  %v4620_v53 = vrot.slane %v655_v51, %v4559_v60 }
 0x1c5   :  { %519 = vst [vmem:[#allocation2 + $0x34] sm:$0xf] %v516_v32  ;;  %v539_v37 = vcombine.high %v538_v61, %v538_v61 }
 0x1c6   :  { %327 = vst [vmem:[#allocation2 + $0x4] sm:$0xf] %v324_v33  ;;  %350 = vst [vmem:[#allocation2 + $0xc] sm:$0xf] %v347_v36 }
 0x1c7   :  { %542 = vst [vmem:[#allocation2 + $0x3c] sm:$0xf] %v539_v37 }
 0x1c9   :  { %v543_v43 = vld [vmem:[#allocation2] sm:$0xf] }
 0x1ca   :  { %v639_v44 = vadd.f32 %v637_v41, %v543_v43  ;;  %v772_v48 = vld [vmem:[#allocation2 + $0x8] sm:$0xf] }
 0x1cc   :  { %4020 = vtanh.f32 %v639_v44 }
 0x1cd   :  { %v689_v11 = vld [vmem:[#allocation2 + $0x4] sm:$0xf] }
 0x1d6   :  { %v4021_v56 = vpop.eup %4020 }
 0x1d7   :  { %v652_v34 = vmul.f32 %v4021_v56, %v4617_v52 }
 0x1d9   :  { %v664_v35 = vadd.f32 %v4620_v53, %v652_v34 }
 0x1db   :  { %676 = vrot.lane.b32.xlu1 %v664_v35, %s4292_s3  ;;  %v667_v38 = vrot.slane %v664_v35, 2  ;;  %v665_v57 = vmul.f32 0.0, %v664_v35 }
 0x1dd   :  { %v669_v42 = vmul.f32 %v667_v38, %v664_v35 }
 0x1df   :  { %671 = vrot.lane.b32.xlu0 %v669_v42, %s4292_s3 }
 0x24d   :  { %v677_v3 = vpop.permute.xlu1 %676 }
 0x24e   :  { %v678_v4 = vrot.slane %v677_v3, 2 }
 0x251   :  { %v672_v62 = vpop.permute.xlu0 %671 }
 0x252   :  { %v674_v1 = vadd.f32 %v672_v62, %v665_v57 }
 0x254   :  { %4022 = vtanh.f32 %v674_v1 }
 0x25e   :  { %v4023_v2 = vpop.eup %4022 }
 0x25f   :  { %681 = vrot.lane.b32.xlu0 %v4023_v2, %s4292_s3 }
 0x2d1   :  { %v682_v6 = vpop.permute.xlu0 %681 }
 0x2d2   :  { %v684_v47 = vmul.f32 %v682_v6, %v678_v4 }
 0x2d4   :  { %686 = vst.msk [vmem:[#allocation3] sm:$0x3] %vm685_vm8, %v684_v47  ;;  %v690_v54 = vpack.c.bf16 %v684_v47, %v684_v47 }
 0x2d5   :  { %688 = vst.msk [vmem:[#allocation3 + $0x1e] sm:$0x3] %vm687_vm9, %v684_v47 }
 0x2d6   :  { %3855 = vmatmul.mubr.msk.bf16.vlgmr.msra.gmra.mrb[8].mxu0 %vm220_vm2, %v690_v54 }
 0x2d7   :  { %861 = vmatpush1.bf16.msra.mxu0 %v4457_v13  ;;  %892 = vmatprep.mubr.bf16.mxu0 %v4288_v0 }
 0x2d8   :  { %862 = vmatprep.subr.bf16.mxu0 %v4462_v14 }
 0x2db   :  { %863 = vmatpush1.bf16.msra.mxu0 %v4467_v15 }
 0x2dc   :  { %864 = vmatprep.subr.bf16.mxu0 %v4479_v17 }
 0x2df   :  { %865 = vmatpush1.bf16.msra.mxu0 %v4484_v18 }
 0x2e0   :  { %866 = vmatprep.subr.bf16.mxu0 %v4489_v19 }
 0x2e3   :  { %867 = vmatpush1.bf16.msra.mxu0 %v4494_v20 }
 0x2e4   :  { %1026 = vmatprep.subr.bf16.mxu0 %v4452_v12 }
 0x3a9   :  { %v728_v7 = vpop.f32.mrb[8].mxu0 }
 0x3aa   :  { %v730_v8 = vpop.f32.mrb[9].mxu0 }
 0x3ab   :  { %v737_v9 = vcombine.low %v728_v7, %v730_v8  ;;  %v732_v10 = vpop.f32.mrb[10].mxu0 }
 0x3ac   :  { %v733_v63 = vpop.f32.mrb[11].mxu0 }
 0x3ad   :  { %v744_v5 = vrot.slane %v737_v9, %v4559_v60  ;;  %v855_v63 = vld [vmem:[#allocation2 + $0xc] sm:$0xf] }
 0x3af   :  { %v746_v16 = vadd.f32 %v744_v5, %v689_v11 }
 0x3b1   :  { %4024 = vtanh.f32 %v746_v16 }
 0x3bb   :  { %v4025_v21 = vpop.eup %4024 }
 0x3bc   :  { %v748_v55 = vmul.f32 %v4025_v21, %v4617_v52 }
 0x3be   :  { %v749_v22 = vadd.f32 %v748_v55, %v4620_v53 }
 0x3c0   :  { %761 = vrot.lane.b32.xlu0 %v749_v22, %s4292_s3  ;;  %v752_v23 = vrot.slane %v749_v22, 2  ;;  %v750_v25 = vmul.f32 %v749_v22, %v674_v1 }
 0x3c2   :  { %v754_v24 = vmul.f32 %v752_v23, %v749_v22 }
 0x3c4   :  { %756 = vrot.lane.b32.xlu1 %v754_v24, %s4292_s3 }
 0x432   :  { %v762_v30 = vpop.permute.xlu0 %761 }
 0x433   :  { %v763_v31 = vrot.slane %v762_v30, 2 }
 0x436   :  { %v757_v27 = vpop.permute.xlu1 %756 }
 0x437   :  { %v759_v28 = vadd.f32 %v757_v27, %v750_v25 }
 0x439   :  { %4026 = vtanh.f32 %v759_v28 }
 0x443   :  { %v4027_v29 = vpop.eup %4026 }
 0x444   :  { %766 = vrot.lane.b32.xlu1 %v4027_v29, %s4292_s3 }
 0x4b6   :  { %v767_v32 = vpop.permute.xlu1 %766 }
 0x4b7   :  { %v769_v61 = vmul.f32 %v767_v32, %v763_v31 }
 0x4b9   :  { %770 = vst.msk [vmem:[#allocation3 + $0x2] sm:$0x3] %vm685_vm8, %v769_v61  ;;  %v773_v33 = vpack.c.bf16 %v769_v61, %v769_v61 }
 0x4ba   :  { %771 = vst.msk [vmem:[#allocation3 + $0x1c] sm:$0x3] %vm687_vm9, %v769_v61 }
 0x4bb   :  { %3856 = vmatmul.mubr.msk.bf16.vlgmr.msra.gmra.mrb[4].mxu1 %vm220_vm2, %v773_v33 }
 0x4bc   :  { %944 = vmatpush1.bf16.msra.mxu1 %v4457_v13  ;;  %975 = vmatprep.mubr.bf16.mxu1 %v4288_v0 }
 0x4bd   :  { %945 = vmatprep.subr.bf16.mxu1 %v4462_v14 }
 0x4c0   :  { %946 = vmatpush1.bf16.msra.mxu1 %v4467_v15 }
 0x4c1   :  { %947 = vmatprep.subr.bf16.mxu1 %v4479_v17 }
 0x4c4   :  { %948 = vmatpush1.bf16.msra.mxu1 %v4484_v18 }
 0x4c5   :  { %949 = vmatprep.subr.bf16.mxu1 %v4489_v19 }
 0x4c8   :  { %950 = vmatpush1.bf16.msra.mxu1 %v4494_v20 }
 0x4c9   :  { %1109 = vmatprep.subr.bf16.mxu1 %v4452_v12 }
 0x58e   :  { %v811_v36 = vpop.f32.mrb[4].mxu1 }
 0x58f   :  { %v813_v37 = vpop.f32.mrb[5].mxu1 }
 0x590   :  { %v820_v41 = vcombine.low %v811_v36, %v813_v37  ;;  %v815_v43 = vpop.f32.mrb[6].mxu1 }
 0x591   :  { %v816_v44 = vpop.f32.mrb[7].mxu1 }
 0x592   :  { %v827_v45 = vrot.slane %v820_v41, %v4559_v60  ;;  %v938_v44 = vld [vmem:[#allocation2 + $0x10] sm:$0xf] }
 0x594   :  { %v829_v49 = vadd.f32 %v827_v45, %v772_v48 }
 0x596   :  { %4028 = vtanh.f32 %v829_v49 }
 0x5a0   :  { %v4029_v50 = vpop.eup %4028 }
 0x5a1   :  { %v831_v51 = vmul.f32 %v4029_v50, %v4617_v52 }
 0x5a3   :  { %v832_v56 = vadd.f32 %v831_v51, %v4620_v53 }
 0x5a5   :  { %844 = vrot.lane.b32.xlu1 %v832_v56, %s4292_s3  ;;  %v835_v34 = vrot.slane %v832_v56, 2  ;;  %v833_v38 = vmul.f32 %v832_v56, %v759_v28 }
 0x5a7   :  { %v837_v35 = vmul.f32 %v835_v34, %v832_v56 }
 0x5a9   :  { %839 = vrot.lane.b32.xlu0 %v837_v35, %s4292_s3 }
 0x617   :  { %v845_v1 = vpop.permute.xlu1 %844 }
 0x618   :  { %v846_v2 = vrot.slane %v845_v1, 2 }
 0x61b   :  { %v840_v42 = vpop.permute.xlu0 %839 }
 0x61c   :  { %v842_v57 = vadd.f32 %v840_v42, %v833_v38 }
 0x61e   :  { %4030 = vtanh.f32 %v842_v57 }
 0x628   :  { %v4031_v62 = vpop.eup %4030 }
 0x629   :  { %849 = vrot.lane.b32.xlu0 %v4031_v62, %s4292_s3 }
 0x69b   :  { %v850_v3 = vpop.permute.xlu0 %849 }
 0x69c   :  { %v852_v4 = vmul.f32 %v850_v3, %v846_v2 }
 0x69e   :  { %853 = vst.msk [vmem:[#allocation3 + $0x4] sm:$0x3] %vm685_vm8, %v852_v4  ;;  %v856_v6 = vpack.c.bf16 %v852_v4, %v852_v4 }
 0x69f   :  { %854 = vst.msk [vmem:[#allocation3 + $0x1a] sm:$0x3] %vm687_vm9, %v852_v4 }
 0x6a0   :  { %3857 = vmatmul.mubr.msk.bf16.vlgmr.msra.gmra.mrb[12].mxu0 %vm220_vm2, %v856_v6 }
 0x6a1   :  { %1027 = vmatpush1.bf16.msra.mxu0 %v4457_v13  ;;  %1058 = vmatprep.mubr.bf16.mxu0 %v4288_v0 }
 0x6a2   :  { %1028 = vmatprep.subr.bf16.mxu0 %v4462_v14 }
 0x6a5   :  { %1029 = vmatpush1.bf16.msra.mxu0 %v4467_v15 }
 0x6a6   :  { %1030 = vmatprep.subr.bf16.mxu0 %v4479_v17 }
 0x6a9   :  { %1031 = vmatpush1.bf16.msra.mxu0 %v4484_v18 }
 0x6aa   :  { %1032 = vmatprep.subr.bf16.mxu0 %v4489_v19 }
 0x6ad   :  { %1033 = vmatpush1.bf16.msra.mxu0 %v4494_v20 }
 0x6ae   :  { %1192 = vmatprep.subr.bf16.mxu0 %v4452_v12 }
 0x773   :  { %v894_v47 = vpop.f32.mrb[12].mxu0 }
 0x774   :  { %v896_v54 = vpop.f32.mrb[13].mxu0 }
 0x775   :  { %v903_v7 = vcombine.low %v894_v47, %v896_v54  ;;  %v898_v8 = vpop.f32.mrb[14].mxu0 }
 0x776   :  { %v899_v9 = vpop.f32.mrb[15].mxu0 }
 0x777   :  { %v910_v10 = vrot.slane %v903_v7, %v4559_v60  ;;  %v1021_v9 = vld [vmem:[#allocation2 + $0x14] sm:$0xf] }
 0x779   :  { %v912_v5 = vadd.f32 %v910_v10, %v855_v63 }
 0x77b   :  { %4032 = vtanh.f32 %v912_v5 }
 0x785   :  { %v4033_v11 = vpop.eup %4032 }
 0x786   :  { %v914_v16 = vmul.f32 %v4033_v11, %v4617_v52 }
 0x788   :  { %v915_v21 = vadd.f32 %v914_v16, %v4620_v53 }
 0x78a   :  { %927 = vrot.lane.b32.xlu0 %v915_v21, %s4292_s3  ;;  %v918_v55 = vrot.slane %v915_v21, 2  ;;  %v916_v23 = vmul.f32 %v915_v21, %v842_v57 }
 0x78c   :  { %v920_v22 = vmul.f32 %v918_v55, %v915_v21 }
 0x78e   :  { %922 = vrot.lane.b32.xlu1 %v920_v22, %s4292_s3 }
 0x7fc   :  { %v928_v28 = vpop.permute.xlu0 %927 }
 0x7fd   :  { %v929_v29 = vrot.slane %v928_v28, 2 }
 0x800   :  { %v923_v24 = vpop.permute.xlu1 %922 }
 0x801   :  { %v925_v25 = vadd.f32 %v923_v24, %v916_v23 }
 0x803   :  { %4034 = vtanh.f32 %v925_v25 }
 0x80d   :  { %v4035_v27 = vpop.eup %4034 }
 0x80e   :  { %932 = vrot.lane.b32.xlu1 %v4035_v27, %s4292_s3 }
 0x880   :  { %v933_v30 = vpop.permute.xlu1 %932 }
 0x881   :  { %v935_v31 = vmul.f32 %v933_v30, %v929_v29 }
 0x883   :  { %936 = vst.msk [vmem:[#allocation3 + $0x6] sm:$0x3] %vm685_vm8, %v935_v31  ;;  %v939_v32 = vpack.c.bf16 %v935_v31, %v935_v31 }
 0x884   :  { %937 = vst.msk [vmem:[#allocation3 + $0x18] sm:$0x3] %vm687_vm9, %v935_v31 }
 0x885   :  { %3858 = vmatmul.mubr.msk.bf16.vlgmr.msra.gmra.mrb[8].mxu1 %vm220_vm2, %v939_v32 }
 0x886   :  { %1110 = vmatpush1.bf16.msra.mxu1 %v4457_v13  ;;  %1141 = vmatprep.mubr.bf16.mxu1 %v4288_v0 }
 0x887   :  { %1111 = vmatprep.subr.bf16.mxu1 %v4462_v14 }
 0x88a   :  { %1112 = vmatpush1.bf16.msra.mxu1 %v4467_v15 }
 0x88b   :  { %1113 = vmatprep.subr.bf16.mxu1 %v4479_v17 }
 0x88e   :  { %1114 = vmatpush1.bf16.msra.mxu1 %v4484_v18 }
 0x88f   :  { %1115 = vmatprep.subr.bf16.mxu1 %v4489_v19 }
 0x892   :  { %1116 = vmatpush1.bf16.msra.mxu1 %v4494_v20 }
 0x893   :  { %1275 = vmatprep.subr.bf16.mxu1 %v4452_v12 }
 0x958   :  { %v977_v61 = vpop.f32.mrb[8].mxu1 }
 0x959   :  { %v979_v33 = vpop.f32.mrb[9].mxu1 }
 0x95a   :  { %v986_v36 = vcombine.low %v977_v61, %v979_v33  ;;  %v981_v37 = vpop.f32.mrb[10].mxu1 }
 0x95b   :  { %v982_v41 = vpop.f32.mrb[11].mxu1 }
 0x95c   :  { %v993_v43 = vrot.slane %v986_v36, %v4559_v60  ;;  %v1104_v41 = vld [vmem:[#allocation2 + $0x18] sm:$0xf] }
 0x95e   :  { %v995_v45 = vadd.f32 %v993_v43, %v938_v44 }
 0x960   :  { %4036 = vtanh.f32 %v995_v45 }
 0x96a   :  { %v4037_v48 = vpop.eup %4036 }
 0x96b   :  { %v997_v49 = vmul.f32 %v4037_v48, %v4617_v52 }
 0x96d   :  { %v998_v50 = vadd.f32 %v997_v49, %v4620_v53 }
 0x96f   :  { %1010 = vrot.lane.b32.xlu1 %v998_v50, %s4292_s3  ;;  %v1001_v51 = vrot.slane %v998_v50, 2  ;;  %v999_v34 = vmul.f32 %v998_v50, %v925_v25 }
 0x971   :  { %v1003_v56 = vmul.f32 %v1001_v51, %v998_v50 }
 0x973   :  { %1005 = vrot.lane.b32.xlu0 %v1003_v56, %s4292_s3 }
 0x9e1   :  { %v1011_v57 = vpop.permute.xlu1 %1010 }
 0x9e2   :  { %v1012_v62 = vrot.slane %v1011_v57, 2 }
 0x9e5   :  { %v1006_v35 = vpop.permute.xlu0 %1005 }
 0x9e6   :  { %v1008_v38 = vadd.f32 %v1006_v35, %v999_v34 }
 0x9e8   :  { %4038 = vtanh.f32 %v1008_v38 }
 0x9f2   :  { %v4039_v42 = vpop.eup %4038 }
 0x9f3   :  { %1015 = vrot.lane.b32.xlu0 %v4039_v42, %s4292_s3 }
 0xa65   :  { %v1016_v1 = vpop.permute.xlu0 %1015 }
 0xa66   :  { %v1018_v2 = vmul.f32 %v1016_v1, %v1012_v62 }
 0xa68   :  { %1019 = vst.msk [vmem:[#allocation3 + $0x8] sm:$0x3] %vm685_vm8, %v1018_v2  ;;  %v1022_v3 = vpack.c.bf16 %v1018_v2, %v1018_v2 }
 0xa69   :  { %1020 = vst.msk [vmem:[#allocation3 + $0x16] sm:$0x3] %vm687_vm9, %v1018_v2 }
 0xa6a   :  { %3859 = vmatmul.mubr.msk.bf16.vlgmr.msra.gmra.mrb[16].mxu0 %vm220_vm2, %v1022_v3 }
 0xa6b   :  { %1193 = vmatpush1.bf16.msra.mxu0 %v4457_v13  ;;  %1224 = vmatprep.mubr.bf16.mxu0 %v4288_v0 }
 0xa6c   :  { %1194 = vmatprep.subr.bf16.mxu0 %v4462_v14 }
 0xa6f   :  { %1195 = vmatpush1.bf16.msra.mxu0 %v4467_v15 }
 0xa70   :  { %1196 = vmatprep.subr.bf16.mxu0 %v4479_v17 }
 0xa73   :  { %1197 = vmatpush1.bf16.msra.mxu0 %v4484_v18 }
 0xa74   :  { %1198 = vmatprep.subr.bf16.mxu0 %v4489_v19 }
 0xa77   :  { %1199 = vmatpush1.bf16.msra.mxu0 %v4494_v20 }
 0xa78   :  { %1358 = vmatprep.subr.bf16.mxu0 %v4452_v12 }
 0xb3d   :  { %v1060_v4 = vpop.f32.mrb[16].mxu0 }
 0xb3e   :  { %v1062_v6 = vpop.f32.mrb[17].mxu0 }
 0xb3f   :  { %v1069_v47 = vcombine.low %v1060_v4, %v1062_v6  ;;  %v1064_v54 = vpop.f32.mrb[18].mxu0 }
 0xb40   :  { %v1065_v7 = vpop.f32.mrb[19].mxu0 }
 0xb41   :  { %v1076_v8 = vrot.slane %v1069_v47, %v4559_v60 }
 0xb43   :  { %v1078_v10 = vadd.f32 %v1076_v8, %v1021_v9 }
 0xb45   :  { %4040 = vtanh.f32 %v1078_v10 }
 0xb4f   :  { %v4041_v63 = vpop.eup %4040 }
 0xb50   :  { %v1080_v5 = vmul.f32 %v4041_v63, %v4617_v52 }
 0xb52   :  { %v1081_v11 = vadd.f32 %v1080_v5, %v4620_v53 }
 0xb54   :  { %1093 = vrot.lane.b32.xlu0 %v1081_v11, %s4292_s3  ;;  %v1084_v16 = vrot.slane %v1081_v11, 2  ;;  %v1082_v55 = vmul.f32 %v1081_v11, %v1008_v38 }
 0xb56   :  { %v1086_v21 = vmul.f32 %v1084_v16, %v1081_v11 }
 0xb58   :  { %1088 = vrot.lane.b32.xlu1 %v1086_v21, %s4292_s3 }
 0xbc6   :  { %v1094_v25 = vpop.permute.xlu0 %1093 }
 0xbc7   :  { %v1095_v27 = vrot.slane %v1094_v25, 2  ;;  %v4766_v25 = vld [vmem:[%s5313_s2 + $0x14] ss:$8 sps:$4 sm:$0xff]  }
 0xbca   :  { %v1089_v22 = vpop.permute.xlu1 %1088 }
 0xbcb   :  { %v1091_v23 = vadd.f32 %v1089_v22, %v1082_v55 }
 0xbcd   :  { %4042 = vtanh.f32 %v1091_v23 }
 0xbd7   :  { %v4043_v24 = vpop.eup %4042 }
 0xbd8   :  { %1098 = vrot.lane.b32.xlu1 %v4043_v24, %s4292_s3  ;;  %v4759_v24 = vld [vmem:[%s5313_s2] ss:$8 sps:$4 sm:$0xff]  }
 0xc4a   :  { %v1099_v28 = vpop.permute.xlu1 %1098 }
 0xc4b   :  { %v1101_v29 = vmul.f32 %v1099_v28, %v1095_v27  ;;  %v4772_v27 = vld [vmem:[%s5313_s2 + $0x10] ss:$8 sps:$4 sm:$0xff]   ;;  %v4782_v28 = vld [vmem:[%s5313_s2 + $0x4] ss:$8 sps:$4 sm:$0xff]  }
 0xc4d   :  { %1102 = vst.msk [vmem:[#allocation3 + $0xa] sm:$0x3] %vm685_vm8, %v1101_v29  ;;  %v1105_v30 = vpack.c.bf16 %v1101_v29, %v1101_v29 }
 0xc4e   :  { %1103 = vst.msk [vmem:[#allocation3 + $0x14] sm:$0x3] %vm687_vm9, %v1101_v29 }
 0xc4f   :  { %3860 = vmatmul.mubr.msk.bf16.vlgmr.msra.gmra.mrb[12].mxu1 %vm220_vm2, %v1105_v30 }
 0xc50   :  { %1276 = vmatpush1.bf16.msra.mxu1 %v4457_v13  ;;  %1307 = vmatprep.mubr.bf16.mxu1 %v4288_v0 }
 0xc51   :  { %1277 = vmatprep.subr.bf16.mxu1 %v4462_v14 }
 0xc54   :  { %1278 = vmatpush1.bf16.msra.mxu1 %v4467_v15 }
 0xc55   :  { %1279 = vmatprep.subr.bf16.mxu1 %v4479_v17 }
 0xc58   :  { %1280 = vmatpush1.bf16.msra.mxu1 %v4484_v18 }
 0xc59   :  { %1281 = vmatprep.subr.bf16.mxu1 %v4489_v19 }
 0xc5c   :  { %1282 = vmatpush1.bf16.msra.mxu1 %v4494_v20 }
 0xc5d   :  { %1441 = vmatprep.subr.bf16.mxu1 %v4452_v12 }
 0xd22   :  { %v1143_v31 = vpop.f32.mrb[12].mxu1 }
 0xd23   :  { %v1145_v32 = vpop.f32.mrb[13].mxu1 }
 0xd24   :  { %v1152_v61 = vcombine.low %v1143_v31, %v1145_v32  ;;  %v1147_v33 = vpop.f32.mrb[14].mxu1 }
 0xd25   :  { %v1148_v36 = vpop.f32.mrb[15].mxu1  ;;  %v1270_v33 = vld [vmem:[#allocation2 + $0x20] sm:$0xf] }
 0xd26   :  { %v1159_v37 = vrot.slane %v1152_v61, %v4559_v60 }
 0xd28   :  { %v1161_v43 = vadd.f32 %v1159_v37, %v1104_v41 }
 0xd2a   :  { %4044 = vtanh.f32 %v1161_v43 }
 0xd34   :  { %v4045_v44 = vpop.eup %4044 }
 0xd35   :  { %v1163_v45 = vmul.f32 %v4045_v44, %v4617_v52 }
 0xd37   :  { %v1164_v48 = vadd.f32 %v1163_v45, %v4620_v53 }
 0xd39   :  { %1176 = vrot.lane.b32.xlu1 %v1164_v48, %s4292_s3  ;;  %v1167_v49 = vrot.slane %v1164_v48, 2  ;;  %v1165_v51 = vmul.f32 %v1164_v48, %v1091_v23 }
 0xd3b   :  { %v1169_v50 = vmul.f32 %v1167_v49, %v1164_v48 }
 0xd3d   :  { %1171 = vrot.lane.b32.xlu0 %v1169_v50, %s4292_s3 }
 0xdab   :  { %v1177_v38 = vpop.permute.xlu1 %1176 }
 0xdac   :  { %v1178_v42 = vrot.slane %v1177_v38, 2  ;;  %v4807_v38 = vld [vmem:[%s5313_s2 + $0x20] ss:$8 sps:$4 sm:$0xff]  }
 0xdaf   :  { %v1172_v56 = vpop.permute.xlu0 %1171 }
 0xdb0   :  { %v1174_v34 = vadd.f32 %v1172_v56, %v1165_v51 }
 0xdb2   :  { %4046 = vtanh.f32 %v1174_v34 }
 0xdbc   :  { %v4047_v35 = vpop.eup %4046 }
 0xdbd   :  { %1181 = vrot.lane.b32.xlu0 %v4047_v35, %s4292_s3  ;;  %v4801_v35 = vld [vmem:[%s5313_s2 + $0x24] ss:$8 sps:$4 sm:$0xff]  }
 0xe2f   :  { %v1182_v57 = vpop.permute.xlu0 %1181 }
 0xe30   :  { %v1184_v62 = vmul.f32 %v1182_v57, %v1178_v42  ;;  %v4813_v42 = vld [vmem:[%s5313_s2 + $0x34] ss:$8 sps:$4 sm:$0xff]   ;;  %v4819_v57 = vld [vmem:[%s5313_s2 + $0x30] ss:$8 sps:$4 sm:$0xff]  }
 0xe32   :  { %1185 = vst.msk [vmem:[#allocation3 + $0xc] sm:$0x3] %vm685_vm8, %v1184_v62  ;;  %v1188_v1 = vpack.c.bf16 %v1184_v62, %v1184_v62 }
 0xe33   :  { %1186 = vst.msk [vmem:[#allocation3 + $0x12] sm:$0x3] %vm687_vm9, %v1184_v62 }
 0xe34   :  { %3861 = vmatmul.mubr.msk.bf16.vlgmr.msra.gmra.mrb[20].mxu0 %vm220_vm2, %v1188_v1 }
 0xe35   :  { %1359 = vmatpush1.bf16.msra.mxu0 %v4457_v13  ;;  %1390 = vmatprep.mubr.bf16.mxu0 %v4288_v0 }
 0xe36   :  { %1360 = vmatprep.subr.bf16.mxu0 %v4462_v14  ;;  %v1187_v14 = vld [vmem:[#allocation2 + $0x1c] sm:$0xf] }
 0xe39   :  { %1361 = vmatpush1.bf16.msra.mxu0 %v4467_v15 }
 0xe3a   :  { %1362 = vmatprep.subr.bf16.mxu0 %v4479_v17 }
 0xe3d   :  { %1363 = vmatpush1.bf16.msra.mxu0 %v4484_v18 }
 0xe3e   :  { %1364 = vmatprep.subr.bf16.mxu0 %v4489_v19 }
 0xe41   :  { %1365 = vmatpush1.bf16.msra.mxu0 %v4494_v20 }
 0xe42   :  { %1524 = vmatprep.subr.bf16.mxu0 %v4452_v12 }
 0xf07   :  { %v1226_v2 = vpop.f32.mrb[20].mxu0 }
 0xf08   :  { %v1228_v3 = vpop.f32.mrb[21].mxu0 }
 0xf09   :  { %v1235_v4 = vcombine.low %v1226_v2, %v1228_v3  ;;  %v1230_v13 = vpop.f32.mrb[22].mxu0 }
 0xf0a   :  { %v1231_v6 = vpop.f32.mrb[23].mxu0 }
 0xf0b   :  { %v1242_v47 = vrot.slane %v1235_v4, %v4559_v60  ;;  %v1353_v6 = vld [vmem:[#allocation2 + $0x24] sm:$0xf] }
 0xf0d   :  { %v1244_v54 = vadd.f32 %v1242_v47, %v1187_v14 }
 0xf0f   :  { %4048 = vtanh.f32 %v1244_v54 }
 0xf19   :  { %v4049_v15 = vpop.eup %4048 }
 0xf1a   :  { %v1246_v7 = vmul.f32 %v4049_v15, %v4617_v52 }
 0xf1c   :  { %v1247_v8 = vadd.f32 %v1246_v7, %v4620_v53 }
 0xf1e   :  { %1259 = vrot.lane.b32.xlu0 %v1247_v8, %s4292_s3  ;;  %v1250_v9 = vrot.slane %v1247_v8, 2  ;;  %v1248_v12 = vmul.f32 %v1247_v8, %v1174_v34 }
 0xf20   :  { %v1252_v10 = vmul.f32 %v1250_v9, %v1247_v8 }
 0xf22   :  { %1254 = vrot.lane.b32.xlu1 %v1252_v10, %s4292_s3 }
 0xf90   :  { %v1260_v16 = vpop.permute.xlu0 %1259 }
 0xf91   :  { %v1261_v21 = vrot.slane %v1260_v16, 2 }
 0xf94   :  { %v1255_v63 = vpop.permute.xlu1 %1254 }
 0xf95   :  { %v1257_v5 = vadd.f32 %v1255_v63, %v1248_v12 }
 0xf97   :  { %4050 = vtanh.f32 %v1257_v5 }
 0xfa1   :  { %v4051_v11 = vpop.eup %4050 }
 0xfa2   :  { %1264 = vrot.lane.b32.xlu1 %v4051_v11, %s4292_s3 }
0x1014   :  { %v1265_v55 = vpop.permute.xlu1 %1264 }
0x1015   :  { %v1267_v22 = vmul.f32 %v1265_v55, %v1261_v21 }
0x1017   :  { %1268 = vst.msk [vmem:[#allocation3 + $0xe] sm:$0x3] %vm685_vm8, %v1267_v22  ;;  %v1271_v23 = vpack.c.bf16 %v1267_v22, %v1267_v22 }
0x1018   :  { %1269 = vst.msk [vmem:[#allocation3 + $0x10] sm:$0x3] %vm687_vm9, %v1267_v22 }
0x1019   :  { %3862 = vmatmul.mubr.msk.bf16.vlgmr.msra.gmra.mrb[16].mxu1 %vm220_vm2, %v1271_v23 }
0x101a   :  { %1442 = vmatpush1.bf16.msra.mxu1 %v4759_v24  ;;  %1473 = vmatprep.mubr.bf16.mxu1 %v4288_v0 }
0x101b   :  { %1443 = vmatprep.subr.bf16.mxu1 %v4766_v25 }
0x101e   :  { %1444 = vmatpush1.bf16.msra.mxu1 %v4772_v27 }
0x101f   :  { %1445 = vmatprep.subr.bf16.mxu1 %v4479_v17 }
0x1022   :  { %1446 = vmatpush1.bf16.msra.mxu1 %v4484_v18 }
0x1023   :  { %1447 = vmatprep.subr.bf16.mxu1 %v4489_v19 }
0x1026   :  { %1448 = vmatpush1.bf16.msra.mxu1 %v4494_v20 }
0x1027   :  { %1607 = vmatprep.subr.bf16.mxu1 %v4782_v28 }
0x10ec   :  { %v1309_v29 = vpop.f32.mrb[16].mxu1 }
0x10ed   :  { %v1311_v30 = vpop.f32.mrb[17].mxu1 }
0x10ee   :  { %v1318_v31 = vcombine.low %v1309_v29, %v1311_v30  ;;  %v1313_v32 = vpop.f32.mrb[18].mxu1 }
0x10ef   :  { %v1314_v61 = vpop.f32.mrb[19].mxu1 }
0x10f0   :  { %v1325_v17 = vrot.slane %v1318_v31, %v4559_v60  ;;  %v1436_v61 = vld [vmem:[#allocation2 + $0x28] sm:$0xf] }
0x10f2   :  { %v1327_v18 = vadd.f32 %v1325_v17, %v1270_v33 }
0x10f4   :  { %4052 = vtanh.f32 %v1327_v18 }
0x10fe   :  { %v4053_v19 = vpop.eup %4052 }
0x10ff   :  { %v1329_v20 = vmul.f32 %v4053_v19, %v4617_v52 }
0x1101   :  { %v1330_v36 = vadd.f32 %v1329_v20, %v4620_v53 }
0x1103   :  { %1342 = vrot.lane.b32.xlu1 %v1330_v36, %s4292_s3  ;;  %v1333_v37 = vrot.slane %v1330_v36, 2  ;;  %v1331_v43 = vmul.f32 %v1330_v36, %v1257_v5 }
0x1105   :  { %v1335_v41 = vmul.f32 %v1333_v37, %v1330_v36 }
0x1107   :  { %1337 = vrot.lane.b32.xlu0 %v1335_v41, %s4292_s3 }
0x1175   :  { %v1343_v49 = vpop.permute.xlu1 %1342 }
0x1176   :  { %v1344_v50 = vrot.slane %v1343_v49, 2 }
0x1179   :  { %v1338_v44 = vpop.permute.xlu0 %1337 }
0x117a   :  { %v1340_v45 = vadd.f32 %v1338_v44, %v1331_v43 }
0x117c   :  { %4054 = vtanh.f32 %v1340_v45 }
0x1186   :  { %v4055_v48 = vpop.eup %4054 }
0x1187   :  { %1347 = vrot.lane.b32.xlu0 %v4055_v48, %s4292_s3 }
0x11f9   :  { %v1348_v51 = vpop.permute.xlu0 %1347 }
0x11fa   :  { %v1350_v56 = vmul.f32 %v1348_v51, %v1344_v50 }
0x11fc   :  { %1351 = vst.msk [vmem:[#allocation3 + $0x10] sm:$0x3] %vm685_vm8, %v1350_v56  ;;  %v1354_v34 = vpack.c.bf16 %v1350_v56, %v1350_v56 }
0x11fd   :  { %1352 = vst.msk [vmem:[#allocation3 + $0xe] sm:$0x3] %vm687_vm9, %v1350_v56 }
0x11fe   :  { %3863 = vmatmul.mubr.msk.bf16.vlgmr.msra.gmra.mrb[24].mxu0 %vm220_vm2, %v1354_v34 }
0x11ff   :  { %1525 = vmatpush1.bf16.msra.mxu0 %v4759_v24  ;;  %1556 = vmatprep.mubr.bf16.mxu0 %v4288_v0 }
0x1200   :  { %1526 = vmatprep.subr.bf16.mxu0 %v4766_v25 }
0x1203   :  { %1527 = vmatpush1.bf16.msra.mxu0 %v4772_v27 }
0x1204   :  { %1528 = vmatprep.subr.bf16.mxu0 %v4801_v35 }
0x1207   :  { %1529 = vmatpush1.bf16.msra.mxu0 %v4807_v38 }
0x1208   :  { %1530 = vmatprep.subr.bf16.mxu0 %v4813_v42 }
0x120b   :  { %1531 = vmatpush1.bf16.msra.mxu0 %v4819_v57 }
0x120c   :  { %1690 = vmatprep.subr.bf16.mxu0 %v4782_v28 }
0x12d1   :  { %v1392_v62 = vpop.f32.mrb[24].mxu0 }
0x12d2   :  { %v1394_v1 = vpop.f32.mrb[25].mxu0 }
0x12d3   :  { %v1401_v2 = vcombine.low %v1392_v62, %v1394_v1  ;;  %v1396_v3 = vpop.f32.mrb[26].mxu0 }
0x12d4   :  { %v1397_v4 = vpop.f32.mrb[27].mxu0 }
0x12d5   :  { %v1408_v13 = vrot.slane %v1401_v2, %v4559_v60  ;;  %v1519_v4 = vld [vmem:[#allocation2 + $0x2c] sm:$0xf] }
0x12d7   :  { %v1410_v47 = vadd.f32 %v1408_v13, %v1353_v6 }
0x12d9   :  { %4056 = vtanh.f32 %v1410_v47 }
0x12e3   :  { %v4057_v14 = vpop.eup %4056 }
0x12e4   :  { %v1412_v54 = vmul.f32 %v4057_v14, %v4617_v52 }
0x12e6   :  { %v1413_v15 = vadd.f32 %v1412_v54, %v4620_v53 }
0x12e8   :  { %1425 = vrot.lane.b32.xlu0 %v1413_v15, %s4292_s3  ;;  %v1416_v7 = vrot.slane %v1413_v15, 2  ;;  %v1414_v9 = vmul.f32 %v1413_v15, %v1340_v45 }
0x12ea   :  { %v1418_v8 = vmul.f32 %v1416_v7, %v1413_v15 }
0x12ec   :  { %1420 = vrot.lane.b32.xlu1 %v1418_v8, %s4292_s3 }
0x135a   :  { %v1426_v5 = vpop.permute.xlu0 %1425 }
0x135b   :  { %v1427_v11 = vrot.slane %v1426_v5, 2 }
0x135e   :  { %v1421_v10 = vpop.permute.xlu1 %1420 }
0x135f   :  { %v1423_v12 = vadd.f32 %v1421_v10, %v1414_v9 }
0x1361   :  { %4058 = vtanh.f32 %v1423_v12 }
0x136b   :  { %v4059_v63 = vpop.eup %4058 }
0x136c   :  { %1430 = vrot.lane.b32.xlu1 %v4059_v63, %s4292_s3 }
0x13de   :  { %v1431_v16 = vpop.permute.xlu1 %1430 }
0x13df   :  { %v1433_v21 = vmul.f32 %v1431_v16, %v1427_v11 }
0x13e1   :  { %1434 = vst.msk [vmem:[#allocation3 + $0x12] sm:$0x3] %vm685_vm8, %v1433_v21  ;;  %v1437_v55 = vpack.c.bf16 %v1433_v21, %v1433_v21 }
0x13e2   :  { %1435 = vst.msk [vmem:[#allocation3 + $0xc] sm:$0x3] %vm687_vm9, %v1433_v21 }
0x13e3   :  { %3864 = vmatmul.mubr.msk.bf16.vlgmr.msra.gmra.mrb[20].mxu1 %vm220_vm2, %v1437_v55 }
0x13e4   :  { %1608 = vmatpush1.bf16.msra.mxu1 %v4759_v24  ;;  %1639 = vmatprep.mubr.bf16.mxu1 %v4288_v0 }
0x13e5   :  { %1609 = vmatprep.subr.bf16.mxu1 %v4766_v25 }
0x13e8   :  { %1610 = vmatpush1.bf16.msra.mxu1 %v4772_v27 }
0x13e9   :  { %1611 = vmatprep.subr.bf16.mxu1 %v4801_v35 }
0x13ec   :  { %1612 = vmatpush1.bf16.msra.mxu1 %v4807_v38 }
0x13ed   :  { %1613 = vmatprep.subr.bf16.mxu1 %v4813_v42 }
0x13f0   :  { %1614 = vmatpush1.bf16.msra.mxu1 %v4819_v57 }
0x13f1   :  { %1773 = vmatprep.subr.bf16.mxu1 %v4782_v28 }
0x14b6   :  { %v1475_v22 = vpop.f32.mrb[20].mxu1 }
0x14b7   :  { %v1477_v23 = vpop.f32.mrb[21].mxu1 }
0x14b8   :  { %v1484_v29 = vcombine.low %v1475_v22, %v1477_v23  ;;  %v1479_v30 = vpop.f32.mrb[22].mxu1 }
0x14b9   :  { %v1480_v31 = vpop.f32.mrb[23].mxu1  ;;  %v1602_v30 = vld [vmem:[#allocation2 + $0x30] sm:$0xf] }
0x14ba   :  { %v1491_v32 = vrot.slane %v1484_v29, %v4559_v60 }
0x14bc   :  { %v1493_v17 = vadd.f32 %v1491_v32, %v1436_v61 }
0x14be   :  { %4060 = vtanh.f32 %v1493_v17 }
0x14c8   :  { %v4061_v33 = vpop.eup %4060 }
0x14c9   :  { %v1495_v18 = vmul.f32 %v4061_v33, %v4617_v52 }
0x14cb   :  { %v1496_v19 = vadd.f32 %v1495_v18, %v4620_v53 }
0x14cd   :  { %1508 = vrot.lane.b32.xlu1 %v1496_v19, %s4292_s3  ;;  %v1499_v20 = vrot.slane %v1496_v19, 2  ;;  %v1497_v37 = vmul.f32 %v1496_v19, %v1423_v12 }
0x14cf   :  { %v1501_v36 = vmul.f32 %v1499_v20, %v1496_v19 }
0x14d1   :  { %1503 = vrot.lane.b32.xlu0 %v1501_v36, %s4292_s3 }
0x153f   :  { %v1509_v45 = vpop.permute.xlu1 %1508 }
0x1540   :  { %v1510_v48 = vrot.slane %v1509_v45, 2 }
0x1543   :  { %v1504_v41 = vpop.permute.xlu0 %1503 }
0x1544   :  { %v1506_v43 = vadd.f32 %v1504_v41, %v1497_v37 }
0x1546   :  { %4062 = vtanh.f32 %v1506_v43 }
0x1550   :  { %v4063_v44 = vpop.eup %4062 }
0x1551   :  { %1513 = vrot.lane.b32.xlu0 %v4063_v44, %s4292_s3 }
0x15c3   :  { %v1514_v49 = vpop.permute.xlu0 %1513 }
0x15c4   :  { %v1516_v50 = vmul.f32 %v1514_v49, %v1510_v48 }
0x15c6   :  { %1517 = vst.msk [vmem:[#allocation3 + $0x14] sm:$0x3] %vm685_vm8, %v1516_v50  ;;  %v1520_v51 = vpack.c.bf16 %v1516_v50, %v1516_v50 }
0x15c7   :  { %1518 = vst.msk [vmem:[#allocation3 + $0xa] sm:$0x3] %vm687_vm9, %v1516_v50 }
0x15c8   :  { %3865 = vmatmul.mubr.msk.bf16.vlgmr.msra.gmra.mrb[28].mxu0 %vm220_vm2, %v1520_v51 }
0x15c9   :  { %1691 = vmatpush1.bf16.msra.mxu0 %v4759_v24  ;;  %1722 = vmatprep.mubr.bf16.mxu0 %v4288_v0 }
0x15ca   :  { %1692 = vmatprep.subr.bf16.mxu0 %v4766_v25 }
0x15cd   :  { %1693 = vmatpush1.bf16.msra.mxu0 %v4772_v27 }
0x15ce   :  { %1694 = vmatprep.subr.bf16.mxu0 %v4801_v35 }
0x15d1   :  { %1695 = vmatpush1.bf16.msra.mxu0 %v4807_v38 }
0x15d2   :  { %1696 = vmatprep.subr.bf16.mxu0 %v4813_v42 }
0x15d5   :  { %1697 = vmatpush1.bf16.msra.mxu0 %v4819_v57 }
0x15d6   :  { %1856 = vmatprep.subr.bf16.mxu0 %v4782_v28 }
0x169b   :  { %v1558_v56 = vpop.f32.mrb[28].mxu0 }
0x169c   :  { %v1560_v34 = vpop.f32.mrb[29].mxu0 }
0x169d   :  { %v1567_v62 = vcombine.low %v1558_v56, %v1560_v34  ;;  %v1562_v1 = vpop.f32.mrb[30].mxu0 }
0x169e   :  { %v1563_v2 = vpop.f32.mrb[31].mxu0 }
0x169f   :  { %v1574_v3 = vrot.slane %v1567_v62, %v4559_v60  ;;  %v1685_v62 = vld [vmem:[#allocation2 + $0x34] sm:$0xf] }
0x16a1   :  { %v1576_v13 = vadd.f32 %v1574_v3, %v1519_v4 }
0x16a3   :  { %4064 = vtanh.f32 %v1576_v13 }
0x16ad   :  { %v4065_v6 = vpop.eup %4064 }
0x16ae   :  { %v1578_v47 = vmul.f32 %v4065_v6, %v4617_v52 }
0x16b0   :  { %v1579_v14 = vadd.f32 %v1578_v47, %v4620_v53 }
0x16b2   :  { %1591 = vrot.lane.b32.xlu0 %v1579_v14, %s4292_s3  ;;  %v1582_v54 = vrot.slane %v1579_v14, 2  ;;  %v1580_v28 = vmul.f32 %v1579_v14, %v1506_v43 }
0x16b4   :  { %v1584_v15 = vmul.f32 %v1582_v54, %v1579_v14 }
0x16b6   :  { %1586 = vrot.lane.b32.xlu1 %v1584_v15, %s4292_s3 }
0x1724   :  { %v1592_v10 = vpop.permute.xlu0 %1591 }
0x1725   :  { %v1593_v12 = vrot.slane %v1592_v10, 2 }
0x1728   :  { %v1587_v7 = vpop.permute.xlu1 %1586 }
0x1729   :  { %v1589_v8 = vadd.f32 %v1587_v7, %v1580_v28 }
0x172b   :  { %4066 = vtanh.f32 %v1589_v8 }
0x1735   :  { %v4067_v9 = vpop.eup %4066 }
0x1736   :  { %1596 = vrot.lane.b32.xlu1 %v4067_v9, %s4292_s3 }
0x17a8   :  { %v1597_v63 = vpop.permute.xlu1 %1596 }
0x17a9   :  { %v1599_v5 = vmul.f32 %v1597_v63, %v1593_v12  ;;  %v1768_v12 = vld [vmem:[#allocation2 + $0x38] sm:$0xf] }
0x17ab   :  { %1600 = vst.msk [vmem:[#allocation3 + $0x16] sm:$0x3] %vm685_vm8, %v1599_v5  ;;  %v1603_v11 = vpack.c.bf16 %v1599_v5, %v1599_v5 }
0x17ac   :  { %1601 = vst.msk [vmem:[#allocation3 + $0x8] sm:$0x3] %vm687_vm9, %v1599_v5 }
0x17ad   :  { %3866 = vmatmul.mubr.msk.bf16.vlgmr.msra.gmra.mrb[24].mxu1 %vm220_vm2, %v1603_v11 }
0x17ae   :  { %1774 = vmatpush1.bf16.msra.mxu1 %v4759_v24  ;;  %1805 = vmatprep.mubr.bf16.mxu1 %v4288_v0 }
0x17af   :  { %1775 = vmatprep.subr.bf16.mxu1 %v4766_v25 }
0x17b2   :  { %1776 = vmatpush1.bf16.msra.mxu1 %v4772_v27 }
0x17b3   :  { %1777 = vmatprep.subr.bf16.mxu1 %v4801_v35 }
0x17b6   :  { %1778 = vmatpush1.bf16.msra.mxu1 %v4807_v38 }
0x17b7   :  { %1779 = vmatprep.subr.bf16.mxu1 %v4813_v42 }
0x17ba   :  { %1780 = vmatpush1.bf16.msra.mxu1 %v4819_v57 }
0x1880   :  { %v1641_v16 = vpop.f32.mrb[24].mxu1 }
0x1881   :  { %v1643_v21 = vpop.f32.mrb[25].mxu1 }
0x1882   :  { %v1650_v55 = vcombine.low %v1641_v16, %v1643_v21  ;;  %v1645_v22 = vpop.f32.mrb[26].mxu1 }
0x1883   :  { %v1646_v23 = vpop.f32.mrb[27].mxu1 }
0x1884   :  { %v1657_v29 = vrot.slane %v1650_v55, %v4559_v60 }
0x1886   :  { %v1659_v31 = vadd.f32 %v1657_v29, %v1602_v30 }
0x1888   :  { %4068 = vtanh.f32 %v1659_v31 }
0x1892   :  { %v4069_v32 = vpop.eup %4068 }
0x1893   :  { %v1661_v61 = vmul.f32 %v4069_v32, %v4617_v52 }
0x1895   :  { %v1662_v17 = vadd.f32 %v1661_v61, %v4620_v53 }
0x1897   :  { %1674 = vrot.lane.b32.xlu1 %v1662_v17, %s4292_s3  ;;  %v1665_v33 = vrot.slane %v1662_v17, 2  ;;  %v1663_v19 = vmul.f32 %v1662_v17, %v1589_v8 }
0x1899   :  { %v1667_v18 = vmul.f32 %v1665_v33, %v1662_v17 }
0x189b   :  { %1669 = vrot.lane.b32.xlu0 %v1667_v18, %s4292_s3 }
0x1909   :  { %v1675_v41 = vpop.permute.xlu1 %1674 }
0x190a   :  { %v1676_v43 = vrot.slane %v1675_v41, 2 }
0x190d   :  { %v1670_v20 = vpop.permute.xlu0 %1669 }
0x190e   :  { %v1672_v36 = vadd.f32 %v1670_v20, %v1663_v19 }
0x1910   :  { %4070 = vtanh.f32 %v1672_v36 }
0x191a   :  { %v4071_v37 = vpop.eup %4070 }
0x191b   :  { %1679 = vrot.lane.b32.xlu0 %v4071_v37, %s4292_s3 }
0x198d   :  { %v1680_v44 = vpop.permute.xlu0 %1679 }
0x198e   :  { %v1682_v45 = vmul.f32 %v1680_v44, %v1676_v43  ;;  %v1851_v43 = vld [vmem:[#allocation2 + $0x3c] sm:$0xf] }
0x1990   :  { %1683 = vst.msk [vmem:[#allocation3 + $0x18] sm:$0x3] %vm685_vm8, %v1682_v45  ;;  %v1686_v48 = vpack.c.bf16 %v1682_v45, %v1682_v45 }
0x1991   :  { %1684 = vst.msk [vmem:[#allocation3 + $0x6] sm:$0x3] %vm687_vm9, %v1682_v45 }
0x1992   :  { %3867 = vmatmul.mubr.msk.bf16.vlgmr.msra.gmra.mrb[32].mxu0 %vm220_vm2, %v1686_v48 }
0x1993   :  { %1857 = vmatpush1.bf16.msra.mxu0 %v4759_v24  ;;  %1888 = vmatprep.mubr.bf16.mxu0 %v4288_v0 }
0x1994   :  { %1858 = vmatprep.subr.bf16.mxu0 %v4766_v25 }
0x1997   :  { %1859 = vmatpush1.bf16.msra.mxu0 %v4772_v27 }
0x1998   :  { %1860 = vmatprep.subr.bf16.mxu0 %v4801_v35 }
0x199b   :  { %1861 = vmatpush1.bf16.msra.mxu0 %v4807_v38 }
0x199c   :  { %1862 = vmatprep.subr.bf16.mxu0 %v4813_v42 }
0x199f   :  { %1863 = vmatpush1.bf16.msra.mxu0 %v4819_v57 }
0x1a65   :  { %v1724_v49 = vpop.f32.mrb[32].mxu0 }
0x1a66   :  { %v1726_v50 = vpop.f32.mrb[33].mxu0 }
0x1a67   :  { %v1733_v51 = vcombine.low %v1724_v49, %v1726_v50  ;;  %v1728_v56 = vpop.f32.mrb[34].mxu0 }
0x1a68   :  { %v1729_v34 = vpop.f32.mrb[35].mxu0  ;;  %v3990_v56 = vld [vmem:[#allocation4] ss:$8 sps:$4 sm:$0xff]  }
0x1a69   :  { %v1740_v24 = vrot.slane %v1733_v51, %v4559_v60  ;;  %v3992_v34 = vld [vmem:[#allocation4 + $0x4] ss:$8 sps:$4 sm:$0xff]  }
0x1a6a   :  { %2006 = vmatprep.subr.bf16.mxu1 %v3992_v34 }
0x1a6b   :  { %v1742_v1 = vadd.f32 %v1740_v24, %v1685_v62 }
0x1a6d   :  { %4072 = vtanh.f32 %v1742_v1 }
0x1a77   :  { %v4073_v25 = vpop.eup %4072 }
0x1a78   :  { %v1744_v27 = vmul.f32 %v4073_v25, %v4617_v52  ;;  %v3995_v25 = vld [vmem:[#allocation4 + $0x14] ss:$8 sps:$4 sm:$0xff]  }
0x1a7a   :  { %v1745_v35 = vadd.f32 %v1744_v27, %v4620_v53  ;;  %v3993_v27 = vld [vmem:[#allocation4 + $0x10] ss:$8 sps:$4 sm:$0xff]  }
0x1a7c   :  { %1757 = vrot.lane.b32.xlu0 %v1745_v35, %s4292_s3  ;;  %v1748_v38 = vrot.slane %v1745_v35, 2  ;;  %v1746_v57 = vmul.f32 %v1745_v35, %v1672_v36 }
0x1a7e   :  { %v1750_v42 = vmul.f32 %v1748_v38, %v1745_v35  ;;  %v3998_v35 = vld [vmem:[#allocation4 + $0x24] ss:$8 sps:$4 sm:$0xff]   ;;  %v3996_v38 = vld [vmem:[#allocation4 + $0x20] ss:$8 sps:$4 sm:$0xff]  }
0x1a80   :  { %1752 = vrot.lane.b32.xlu1 %v1750_v42, %s4292_s3  ;;  %v4001_v42 = vld [vmem:[#allocation4 + $0x34] ss:$8 sps:$4 sm:$0xff]  }
0x1aee   :  { %v1758_v13 = vpop.permute.xlu0 %1757 }
0x1aef   :  { %v1759_v6 = vrot.slane %v1758_v13, 2  ;;  %v4922_v13 = vld [vmem:[#allocation7 + $0x14] ss:$8 sps:$4 sm:$0xff]  }
0x1af2   :  { %v1753_v2 = vpop.permute.xlu1 %1752 }
0x1af3   :  { %v1755_v3 = vadd.f32 %v1753_v2, %v1746_v57  ;;  %v3999_v57 = vld [vmem:[#allocation4 + $0x30] ss:$8 sps:$4 sm:$0xff]  }
0x1af5   :  { %4074 = vtanh.f32 %v1755_v3 }
0x1aff   :  { %v4075_v4 = vpop.eup %4074 }
0x1b00   :  { %1762 = vrot.lane.b32.xlu1 %v4075_v4, %s4292_s3  ;;  %v4920_v4 = vld [vmem:[#allocation7] ss:$8 sps:$4 sm:$0xff]  }
0x1b72   :  { %v1763_v47 = vpop.permute.xlu1 %1762 }
0x1b73   :  { %v1765_v14 = vmul.f32 %v1763_v47, %v1759_v6  ;;  %v4928_v6 = vld [vmem:[#allocation7 + $0x10] ss:$8 sps:$4 sm:$0xff]   ;;  %v4932_v47 = vld [vmem:[#allocation7 + $0x24] ss:$8 sps:$4 sm:$0xff]  }
0x1b75   :  { %1766 = vst.msk [vmem:[#allocation3 + $0x1a] sm:$0x3] %vm685_vm8, %v1765_v14  ;;  %v1769_v54 = vpack.c.bf16 %v1765_v14, %v1765_v14 }
0x1b76   :  { %1767 = vst.msk [vmem:[#allocation3 + $0x4] sm:$0x3] %vm687_vm9, %v1765_v14  ;;  %v4934_v14 = vld [vmem:[#allocation7 + $0x20] ss:$8 sps:$4 sm:$0xff]  }
0x1b77   :  { %3868 = vmatmul.mubr.msk.bf16.vlgmr.msra.gmra.mrb[28].mxu1 %vm220_vm2, %v1769_v54  ;;  %v4936_v54 = vld [vmem:[#allocation7 + $0x34] ss:$8 sps:$4 sm:$0xff]  }
0x1b78   :  { %2038 = vmatprep.mubr.bf16.mxu1 %v4288_v0  ;;  %2007 = vmatpush1.bf16.msra.mxu1 %v3990_v56 }
0x1b79   :  { %2008 = vmatprep.subr.bf16.mxu1 %v3995_v25 }
0x1b7c   :  { %2009 = vmatpush1.bf16.msra.mxu1 %v3993_v27 }
0x1b7d   :  { %2010 = vmatprep.subr.bf16.mxu1 %v3998_v35 }
0x1b80   :  { %2011 = vmatpush1.bf16.msra.mxu1 %v3996_v38 }
0x1b81   :  { %2012 = vmatprep.subr.bf16.mxu1 %v4001_v42 }
0x1b84   :  { %2013 = vmatpush1.bf16.msra.mxu1 %v3999_v57 }
0x1c4a   :  { %v1807_v15 = vpop.f32.mrb[28].mxu1 }
0x1c4b   :  { %v1809_v28 = vpop.f32.mrb[29].mxu1 }
0x1c4c   :  { %v1816_v7 = vcombine.low %v1807_v15, %v1809_v28  ;;  %v1811_v8 = vpop.f32.mrb[30].mxu1  ;;  %v4940_v15 = vld [vmem:[#allocation7 + $0x30] ss:$8 sps:$4 sm:$0xff]  }
0x1c4d   :  { %v1812_v9 = vpop.f32.mrb[31].mxu1 }
0x1c4e   :  { %v1823_v10 = vrot.slane %v1816_v7, %v4559_v60 }
0x1c50   :  { %v1825_v63 = vadd.f32 %v1823_v10, %v1768_v12  ;;  %v1935_v12 = vld [vmem:[#allocation3 + $0x8] sm:$0xff] }
0x1c52   :  { %4076 = vtanh.f32 %v1825_v63 }
0x1c5c   :  { %v4077_v5 = vpop.eup %4076 }
0x1c5d   :  { %v1827_v11 = vmul.f32 %v4077_v5, %v4617_v52 }
0x1c5f   :  { %v1828_v16 = vadd.f32 %v1827_v11, %v4620_v53  ;;  %v1936_v11 = vld [vmem:[#allocation3 + $0x10] sm:$0xff] }
0x1c61   :  { %1840 = vrot.lane.b32.xlu1 %v1828_v16, %s4292_s3  ;;  %v1831_v21 = vrot.slane %v1828_v16, 2  ;;  %v1829_v22 = vmul.f32 %v1828_v16, %v1755_v3  ;;  %v4918_v3 = vld [vmem:[#allocation7 + $0x4] ss:$8 sps:$4 sm:$0xff]  }
0x1c62   :  { %2348 = vmatprep.subr.bf16.mxu0 %v4918_v3  ;;  %2429 = vmatprep.subr.bf16.mxu1 %v4918_v3 }
0x1c63   :  { %v1833_v55 = vmul.f32 %v1831_v21, %v1828_v16 }
0x1c65   :  { %1835 = vrot.lane.b32.xlu0 %v1833_v55, %s4292_s3 }
0x1cd3   :  { %v1841_v31 = vpop.permute.xlu1 %1840 }
0x1cd4   :  { %v1842_v32 = vrot.slane %v1841_v31, 2 }
0x1cd7   :  { %v1836_v23 = vpop.permute.xlu0 %1835 }
0x1cd8   :  { %v1838_v29 = vadd.f32 %v1836_v23, %v1829_v22 }
0x1cda   :  { %4078 = vtanh.f32 %v1838_v29 }
0x1ce4   :  { %v4079_v30 = vpop.eup %4078 }
0x1ce5   :  { %1845 = vrot.lane.b32.xlu0 %v4079_v30, %s4292_s3  ;;  %v1948_v30 = vld [vmem:[%s5317_s6] sm:$0x3] }
0x1d57   :  { %v1846_v61 = vpop.permute.xlu0 %1845 }
0x1d58   :  { %v1848_v17 = vmul.f32 %v1846_v61, %v1842_v32  ;;  %v1953_v32 = vrot.slane %v1948_v30, %v172_v40 }
0x1d5a   :  { %1849 = vst.msk [vmem:[#allocation3 + $0x1c] sm:$0x3] %vm685_vm8, %v1848_v17  ;;  %v1852_v33 = vpack.c.bf16 %v1848_v17, %v1848_v17 }
0x1d5b   :  { %1850 = vst.msk [vmem:[#allocation3 + $0x2] sm:$0x3] %vm687_vm9, %v1848_v17 }
0x1d5c   :  { %3869 = vmatmul.mubr.msk.bf16.vlgmr.msra.gmra.mrb[36].mxu0 %vm220_vm2, %v1852_v33 }
0x1d5d   :  { %2380 = vmatprep.mubr.bf16.mxu0 %v4288_v0  ;;  %2349 = vmatpush1.bf16.msra.mxu0 %v4920_v4 }
0x1d5e   :  { %2350 = vmatprep.subr.bf16.mxu0 %v4922_v13 }
0x1d61   :  { %2351 = vmatpush1.bf16.msra.mxu0 %v4928_v6 }
0x1d62   :  { %2352 = vmatprep.subr.bf16.mxu0 %v4932_v47 }
0x1d65   :  { %2353 = vmatpush1.bf16.msra.mxu0 %v4934_v14 }
0x1d66   :  { %2354 = vmatprep.subr.bf16.mxu0 %v4936_v54 }
0x1d69   :  { %2355 = vmatpush1.bf16.msra.mxu0 %v4940_v15 }
0x1d6a   :  { %2510 = vmatprep.subr.bf16.mxu0 %v4918_v3 }
0x1d6c   :  { %2381 = vmatmul.mubr.bf16.vlgmr.msra.gmra.mrb[40].mxu0 %v4288_v0 }
0x1d6d   :  { %2511 = vmatpush1.bf16.msra.mxu0 %v4920_v4  ;;  %2542 = vmatprep.mubr.bf16.mxu0 %v4288_v0 }
0x1d6e   :  { %2512 = vmatprep.subr.bf16.mxu0 %v4922_v13 }
0x1d71   :  { %2513 = vmatpush1.bf16.msra.mxu0 %v4928_v6 }
0x1d72   :  { %2514 = vmatprep.subr.bf16.mxu0 %v4932_v47 }
0x1d75   :  { %2515 = vmatpush1.bf16.msra.mxu0 %v4934_v14 }
0x1d76   :  { %2516 = vmatprep.subr.bf16.mxu0 %v4936_v54 }
0x1d79   :  { %2517 = vmatpush1.bf16.msra.mxu0 %v4940_v15 }
0x1d7a   :  { %2672 = vmatprep.subr.bf16.mxu0 %v4918_v3 }
0x1e2f   :  { %v1890_v18 = vpop.f32.mrb[36].mxu0 }
0x1e30   :  { %v1892_v19 = vpop.f32.mrb[37].mxu0 }
0x1e31   :  { %v1899_v20 = vcombine.low %v1890_v18, %v1892_v19  ;;  %v1894_v36 = vpop.f32.mrb[38].mxu0  ;;  %v1957_v18 = vrot.slane %v1948_v30, %v176_v46 }
0x1e32   :  { %v1895_v37 = vpop.f32.mrb[39].mxu0 }
0x1e33   :  { %v1906_v41 = vrot.slane %v1899_v20, %v4559_v60 }
0x1e35   :  { %v1908_v44 = vadd.f32 %v1906_v41, %v1851_v43 }
0x1e37   :  { %4080 = vtanh.f32 %v1908_v44 }
0x1e3f   :  { %v4969_v21 = vpop.f32.mrb[40].mxu0 }
0x1e40   :  { %v4971_v55 = vpop.f32.mrb[41].mxu0 }
0x1e41   :  { %v4081_v45 = vpop.eup %4080  ;;  %v2386_v22 = vpop.f32.mrb[42].mxu0 }
0x1e42   :  { %v1910_v48 = vmul.f32 %v4081_v45, %v4617_v52  ;;  %v2387_v23 = vpop.f32.mrb[43].mxu0 }
0x1e44   :  { %v1911_v49 = vadd.f32 %v1910_v48, %v4620_v53 }
0x1e46   :  { %1923 = vrot.lane.b32.xlu0 %v1911_v49, %s4292_s3  ;;  %v1914_v50 = vrot.slane %v1911_v49, 2  ;;  %v1912_v24 = vmul.f32 %v1911_v49, %v1838_v29  ;;  %v2391_v29 = vcombine.low %v4969_v21, %v4971_v55 }
0x1e48   :  { %v1916_v51 = vmul.f32 %v1914_v50, %v1911_v49 }
0x1e4a   :  { %1918 = vrot.lane.b32.xlu1 %v1916_v51, %s4292_s3 }
0x1eb8   :  { %v1924_v28 = vpop.permute.xlu0 %1923 }
0x1eb9   :  { %v1925_v7 = vrot.slane %v1924_v28, 2 }
0x1ebc   :  { %v1919_v62 = vpop.permute.xlu1 %1918 }
0x1ebd   :  { %v1921_v1 = vadd.f32 %v1919_v62, %v1912_v24 }
0x1ebf   :  { %4082 = vtanh.f32 %v1921_v1 }
0x1ec9   :  { %v4083_v2 = vpop.eup %4082 }
0x1eca   :  { %1928 = vrot.lane.b32.xlu1 %v4083_v2, %s4292_s3 }
0x1f3c   :  { %v1929_v8 = vpop.permute.xlu1 %1928 }
0x1f3d   :  { %v1931_v9 = vmul.f32 %v1929_v8, %v1925_v7 }
0x1f3f   :  { %1932 = vst.msk [vmem:[#allocation3 + $0x1e] sm:$0x3] %vm685_vm8, %v1931_v9 }
0x1f40   :  { %1933 = vst.msk [vmem:[#allocation3] sm:$0x3] %vm687_vm9, %v1931_v9 }
0x1f46   :  { %v1937_v5 = vld [vmem:[#allocation3 + $0x18] sm:$0xff] }
0x1f47   :  { %v1934_v10 = vld [vmem:[#allocation3] sm:$0xff]  ;;  %v1939_v16 = vpack.c.bf16 %v1937_v5, %v1936_v11 }
0x1f48   :  { %v1938_v63 = vpack.c.bf16 %v1935_v12, %v1934_v10 }
0x1f4a   :  { %3878 = vmatmul.mubr.msk.bf16.vlgmr.msra.gmra.mrb[32].mxu1 %vm220_vm2, %v1938_v63 }
0x1f4b   :  { %2048 = vmatprep.mubr.bf16.mxu1 %v4288_v0  ;;  %2430 = vmatpush1.bf16.msra.mxu1 %v4920_v4 }
0x1f4c   :  { %2431 = vmatprep.subr.bf16.mxu1 %v4922_v13 }
0x1f4f   :  { %2432 = vmatpush1.bf16.msra.mxu1 %v4928_v6 }
0x1f50   :  { %2433 = vmatprep.subr.bf16.mxu1 %v4932_v47 }
0x1f52   :  { %3879 = vmatmul.mubr.msk.bf16.gmra.mrb[36].mxu1 %vm220_vm2, %v1939_v16 }
0x1f53   :  { %2434 = vmatpush1.bf16.msra.mxu1 %v4934_v14  ;;  %2461 = vmatprep.mubr.bf16.mxu1 %v4288_v0 }
0x1f54   :  { %2435 = vmatprep.subr.bf16.mxu1 %v4936_v54 }
0x1f57   :  { %2436 = vmatpush1.bf16.msra.mxu1 %v4940_v15 }
0x1f58   :  { %2591 = vmatprep.subr.bf16.mxu1 %v4918_v3 }
0x201d   :  { %v2040_v31 = vpop.f32.mrb[32].mxu1 }
0x201e   :  { %v2042_v61 = vpop.f32.mrb[33].mxu1  ;;  %v2041_v19 = vadd.f32 %v2040_v31, %v1953_v32 }
0x201f   :  { %v2044_v17 = vpop.f32.mrb[34].mxu1  ;;  %v4982_v37 = vadd.f32 %v2042_v61, %v1957_v18 }
0x2020   :  { %v2046_v33 = vpop.f32.mrb[35].mxu1  ;;  %v2045_v20 = vadd.f32 %v2044_v17, %v1953_v32  ;;  %v2249_v43 = vrot.slane %v2041_v19, 6  ;;  %v2267_v50 = vrot.slane %v2041_v19, 2 }
0x2021   :  { %v2047_v36 = vadd.f32 %v2046_v33, %v1957_v18  ;;  %v2250_v31 = vrot.slane %v4982_v37, 6  ;;  %v2268_v61 = vrot.slane %v4982_v37, 2 }
0x2022   :  { %v2189_v44 = vrot.slane %v2045_v20, 6  ;;  %v2207_v45 = vrot.slane %v2045_v20, 2 }
0x2023   :  { %v2190_v51 = vrot.slane %v2047_v36, 6  ;;  %v2208_v40 = vrot.slane %v2047_v36, 2 }
0x2025   :  { %v2050_v41 = vpop.f32.mrb[36].mxu1 }
0x2026   :  { %v2051_v48 = vadd.f32 %v2050_v41, %v1953_v32  ;;  %v2052_v49 = vpop.f32.mrb[37].mxu1 }
0x2027   :  { %v2053_v56 = vadd.f32 %v2052_v49, %v1957_v18  ;;  %v2054_v34 = vpop.f32.mrb[38].mxu1 }
0x2028   :  { %v2129_v24 = vrot.slane %v2051_v48, 6  ;;  %v2147_v62 = vrot.slane %v2051_v48, 2  ;;  %v2193_v39 = vsel %vm4550_vm5, %v2051_v48, %v2189_v44  ;;  %v2211_v46 = vsel %vm4550_vm5, %v2051_v48, %v2207_v45  ;;  %v2056_v1 = vpop.f32.mrb[39].mxu1 }
0x2029   :  { %v2130_v25 = vrot.slane %v2053_v56, 6  ;;  %v2148_v27 = vrot.slane %v2053_v56, 2  ;;  %v2194_v35 = vsel %vm4554_vm6, %v2053_v56, %v2190_v51  ;;  %v2212_v38 = vsel %vm4554_vm6, %v2053_v56, %v2208_v40 }
0x202a   :  { %v2133_v42 = vsel %vm4550_vm5, %v2045_v20, %v2129_v24  ;;  %v2151_v57 = vsel %vm4550_vm5, %v2045_v20, %v2147_v62  ;;  %v2197_v2 = vcombine.low %v2193_v39, %v2194_v35  ;;  %v2215_v28 = vcombine.low %v2211_v46, %v2212_v38 }
0x202b   :  { %v2134_v7 = vsel %vm4554_vm6, %v2047_v36, %v2130_v25  ;;  %v2152_v8 = vsel %vm4554_vm6, %v2047_v36, %v2148_v27  ;;  %v2226_v9 = vcombine.high %v2193_v39, %v2194_v35  ;;  %v2236_v10 = vcombine.high %v2211_v46, %v2212_v38 }
0x202c   :  { %v2137_v12 = vcombine.low %v2133_v42, %v2134_v7  ;;  %v2155_v63 = vcombine.low %v2151_v57, %v2152_v8  ;;  %v2166_v5 = vcombine.high %v2133_v42, %v2134_v7  ;;  %v2176_v11 = vcombine.high %v2151_v57, %v2152_v8  ;;  %3884 = vst.sshfl [vmem:[#allocation2 + $0x20] sm:$0x33 pattern:$0x76325410] %v2197_v2 }
0x202d   :  { %v2222_v16 = vrot.slane %v2215_v28, %v4559_v60  ;;  %3885 = vst.sshfl [vmem:[#allocation2 + $0x28] sm:$0x33 pattern:$0x76325410] %v2226_v9  ;;  %v2243_v22 = vrot.slane %v2236_v10, %v4559_v60  ;;  %v2055_v23 = vadd.f32 %v2054_v34, %v1953_v32  ;;  %v2057_v30 = vadd.f32 %v2056_v1, %v1957_v18 }
0x202e   :  { %3882 = vst.sshfl [vmem:[#allocation2 + $0x10] sm:$0x33 pattern:$0x76325410] %v2137_v12  ;;  %v2162_v17 = vrot.slane %v2155_v63, %v4559_v60  ;;  %v2183_v33 = vrot.slane %v2176_v11, %v4559_v60  ;;  %v2398_v7 = vrot.slane %v2391_v29, %v4559_v60 }
0x202f   :  { %3883 = vst.sshfl [vmem:[#allocation2 + $0x18] sm:$0x33 pattern:$0x76325410] %v2166_v5  ;;  %v2223_v20 = vcombine.high %v2222_v16, %v2222_v16  ;;  %v2244_v36 = vcombine.high %v2243_v22, %v2243_v22  ;;  %v2069_v41 = vrot.slane %v2055_v23, 6  ;;  %v2087_v44 = vrot.slane %v2055_v23, 2 }
0x2030   :  { %v2163_v45 = vcombine.high %v2162_v17, %v2162_v17  ;;  %v2184_v48 = vcombine.high %v2183_v33, %v2183_v33  ;;  %v2253_v32 = vsel %vm4550_vm5, %v2055_v23, %v2249_v43  ;;  %v2271_v18 = vsel %vm4550_vm5, %v2055_v23, %v2267_v50 }
0x2031   :  { %2225 = vst [vmem:[#allocation2 + $0x24] sm:$0xf] %v2223_v20  ;;  %2246 = vst [vmem:[#allocation2 + $0x2c] sm:$0xf] %v2244_v36  ;;  %v2073_v49 = vsel %vm4550_vm5, %v2041_v19, %v2069_v41  ;;  %v2091_v51 = vsel %vm4550_vm5, %v2041_v19, %v2087_v44  ;;  %v2070_v40 = vrot.slane %v2057_v30, 6  ;;  %v2088_v56 = vrot.slane %v2057_v30, 2 }
0x2032   :  { %2165 = vst [vmem:[#allocation2 + $0x14] sm:$0xf] %v2163_v45  ;;  %2186 = vst [vmem:[#allocation2 + $0x1c] sm:$0xf] %v2184_v48  ;;  %v2254_v34 = vsel %vm4554_vm6, %v2057_v30, %v2250_v31  ;;  %v2272_v43 = vsel %vm4554_vm6, %v2057_v30, %v2268_v61 }
0x2033   :  { %v2074_v50 = vsel %vm4554_vm6, %v4982_v37, %v2070_v40  ;;  %v2092_v24 = vsel %vm4554_vm6, %v4982_v37, %v2088_v56  ;;  %v2257_v58 = vcombine.low %v2253_v32, %v2254_v34  ;;  %v2275_v19 = vcombine.low %v2271_v18, %v2272_v43 }
0x2034   :  { %v2077_v62 = vcombine.low %v2073_v49, %v2074_v50  ;;  %v2095_v39 = vcombine.low %v2091_v51, %v2092_v24  ;;  %v2106_v46 = vcombine.high %v2073_v49, %v2074_v50  ;;  %v2116_v1 = vcombine.high %v2091_v51, %v2092_v24 }
0x2035   :  { %3886 = vst.sshfl [vmem:[#allocation2 + $0x30] sm:$0x33 pattern:$0x76325410] %v2257_v58  ;;  %v2282_v25 = vrot.slane %v2275_v19, %v4559_v60  ;;  %v2286_v27 = vcombine.high %v2253_v32, %v2254_v34  ;;  %v2296_v35 = vcombine.high %v2271_v18, %v2272_v43 }
0x2036   :  { %3880 = vst.sshfl [vmem:[#allocation2] sm:$0x33 pattern:$0x76325410] %v2077_v62  ;;  %v2102_v38 = vrot.slane %v2095_v39, %v4559_v60  ;;  %v2123_v42 = vrot.slane %v2116_v1, %v4559_v60 }
0x2037   :  { %3881 = vst.sshfl [vmem:[#allocation2 + $0x8] sm:$0x33 pattern:$0x76325410] %v2106_v46  ;;  %v2283_v57 = vcombine.high %v2282_v25, %v2282_v25  ;;  %v2303_v59 = vrot.slane %v2296_v35, %v4559_v60 }
0x2038   :  { %3887 = vst.sshfl [vmem:[#allocation2 + $0x38] sm:$0x33 pattern:$0x76325410] %v2286_v27  ;;  %v2103_v37 = vcombine.high %v2102_v38, %v2102_v38  ;;  %v2124_v2 = vcombine.high %v2123_v42, %v2123_v42 }
0x2039   :  { %2285 = vst [vmem:[#allocation2 + $0x34] sm:$0xf] %v2283_v57  ;;  %v2304_v28 = vcombine.high %v2303_v59, %v2303_v59 }
0x203a   :  { %2105 = vst [vmem:[#allocation2 + $0x4] sm:$0xf] %v2103_v37  ;;  %2126 = vst [vmem:[#allocation2 + $0xc] sm:$0xf] %v2124_v2 }
0x203b   :  { %2306 = vst [vmem:[#allocation2 + $0x3c] sm:$0xf] %v2304_v28 }
0x203d   :  { %v2307_v8 = vld [vmem:[#allocation2] sm:$0xf] }
0x203e   :  { %v2400_v9 = vadd.f32 %v2398_v7, %v2307_v8  ;;  %v2505_v42 = vld [vmem:[#allocation2 + $0x8] sm:$0xf] }
0x2040   :  { %4084 = vtanh.f32 %v2400_v9 }
0x2041   :  { %v2424_v45 = vld [vmem:[#allocation2 + $0x4] sm:$0xf] }
0x204a   :  { %v4085_v10 = vpop.eup %4084 }
0x204b   :  { %v2402_v12 = vmul.f32 %v4085_v10, %v4617_v52 }
0x204d   :  { %v2403_v63 = vadd.f32 %v2402_v12, %v4620_v53 }
0x204f   :  { %2415 = vrot.lane.b32.xlu1 %v2403_v63, %s4292_s3  ;;  %v2406_v5 = vrot.slane %v2403_v63, 2  ;;  %v2404_v16 = vmul.f32 0.0, %v2403_v63 }
0x2051   :  { %v2408_v11 = vmul.f32 %v2406_v5, %v2403_v63 }
0x2053   :  { %2410 = vrot.lane.b32.xlu0 %v2408_v11, %s4292_s3 }
0x20c1   :  { %v2416_v55 = vpop.permute.xlu1 %2415 }
0x20c2   :  { %v2417_v29 = vrot.slane %v2416_v55, 2 }
0x20c5   :  { %v2411_v22 = vpop.permute.xlu0 %2410 }
0x20c6   :  { %v2413_v23 = vadd.f32 %v2411_v22, %v2404_v16 }
0x20c8   :  { %4086 = vtanh.f32 %v2413_v23 }
0x20d2   :  { %v4087_v21 = vpop.eup %4086 }
0x20d3   :  { %2420 = vrot.lane.b32.xlu0 %v4087_v21, %s4292_s3 }
0x2145   :  { %v2421_v30 = vpop.permute.xlu0 %2420 }
0x2146   :  { %v2423_v31 = vmul.f32 %v2421_v30, %v2417_v29 }
0x2148   :  { %v2425_v61 = vpack.c.bf16 %v2423_v31, %v2423_v31 }
0x214a   :  { %3896 = vmatmul.mubr.msk.bf16.vlgmr.msra.gmra.mrb[40].mxu1 %vm220_vm2, %v2425_v61  ;;  %v2586_v61 = vld [vmem:[#allocation2 + $0xc] sm:$0xf] }
0x214b   :  { %2592 = vmatpush1.bf16.msra.mxu1 %v4920_v4  ;;  %2623 = vmatprep.mubr.bf16.mxu1 %v4288_v0 }
0x214c   :  { %2593 = vmatprep.subr.bf16.mxu1 %v4922_v13 }
0x214f   :  { %2594 = vmatpush1.bf16.msra.mxu1 %v4928_v6 }
0x2150   :  { %2595 = vmatprep.subr.bf16.mxu1 %v4932_v47 }
0x2153   :  { %2596 = vmatpush1.bf16.msra.mxu1 %v4934_v14 }
0x2154   :  { %2597 = vmatprep.subr.bf16.mxu1 %v4936_v54 }
0x2157   :  { %2598 = vmatpush1.bf16.msra.mxu1 %v4940_v15 }
0x2158   :  { %2753 = vmatprep.subr.bf16.mxu1 %v4918_v3 }
0x221d   :  { %v2463_v17 = vpop.f32.mrb[40].mxu1 }
0x221e   :  { %v2465_v33 = vpop.f32.mrb[41].mxu1 }
0x221f   :  { %v2472_v20 = vcombine.low %v2463_v17, %v2465_v33  ;;  %v2467_v36 = vpop.f32.mrb[42].mxu1 }
0x2220   :  { %v2468_v41 = vpop.f32.mrb[43].mxu1 }
0x2221   :  { %v2479_v44 = vrot.slane %v2472_v20, %v4559_v60 }
0x2223   :  { %v2481_v48 = vadd.f32 %v2479_v44, %v2424_v45 }
0x2225   :  { %4088 = vtanh.f32 %v2481_v48 }
0x222f   :  { %v4089_v32 = vpop.eup %4088 }
0x2230   :  { %v2483_v18 = vmul.f32 %v4089_v32, %v4617_v52 }
0x2232   :  { %v2484_v49 = vadd.f32 %v2483_v18, %v4620_v53 }
0x2234   :  { %2496 = vrot.lane.b32.xlu0 %v2484_v49, %s4292_s3  ;;  %v2487_v51 = vrot.slane %v2484_v49, 2  ;;  %v2485_v56 = vmul.f32 %v2484_v49, %v2413_v23 }
0x2236   :  { %v2489_v40 = vmul.f32 %v2487_v51, %v2484_v49 }
0x2238   :  { %2491 = vrot.lane.b32.xlu1 %v2489_v40, %s4292_s3 }
0x22a6   :  { %v2497_v24 = vpop.permute.xlu0 %2496 }
0x22a7   :  { %v2498_v58 = vrot.slane %v2497_v24, 2 }
0x22aa   :  { %v2492_v34 = vpop.permute.xlu1 %2491 }
0x22ab   :  { %v2494_v43 = vadd.f32 %v2492_v34, %v2485_v56 }
0x22ad   :  { %4090 = vtanh.f32 %v2494_v43 }
0x22b7   :  { %v4091_v50 = vpop.eup %4090 }
0x22b8   :  { %2501 = vrot.lane.b32.xlu1 %v4091_v50, %s4292_s3 }
0x232a   :  { %v2502_v19 = vpop.permute.xlu1 %2501 }
0x232b   :  { %v2504_v62 = vmul.f32 %v2502_v19, %v2498_v58 }
0x232d   :  { %v2506_v39 = vpack.c.bf16 %v2504_v62, %v2504_v62 }
0x232f   :  { %3897 = vmatmul.mubr.msk.bf16.vlgmr.msra.gmra.mrb[44].mxu0 %vm220_vm2, %v2506_v39  ;;  %v2667_v39 = vld [vmem:[#allocation2 + $0x10] sm:$0xf] }
0x2330   :  { %2673 = vmatpush1.bf16.msra.mxu0 %v4920_v4  ;;  %2704 = vmatprep.mubr.bf16.mxu0 %v4288_v0 }
0x2331   :  { %2674 = vmatprep.subr.bf16.mxu0 %v4922_v13 }
0x2334   :  { %2675 = vmatpush1.bf16.msra.mxu0 %v4928_v6 }
0x2335   :  { %2676 = vmatprep.subr.bf16.mxu0 %v4932_v47 }
0x2338   :  { %2677 = vmatpush1.bf16.msra.mxu0 %v4934_v14 }
0x2339   :  { %2678 = vmatprep.subr.bf16.mxu0 %v4936_v54 }
0x233c   :  { %2679 = vmatpush1.bf16.msra.mxu0 %v4940_v15 }
0x233d   :  { %2834 = vmatprep.subr.bf16.mxu0 %v4918_v3 }
0x2402   :  { %v2544_v46 = vpop.f32.mrb[44].mxu0 }
0x2403   :  { %v2546_v1 = vpop.f32.mrb[45].mxu0 }
0x2404   :  { %v2553_v25 = vcombine.low %v2544_v46, %v2546_v1  ;;  %v2548_v27 = vpop.f32.mrb[46].mxu0 }
0x2405   :  { %v2549_v35 = vpop.f32.mrb[47].mxu0 }
0x2406   :  { %v2560_v38 = vrot.slane %v2553_v25, %v4559_v60 }
0x2408   :  { %v2562_v57 = vadd.f32 %v2560_v38, %v2505_v42 }
0x240a   :  { %4092 = vtanh.f32 %v2562_v57 }
0x2414   :  { %v4093_v59 = vpop.eup %4092 }
0x2415   :  { %v2564_v37 = vmul.f32 %v4093_v59, %v4617_v52 }
0x2417   :  { %v2565_v2 = vadd.f32 %v2564_v37, %v4620_v53 }
0x2419   :  { %2577 = vrot.lane.b32.xlu1 %v2565_v2, %s4292_s3  ;;  %v2568_v28 = vrot.slane %v2565_v2, 2  ;;  %v2566_v8 = vmul.f32 %v2565_v2, %v2494_v43 }
0x241b   :  { %v2570_v7 = vmul.f32 %v2568_v28, %v2565_v2 }
0x241d   :  { %2572 = vrot.lane.b32.xlu0 %v2570_v7, %s4292_s3 }
0x248b   :  { %v2578_v63 = vpop.permute.xlu1 %2577 }
0x248c   :  { %v2579_v5 = vrot.slane %v2578_v63, 2 }
0x248f   :  { %v2573_v9 = vpop.permute.xlu0 %2572 }
0x2490   :  { %v2575_v10 = vadd.f32 %v2573_v9, %v2566_v8 }
0x2492   :  { %4094 = vtanh.f32 %v2575_v10 }
0x249c   :  { %v4095_v12 = vpop.eup %4094 }
0x249d   :  { %2582 = vrot.lane.b32.xlu0 %v4095_v12, %s4292_s3 }
0x250f   :  { %v2583_v11 = vpop.permute.xlu0 %2582 }
0x2510   :  { %v2585_v16 = vmul.f32 %v2583_v11, %v2579_v5 }
0x2512   :  { %v2587_v22 = vpack.c.bf16 %v2585_v16, %v2585_v16 }
0x2514   :  { %3898 = vmatmul.mubr.msk.bf16.vlgmr.msra.gmra.mrb[44].mxu1 %vm220_vm2, %v2587_v22  ;;  %v2748_v22 = vld [vmem:[#allocation2 + $0x14] sm:$0xf] }
0x2515   :  { %2754 = vmatpush1.bf16.msra.mxu1 %v4920_v4  ;;  %2785 = vmatprep.mubr.bf16.mxu1 %v4288_v0 }
0x2516   :  { %2755 = vmatprep.subr.bf16.mxu1 %v4922_v13 }
0x2519   :  { %2756 = vmatpush1.bf16.msra.mxu1 %v4928_v6 }
0x251a   :  { %2757 = vmatprep.subr.bf16.mxu1 %v4932_v47 }
0x251d   :  { %2758 = vmatpush1.bf16.msra.mxu1 %v4934_v14 }
0x251e   :  { %2759 = vmatprep.subr.bf16.mxu1 %v4936_v54 }
0x2521   :  { %2760 = vmatpush1.bf16.msra.mxu1 %v4940_v15 }
0x2522   :  { %2915 = vmatprep.subr.bf16.mxu1 %v4918_v3 }
0x25e7   :  { %v2625_v23 = vpop.f32.mrb[44].mxu1 }
0x25e8   :  { %v2627_v21 = vpop.f32.mrb[45].mxu1 }
0x25e9   :  { %v2634_v55 = vcombine.low %v2625_v23, %v2627_v21  ;;  %v2629_v29 = vpop.f32.mrb[46].mxu1 }
0x25ea   :  { %v2630_v30 = vpop.f32.mrb[47].mxu1 }
0x25eb   :  { %v2641_v31 = vrot.slane %v2634_v55, %v4559_v60 }
0x25ed   :  { %v2643_v17 = vadd.f32 %v2641_v31, %v2586_v61 }
0x25ef   :  { %4096 = vtanh.f32 %v2643_v17 }
0x25f9   :  { %v4097_v33 = vpop.eup %4096 }
0x25fa   :  { %v2645_v20 = vmul.f32 %v4097_v33, %v4617_v52 }
0x25fc   :  { %v2646_v36 = vadd.f32 %v2645_v20, %v4620_v53 }
0x25fe   :  { %2658 = vrot.lane.b32.xlu0 %v2646_v36, %s4292_s3  ;;  %v2649_v41 = vrot.slane %v2646_v36, 2  ;;  %v2647_v45 = vmul.f32 %v2646_v36, %v2575_v10 }
0x2600   :  { %v2651_v44 = vmul.f32 %v2649_v41, %v2646_v36 }
0x2602   :  { %2653 = vrot.lane.b32.xlu1 %v2651_v44, %s4292_s3 }
0x2670   :  { %v2659_v49 = vpop.permute.xlu0 %2658 }
0x2671   :  { %v2660_v51 = vrot.slane %v2659_v49, 2 }
0x2674   :  { %v2654_v48 = vpop.permute.xlu1 %2653 }
0x2675   :  { %v2656_v32 = vadd.f32 %v2654_v48, %v2647_v45 }
0x2677   :  { %4098 = vtanh.f32 %v2656_v32 }
0x2681   :  { %v4099_v18 = vpop.eup %4098 }
0x2682   :  { %2663 = vrot.lane.b32.xlu1 %v4099_v18, %s4292_s3 }
0x26f4   :  { %v2664_v40 = vpop.permute.xlu1 %2663 }
0x26f5   :  { %v2666_v56 = vmul.f32 %v2664_v40, %v2660_v51 }
0x26f7   :  { %v2668_v34 = vpack.c.bf16 %v2666_v56, %v2666_v56 }
0x26f9   :  { %3899 = vmatmul.mubr.msk.bf16.vlgmr.msra.gmra.mrb[48].mxu0 %vm220_vm2, %v2668_v34  ;;  %v2829_v34 = vld [vmem:[#allocation2 + $0x18] sm:$0xf] }
0x26fa   :  { %2835 = vmatpush1.bf16.msra.mxu0 %v4920_v4  ;;  %2866 = vmatprep.mubr.bf16.mxu0 %v4288_v0 }
0x26fb   :  { %2836 = vmatprep.subr.bf16.mxu0 %v4922_v13 }
0x26fe   :  { %2837 = vmatpush1.bf16.msra.mxu0 %v4928_v6 }
0x26ff   :  { %2838 = vmatprep.subr.bf16.mxu0 %v4932_v47 }
0x2702   :  { %2839 = vmatpush1.bf16.msra.mxu0 %v4934_v14 }
0x2703   :  { %2840 = vmatprep.subr.bf16.mxu0 %v4936_v54 }
0x2706   :  { %2841 = vmatpush1.bf16.msra.mxu0 %v4940_v15 }
0x2707   :  { %2996 = vmatprep.subr.bf16.mxu0 %v4918_v3 }
0x27cc   :  { %v2706_v43 = vpop.f32.mrb[48].mxu0 }
0x27cd   :  { %v2708_v50 = vpop.f32.mrb[49].mxu0 }
0x27ce   :  { %v2715_v24 = vcombine.low %v2706_v43, %v2708_v50  ;;  %v2710_v58 = vpop.f32.mrb[50].mxu0 }
0x27cf   :  { %v2711_v19 = vpop.f32.mrb[51].mxu0 }
0x27d0   :  { %v2722_v62 = vrot.slane %v2715_v24, %v4559_v60 }
0x27d2   :  { %v2724_v46 = vadd.f32 %v2722_v62, %v2667_v39 }
0x27d4   :  { %4100 = vtanh.f32 %v2724_v46 }
0x27de   :  { %v4101_v1 = vpop.eup %4100 }
0x27df   :  { %v2726_v25 = vmul.f32 %v4101_v1, %v4617_v52 }
0x27e1   :  { %v2727_v27 = vadd.f32 %v2726_v25, %v4620_v53 }
0x27e3   :  { %2739 = vrot.lane.b32.xlu1 %v2727_v27, %s4292_s3  ;;  %v2730_v35 = vrot.slane %v2727_v27, 2  ;;  %v2728_v42 = vmul.f32 %v2727_v27, %v2656_v32 }
0x27e5   :  { %v2732_v38 = vmul.f32 %v2730_v35, %v2727_v27 }
0x27e7   :  { %2734 = vrot.lane.b32.xlu0 %v2732_v38, %s4292_s3 }
0x2855   :  { %v2740_v2 = vpop.permute.xlu1 %2739 }
0x2856   :  { %v2741_v28 = vrot.slane %v2740_v2, 2 }
0x2859   :  { %v2735_v57 = vpop.permute.xlu0 %2734 }
0x285a   :  { %v2737_v59 = vadd.f32 %v2735_v57, %v2728_v42 }
0x285c   :  { %4102 = vtanh.f32 %v2737_v59 }
0x2866   :  { %v4103_v37 = vpop.eup %4102 }
0x2867   :  { %2744 = vrot.lane.b32.xlu0 %v4103_v37, %s4292_s3 }
0x28d9   :  { %v2745_v7 = vpop.permute.xlu0 %2744 }
0x28da   :  { %v2747_v8 = vmul.f32 %v2745_v7, %v2741_v28 }
0x28dc   :  { %v2749_v9 = vpack.c.bf16 %v2747_v8, %v2747_v8 }
0x28de   :  { %3900 = vmatmul.mubr.msk.bf16.vlgmr.msra.gmra.mrb[48].mxu1 %vm220_vm2, %v2749_v9  ;;  %v2910_v9 = vld [vmem:[#allocation2 + $0x1c] sm:$0xf] }
0x28df   :  { %2916 = vmatpush1.bf16.msra.mxu1 %v4920_v4  ;;  %2947 = vmatprep.mubr.bf16.mxu1 %v4288_v0 }
0x28e0   :  { %2917 = vmatprep.subr.bf16.mxu1 %v4922_v13 }
0x28e3   :  { %2918 = vmatpush1.bf16.msra.mxu1 %v4928_v6 }
0x28e4   :  { %2919 = vmatprep.subr.bf16.mxu1 %v4932_v47 }
0x28e7   :  { %2920 = vmatpush1.bf16.msra.mxu1 %v4934_v14 }
0x28e8   :  { %2921 = vmatprep.subr.bf16.mxu1 %v4936_v54 }
0x28eb   :  { %2922 = vmatpush1.bf16.msra.mxu1 %v4940_v15 }
0x28ec   :  { %3077 = vmatprep.subr.bf16.mxu1 %v4918_v3 }
0x29b1   :  { %v2787_v10 = vpop.f32.mrb[48].mxu1 }
0x29b2   :  { %v2789_v12 = vpop.f32.mrb[49].mxu1 }
0x29b3   :  { %v2796_v63 = vcombine.low %v2787_v10, %v2789_v12  ;;  %v2791_v5 = vpop.f32.mrb[50].mxu1 }
0x29b4   :  { %v2792_v11 = vpop.f32.mrb[51].mxu1 }
0x29b5   :  { %v2803_v16 = vrot.slane %v2796_v63, %v4559_v60 }
0x29b7   :  { %v2805_v23 = vadd.f32 %v2803_v16, %v2748_v22 }
0x29b9   :  { %4104 = vtanh.f32 %v2805_v23 }
0x29c3   :  { %v4105_v21 = vpop.eup %4104 }
0x29c4   :  { %v2807_v55 = vmul.f32 %v4105_v21, %v4617_v52 }
0x29c6   :  { %v2808_v29 = vadd.f32 %v2807_v55, %v4620_v53 }
0x29c8   :  { %2820 = vrot.lane.b32.xlu0 %v2808_v29, %s4292_s3  ;;  %v2811_v30 = vrot.slane %v2808_v29, 2  ;;  %v2809_v61 = vmul.f32 %v2808_v29, %v2737_v59 }
0x29ca   :  { %v2813_v31 = vmul.f32 %v2811_v30, %v2808_v29 }
0x29cc   :  { %2815 = vrot.lane.b32.xlu1 %v2813_v31, %s4292_s3 }
0x2a3a   :  { %v2821_v36 = vpop.permute.xlu0 %2820 }
0x2a3b   :  { %v2822_v41 = vrot.slane %v2821_v36, 2 }
0x2a3e   :  { %v2816_v17 = vpop.permute.xlu1 %2815 }
0x2a3f   :  { %v2818_v33 = vadd.f32 %v2816_v17, %v2809_v61 }
0x2a41   :  { %4106 = vtanh.f32 %v2818_v33 }
0x2a4b   :  { %v4107_v20 = vpop.eup %4106 }
0x2a4c   :  { %2825 = vrot.lane.b32.xlu1 %v4107_v20, %s4292_s3 }
0x2abe   :  { %v2826_v44 = vpop.permute.xlu1 %2825 }
0x2abf   :  { %v2828_v45 = vmul.f32 %v2826_v44, %v2822_v41 }
0x2ac1   :  { %v2830_v48 = vpack.c.bf16 %v2828_v45, %v2828_v45 }
0x2ac3   :  { %3901 = vmatmul.mubr.msk.bf16.vlgmr.msra.gmra.mrb[52].mxu0 %vm220_vm2, %v2830_v48  ;;  %v2991_v48 = vld [vmem:[#allocation2 + $0x20] sm:$0xf] }
0x2ac4   :  { %2997 = vmatpush1.bf16.msra.mxu0 %v4920_v4  ;;  %3028 = vmatprep.mubr.bf16.mxu0 %v4288_v0 }
0x2ac5   :  { %2998 = vmatprep.subr.bf16.mxu0 %v4922_v13 }
0x2ac8   :  { %2999 = vmatpush1.bf16.msra.mxu0 %v4928_v6 }
0x2ac9   :  { %3000 = vmatprep.subr.bf16.mxu0 %v4932_v47 }
0x2acc   :  { %3001 = vmatpush1.bf16.msra.mxu0 %v4934_v14 }
0x2acd   :  { %3002 = vmatprep.subr.bf16.mxu0 %v4936_v54 }
0x2ad0   :  { %3003 = vmatpush1.bf16.msra.mxu0 %v4940_v15 }
0x2ad1   :  { %3158 = vmatprep.subr.bf16.mxu0 %v4918_v3 }
0x2b96   :  { %v2868_v32 = vpop.f32.mrb[52].mxu0 }
0x2b97   :  { %v2870_v18 = vpop.f32.mrb[53].mxu0 }
0x2b98   :  { %v2877_v49 = vcombine.low %v2868_v32, %v2870_v18  ;;  %v2872_v51 = vpop.f32.mrb[54].mxu0 }
0x2b99   :  { %v2873_v40 = vpop.f32.mrb[55].mxu0 }
0x2b9a   :  { %v2884_v56 = vrot.slane %v2877_v49, %v4559_v60 }
0x2b9c   :  { %v2886_v43 = vadd.f32 %v2884_v56, %v2829_v34 }
0x2b9e   :  { %4108 = vtanh.f32 %v2886_v43 }
0x2ba8   :  { %v4109_v50 = vpop.eup %4108 }
0x2ba9   :  { %v2888_v24 = vmul.f32 %v4109_v50, %v4617_v52 }
0x2bab   :  { %v2889_v58 = vadd.f32 %v2888_v24, %v4620_v53 }
0x2bad   :  { %2901 = vrot.lane.b32.xlu1 %v2889_v58, %s4292_s3  ;;  %v2892_v19 = vrot.slane %v2889_v58, 2  ;;  %v2890_v39 = vmul.f32 %v2889_v58, %v2818_v33 }
0x2baf   :  { %v2894_v62 = vmul.f32 %v2892_v19, %v2889_v58 }
0x2bb1   :  { %2896 = vrot.lane.b32.xlu0 %v2894_v62, %s4292_s3 }
0x2c1f   :  { %v2902_v27 = vpop.permute.xlu1 %2901 }
0x2c20   :  { %v2903_v35 = vrot.slane %v2902_v27, 2 }
0x2c23   :  { %v2897_v46 = vpop.permute.xlu0 %2896 }
0x2c24   :  { %v2899_v1 = vadd.f32 %v2897_v46, %v2890_v39 }
0x2c26   :  { %4110 = vtanh.f32 %v2899_v1 }
0x2c30   :  { %v4111_v25 = vpop.eup %4110 }
0x2c31   :  { %2906 = vrot.lane.b32.xlu0 %v4111_v25, %s4292_s3 }
0x2ca3   :  { %v2907_v38 = vpop.permute.xlu0 %2906 }
0x2ca4   :  { %v2909_v42 = vmul.f32 %v2907_v38, %v2903_v35 }
0x2ca6   :  { %v2911_v57 = vpack.c.bf16 %v2909_v42, %v2909_v42 }
0x2ca8   :  { %3902 = vmatmul.mubr.msk.bf16.vlgmr.msra.gmra.mrb[52].mxu1 %vm220_vm2, %v2911_v57 }
0x2ca9   :  { %3078 = vmatpush1.bf16.msra.mxu1 %v4920_v4  ;;  %3109 = vmatprep.mubr.bf16.mxu1 %v4288_v0 }
0x2caa   :  { %3079 = vmatprep.subr.bf16.mxu1 %v4922_v13 }
0x2cad   :  { %3080 = vmatpush1.bf16.msra.mxu1 %v4928_v6 }
0x2cae   :  { %3081 = vmatprep.subr.bf16.mxu1 %v4932_v47 }
0x2cb1   :  { %3082 = vmatpush1.bf16.msra.mxu1 %v4934_v14 }
0x2cb2   :  { %3083 = vmatprep.subr.bf16.mxu1 %v4936_v54 }
0x2cb5   :  { %3084 = vmatpush1.bf16.msra.mxu1 %v4940_v15 }
0x2cb6   :  { %3239 = vmatprep.subr.bf16.mxu1 %v4918_v3 }
0x2d7b   :  { %v2949_v59 = vpop.f32.mrb[52].mxu1 }
0x2d7c   :  { %v2951_v37 = vpop.f32.mrb[53].mxu1 }
0x2d7d   :  { %v2958_v2 = vcombine.low %v2949_v59, %v2951_v37  ;;  %v2953_v28 = vpop.f32.mrb[54].mxu1 }
0x2d7e   :  { %v2954_v7 = vpop.f32.mrb[55].mxu1 }
0x2d7f   :  { %v2965_v8 = vrot.slane %v2958_v2, %v4559_v60 }
0x2d81   :  { %v2967_v10 = vadd.f32 %v2965_v8, %v2910_v9 }
0x2d83   :  { %4112 = vtanh.f32 %v2967_v10 }
0x2d8d   :  { %v4113_v12 = vpop.eup %4112 }
0x2d8e   :  { %v2969_v63 = vmul.f32 %v4113_v12, %v4617_v52 }
0x2d90   :  { %v2970_v5 = vadd.f32 %v2969_v63, %v4620_v53 }
0x2d92   :  { %2982 = vrot.lane.b32.xlu0 %v2970_v5, %s4292_s3  ;;  %v2973_v11 = vrot.slane %v2970_v5, 2  ;;  %v2971_v22 = vmul.f32 %v2970_v5, %v2899_v1 }
0x2d94   :  { %v2975_v16 = vmul.f32 %v2973_v11, %v2970_v5 }
0x2d96   :  { %2977 = vrot.lane.b32.xlu1 %v2975_v16, %s4292_s3  ;;  %v5182_v16 = vld [vmem:[#allocation7] ss:$8 sps:$4 sm:$0xff]  }
0x2e04   :  { %v2983_v29 = vpop.permute.xlu0 %2982 }
0x2e05   :  { %v2984_v30 = vrot.slane %v2983_v29, 2 }
0x2e08   :  { %v2978_v23 = vpop.permute.xlu1 %2977 }
0x2e09   :  { %v2980_v21 = vadd.f32 %v2978_v23, %v2971_v22  ;;  %v5186_v22 = vld [vmem:[#allocation7 + $0x14] ss:$8 sps:$4 sm:$0xff]   ;;  %v4158_v23 = vld [vmem:[#allocation7 + $0x4] ss:$8 sps:$4 sm:$0xff]  }
0x2e0b   :  { %4114 = vtanh.f32 %v2980_v21 }
0x2e15   :  { %v4115_v55 = vpop.eup %4114 }
0x2e16   :  { %2987 = vrot.lane.b32.xlu1 %v4115_v55, %s4292_s3 }
0x2e88   :  { %v2988_v31 = vpop.permute.xlu1 %2987 }
0x2e89   :  { %v2990_v61 = vmul.f32 %v2988_v31, %v2984_v30 }
0x2e8b   :  { %v2992_v17 = vpack.c.bf16 %v2990_v61, %v2990_v61 }
0x2e8d   :  { %3903 = vmatmul.mubr.msk.bf16.vlgmr.msra.gmra.mrb[56].mxu0 %vm220_vm2, %v2992_v17  ;;  %v3153_v17 = vld [vmem:[#allocation2 + $0x28] sm:$0xf] }
0x2e8e   :  { %3159 = vmatpush1.bf16.msra.mxu0 %v4920_v4  ;;  %3190 = vmatprep.mubr.bf16.mxu0 %v4288_v0 }
0x2e8f   :  { %3160 = vmatprep.subr.bf16.mxu0 %v4922_v13 }
0x2e92   :  { %3161 = vmatpush1.bf16.msra.mxu0 %v4928_v6 }
0x2e93   :  { %3162 = vmatprep.subr.bf16.mxu0 %v4932_v47 }
0x2e96   :  { %3163 = vmatpush1.bf16.msra.mxu0 %v4934_v14 }
0x2e97   :  { %3164 = vmatprep.subr.bf16.mxu0 %v4936_v54 }
0x2e9a   :  { %3165 = vmatpush1.bf16.msra.mxu0 %v4940_v15 }
0x2e9b   :  { %3320 = vmatprep.subr.bf16.mxu0 %v4918_v3 }
0x2f60   :  { %v3030_v33 = vpop.f32.mrb[56].mxu0 }
0x2f61   :  { %v3032_v20 = vpop.f32.mrb[57].mxu0 }
0x2f62   :  { %v3039_v36 = vcombine.low %v3030_v33, %v3032_v20  ;;  %v3034_v41 = vpop.f32.mrb[58].mxu0 }
0x2f63   :  { %v3035_v44 = vpop.f32.mrb[59].mxu0 }
0x2f64   :  { %v3046_v45 = vrot.slane %v3039_v36, %v4559_v60 }
0x2f66   :  { %v3048_v32 = vadd.f32 %v3046_v45, %v2991_v48 }
0x2f68   :  { %4116 = vtanh.f32 %v3048_v32 }
0x2f72   :  { %v4117_v18 = vpop.eup %4116 }
0x2f73   :  { %v3050_v49 = vmul.f32 %v4117_v18, %v4617_v52 }
0x2f75   :  { %v3051_v51 = vadd.f32 %v3050_v49, %v4620_v53 }
0x2f77   :  { %3063 = vrot.lane.b32.xlu1 %v3051_v51, %s4292_s3  ;;  %v3054_v40 = vrot.slane %v3051_v51, 2  ;;  %v3052_v34 = vmul.f32 %v3051_v51, %v2980_v21 }
0x2f79   :  { %v3056_v56 = vmul.f32 %v3054_v40, %v3051_v51  ;;  %v5204_v51 = vld [vmem:[#allocation7 + $0x10] ss:$8 sps:$4 sm:$0xff]   ;;  %v5207_v40 = vld [vmem:[#allocation7 + $0x24] ss:$8 sps:$4 sm:$0xff]  }
0x2f7b   :  { %3058 = vrot.lane.b32.xlu0 %v3056_v56, %s4292_s3  ;;  %v5210_v56 = vld [vmem:[#allocation7 + $0x20] ss:$8 sps:$4 sm:$0xff]  }
0x2fe9   :  { %v3064_v58 = vpop.permute.xlu1 %3063 }
0x2fea   :  { %v3065_v19 = vrot.slane %v3064_v58, 2 }
0x2fed   :  { %v3059_v43 = vpop.permute.xlu0 %3058 }
0x2fee   :  { %v3061_v50 = vadd.f32 %v3059_v43, %v3052_v34  ;;  %v5213_v34 = vld [vmem:[#allocation7 + $0x34] ss:$8 sps:$4 sm:$0xff]   ;;  %v5216_v43 = vld [vmem:[#allocation7 + $0x30] ss:$8 sps:$4 sm:$0xff]  }
0x2ff0   :  { %4118 = vtanh.f32 %v3061_v50 }
0x2ffa   :  { %v4119_v24 = vpop.eup %4118 }
0x2ffb   :  { %3068 = vrot.lane.b32.xlu0 %v4119_v24, %s4292_s3 }
0x306d   :  { %v3069_v62 = vpop.permute.xlu0 %3068 }
0x306e   :  { %v3071_v39 = vmul.f32 %v3069_v62, %v3065_v19 }
0x3070   :  { %v3073_v46 = vpack.c.bf16 %v3071_v39, %v3071_v39 }
0x3072   :  { %3904 = vmatmul.mubr.msk.bf16.vlgmr.msra.gmra.mrb[56].mxu1 %vm220_vm2, %v3073_v46  ;;  %v3234_v46 = vld [vmem:[#allocation2 + $0x2c] sm:$0xf] }
0x3073   :  { %3240 = vmatpush1.bf16.msra.mxu1 %v4920_v4  ;;  %3271 = vmatprep.mubr.bf16.mxu1 %v4288_v0 }
0x3074   :  { %3241 = vmatprep.subr.bf16.mxu1 %v4922_v13  ;;  %v3072_v13 = vld [vmem:[#allocation2 + $0x24] sm:$0xf] }
0x3077   :  { %3242 = vmatpush1.bf16.msra.mxu1 %v4928_v6 }
0x3078   :  { %3243 = vmatprep.subr.bf16.mxu1 %v4932_v47 }
0x307b   :  { %3244 = vmatpush1.bf16.msra.mxu1 %v4934_v14 }
0x307c   :  { %3245 = vmatprep.subr.bf16.mxu1 %v4936_v54 }
0x307f   :  { %3246 = vmatpush1.bf16.msra.mxu1 %v4940_v15 }
0x3080   :  { %3401 = vmatprep.subr.bf16.mxu1 %v4918_v3 }
0x3145   :  { %v3111_v1 = vpop.f32.mrb[56].mxu1 }
0x3146   :  { %v3113_v25 = vpop.f32.mrb[57].mxu1 }
0x3147   :  { %v3120_v27 = vcombine.low %v3111_v1, %v3113_v25  ;;  %v3115_v4 = vpop.f32.mrb[58].mxu1 }
0x3148   :  { %v3116_v35 = vpop.f32.mrb[59].mxu1 }
0x3149   :  { %v3127_v38 = vrot.slane %v3120_v27, %v4559_v60 }
0x314b   :  { %v3129_v42 = vadd.f32 %v3127_v38, %v3072_v13 }
0x314d   :  { %4120 = vtanh.f32 %v3129_v42 }
0x3157   :  { %v4121_v57 = vpop.eup %4120 }
0x3158   :  { %v3131_v59 = vmul.f32 %v4121_v57, %v4617_v52 }
0x315a   :  { %v3132_v37 = vadd.f32 %v3131_v59, %v4620_v53 }
0x315c   :  { %3144 = vrot.lane.b32.xlu0 %v3132_v37, %s4292_s3  ;;  %v3135_v2 = vrot.slane %v3132_v37, 2  ;;  %v3133_v3 = vmul.f32 %v3132_v37, %v3061_v50 }
0x315e   :  { %v3137_v28 = vmul.f32 %v3135_v2, %v3132_v37 }
0x3160   :  { %3139 = vrot.lane.b32.xlu1 %v3137_v28, %s4292_s3 }
0x31ce   :  { %v3145_v10 = vpop.permute.xlu0 %3144 }
0x31cf   :  { %v3146_v12 = vrot.slane %v3145_v10, 2 }
0x31d2   :  { %v3140_v7 = vpop.permute.xlu1 %3139 }
0x31d3   :  { %v3142_v8 = vadd.f32 %v3140_v7, %v3133_v3 }
0x31d5   :  { %4122 = vtanh.f32 %v3142_v8 }
0x31df   :  { %v4123_v9 = vpop.eup %4122 }
0x31e0   :  { %3149 = vrot.lane.b32.xlu1 %v4123_v9, %s4292_s3 }
0x3252   :  { %v3150_v63 = vpop.permute.xlu1 %3149 }
0x3253   :  { %v3152_v5 = vmul.f32 %v3150_v63, %v3146_v12 }
0x3255   :  { %v3154_v11 = vpack.c.bf16 %v3152_v5, %v3152_v5 }
0x3257   :  { %3905 = vmatmul.mubr.msk.bf16.vlgmr.msra.gmra.mrb[60].mxu0 %vm220_vm2, %v3154_v11  ;;  %v3315_v11 = vld [vmem:[#allocation2 + $0x30] sm:$0xf] }
0x3258   :  { %3321 = vmatpush1.bf16.msra.mxu0 %v5182_v16  ;;  %3352 = vmatprep.mubr.bf16.mxu0 %v4288_v0 }
0x3259   :  { %3322 = vmatprep.subr.bf16.mxu0 %v5186_v22 }
0x325c   :  { %3323 = vmatpush1.bf16.msra.mxu0 %v4928_v6 }
0x325d   :  { %3324 = vmatprep.subr.bf16.mxu0 %v4932_v47 }
0x3260   :  { %3325 = vmatpush1.bf16.msra.mxu0 %v4934_v14 }
0x3261   :  { %3326 = vmatprep.subr.bf16.mxu0 %v4936_v54 }
0x3264   :  { %3327 = vmatpush1.bf16.msra.mxu0 %v4940_v15 }
0x3265   :  { %3482 = vmatprep.subr.bf16.mxu0 %v4158_v23 }
0x332a   :  { %v3192_v21 = vpop.f32.mrb[60].mxu0 }
0x332b   :  { %v3194_v55 = vpop.f32.mrb[61].mxu0 }
0x332c   :  { %v3201_v29 = vcombine.low %v3192_v21, %v3194_v55  ;;  %v3196_v30 = vpop.f32.mrb[62].mxu0 }
0x332d   :  { %v3197_v31 = vpop.f32.mrb[63].mxu0 }
0x332e   :  { %v3208_v61 = vrot.slane %v3201_v29, %v4559_v60 }
0x3330   :  { %v3210_v33 = vadd.f32 %v3208_v61, %v3153_v17 }
0x3332   :  { %4124 = vtanh.f32 %v3210_v33 }
0x333c   :  { %v4125_v6 = vpop.eup %4124 }
0x333d   :  { %v3212_v47 = vmul.f32 %v4125_v6, %v4617_v52 }
0x333f   :  { %v3213_v14 = vadd.f32 %v3212_v47, %v4620_v53 }
0x3341   :  { %3225 = vrot.lane.b32.xlu1 %v3213_v14, %s4292_s3  ;;  %v3216_v54 = vrot.slane %v3213_v14, 2  ;;  %v3214_v20 = vmul.f32 %v3213_v14, %v3142_v8 }
0x3343   :  { %v3218_v15 = vmul.f32 %v3216_v54, %v3213_v14 }
0x3345   :  { %3220 = vrot.lane.b32.xlu0 %v3218_v15, %s4292_s3 }
0x33b3   :  { %v3226_v45 = vpop.permute.xlu1 %3225 }
0x33b4   :  { %v3227_v48 = vrot.slane %v3226_v45, 2 }
0x33b7   :  { %v3221_v36 = vpop.permute.xlu0 %3220 }
0x33b8   :  { %v3223_v41 = vadd.f32 %v3221_v36, %v3214_v20 }
0x33ba   :  { %4126 = vtanh.f32 %v3223_v41 }
0x33c4   :  { %v4127_v44 = vpop.eup %4126 }
0x33c5   :  { %3230 = vrot.lane.b32.xlu0 %v4127_v44, %s4292_s3 }
0x3437   :  { %v3231_v32 = vpop.permute.xlu0 %3230 }
0x3438   :  { %v3233_v18 = vmul.f32 %v3231_v32, %v3227_v48 }
0x343a   :  { %v3235_v49 = vpack.c.bf16 %v3233_v18, %v3233_v18 }
0x343c   :  { %3906 = vmatmul.mubr.msk.bf16.vlgmr.msra.gmra.mrb[60].mxu1 %vm220_vm2, %v3235_v49 }
0x343d   :  { %3402 = vmatpush1.bf16.msra.mxu1 %v5182_v16  ;;  %3433 = vmatprep.mubr.bf16.mxu1 %v4288_v0 }
0x343e   :  { %3403 = vmatprep.subr.bf16.mxu1 %v5186_v22 }
0x3441   :  { %3404 = vmatpush1.bf16.msra.mxu1 %v5204_v51 }
0x3442   :  { %3405 = vmatprep.subr.bf16.mxu1 %v5207_v40 }
0x3445   :  { %3406 = vmatpush1.bf16.msra.mxu1 %v5210_v56 }
0x3446   :  { %3407 = vmatprep.subr.bf16.mxu1 %v5213_v34 }
0x3449   :  { %3408 = vmatpush1.bf16.msra.mxu1 %v5216_v43 }
0x344a   :  { %3563 = vmatprep.subr.bf16.mxu1 %v4158_v23 }
0x350f   :  { %v3273_v50 = vpop.f32.mrb[60].mxu1 }
0x3510   :  { %v3275_v24 = vpop.f32.mrb[61].mxu1 }
0x3511   :  { %v3282_v58 = vcombine.low %v3273_v50, %v3275_v24  ;;  %v3277_v19 = vpop.f32.mrb[62].mxu1 }
0x3512   :  { %v3278_v62 = vpop.f32.mrb[63].mxu1 }
0x3513   :  { %v3289_v39 = vrot.slane %v3282_v58, %v4559_v60 }
0x3515   :  { %v3291_v1 = vadd.f32 %v3289_v39, %v3234_v46 }
0x3517   :  { %4128 = vtanh.f32 %v3291_v1 }
0x3521   :  { %v4129_v25 = vpop.eup %4128 }
0x3522   :  { %v3293_v27 = vmul.f32 %v4129_v25, %v4617_v52 }
0x3524   :  { %v3294_v4 = vadd.f32 %v3293_v27, %v4620_v53 }
0x3526   :  { %3306 = vrot.lane.b32.xlu0 %v3294_v4, %s4292_s3  ;;  %v3297_v35 = vrot.slane %v3294_v4, 2  ;;  %v3295_v13 = vmul.f32 %v3294_v4, %v3223_v41 }
0x3528   :  { %v3299_v38 = vmul.f32 %v3297_v35, %v3294_v4 }
0x352a   :  { %3301 = vrot.lane.b32.xlu1 %v3299_v38, %s4292_s3  ;;  %v3477_v38 = vld [vmem:[#allocation2 + $0x38] sm:$0xf] }
0x3598   :  { %v3307_v37 = vpop.permute.xlu0 %3306 }
0x3599   :  { %v3308_v2 = vrot.slane %v3307_v37, 2 }
0x359c   :  { %v3302_v42 = vpop.permute.xlu1 %3301 }
0x359d   :  { %v3304_v57 = vadd.f32 %v3302_v42, %v3295_v13 }
0x359f   :  { %4130 = vtanh.f32 %v3304_v57 }
0x35a9   :  { %v4131_v59 = vpop.eup %4130 }
0x35aa   :  { %3311 = vrot.lane.b32.xlu1 %v4131_v59, %s4292_s3 }
0x361c   :  { %v3312_v28 = vpop.permute.xlu1 %3311 }
0x361d   :  { %v3314_v3 = vmul.f32 %v3312_v28, %v3308_v2 }
0x361f   :  { %v3316_v7 = vpack.c.bf16 %v3314_v3, %v3314_v3 }
0x3621   :  { %3907 = vmatmul.mubr.msk.bf16.vlgmr.msra.gmra.mrb[64].mxu0 %vm220_vm2, %v3316_v7 }
0x3622   :  { %3483 = vmatpush1.bf16.msra.mxu0 %v5182_v16  ;;  %3514 = vmatprep.mubr.bf16.mxu0 %v4288_v0 }
0x3623   :  { %3484 = vmatprep.subr.bf16.mxu0 %v5186_v22 }
0x3626   :  { %3485 = vmatpush1.bf16.msra.mxu0 %v5204_v51 }
0x3627   :  { %3486 = vmatprep.subr.bf16.mxu0 %v5207_v40 }
0x362a   :  { %3487 = vmatpush1.bf16.msra.mxu0 %v5210_v56 }
0x362b   :  { %3488 = vmatprep.subr.bf16.mxu0 %v5213_v34 }
0x362e   :  { %3489 = vmatpush1.bf16.msra.mxu0 %v5216_v43 }
0x362f   :  { %3929 = vmatprep.subr.bf16.mxu0 %v4289_v26 }
0x36f4   :  { %v3354_v8 = vpop.f32.mrb[64].mxu0 }
0x36f5   :  { %v3356_v9 = vpop.f32.mrb[65].mxu0 }
0x36f6   :  { %v3363_v10 = vcombine.low %v3354_v8, %v3356_v9  ;;  %v3358_v12 = vpop.f32.mrb[66].mxu0 }
0x36f7   :  { %v3359_v63 = vpop.f32.mrb[67].mxu0 }
0x36f8   :  { %v3370_v5 = vrot.slane %v3363_v10, %v4559_v60 }
0x36fa   :  { %v3372_v23 = vadd.f32 %v3370_v5, %v3315_v11 }
0x36fc   :  { %4132 = vtanh.f32 %v3372_v23 }
0x3706   :  { %v4133_v21 = vpop.eup %4132 }
0x3707   :  { %v3374_v55 = vmul.f32 %v4133_v21, %v4617_v52 }
0x3709   :  { %v3375_v29 = vadd.f32 %v3374_v55, %v4620_v53 }
0x370b   :  { %3387 = vrot.lane.b32.xlu1 %v3375_v29, %s4292_s3  ;;  %v3378_v30 = vrot.slane %v3375_v29, 2  ;;  %v3376_v61 = vmul.f32 %v3375_v29, %v3304_v57 }
0x370d   :  { %v3380_v31 = vmul.f32 %v3378_v30, %v3375_v29 }
0x370f   :  { %3382 = vrot.lane.b32.xlu0 %v3380_v31, %s4292_s3  ;;  %v3558_v31 = vld [vmem:[#allocation2 + $0x3c] sm:$0xf] }
0x377d   :  { %v3388_v47 = vpop.permute.xlu1 %3387 }
0x377e   :  { %v3389_v14 = vrot.slane %v3388_v47, 2 }
0x3781   :  { %v3383_v17 = vpop.permute.xlu0 %3382 }
0x3782   :  { %v3385_v33 = vadd.f32 %v3383_v17, %v3376_v61 }
0x3784   :  { %4134 = vtanh.f32 %v3385_v33 }
0x378e   :  { %v4135_v6 = vpop.eup %4134 }
0x378f   :  { %3392 = vrot.lane.b32.xlu0 %v4135_v6, %s4292_s3 }
0x3801   :  { %v3393_v54 = vpop.permute.xlu0 %3392 }
0x3802   :  { %v3395_v15 = vmul.f32 %v3393_v54, %v3389_v14 }
0x3804   :  { %v3397_v20 = vpack.c.bf16 %v3395_v15, %v3395_v15 }
0x3806   :  { %3908 = vmatmul.mubr.msk.bf16.vlgmr.msra.gmra.mrb[64].mxu1 %vm220_vm2, %v3397_v20 }
0x3807   :  { %3564 = vmatpush1.bf16.msra.mxu1 %v5182_v16  ;;  %3595 = vmatprep.mubr.bf16.mxu1 %v4288_v0 }
0x3808   :  { %3565 = vmatprep.subr.bf16.mxu1 %v5186_v22  ;;  %v3396_v22 = vld [vmem:[#allocation2 + $0x34] sm:$0xf] }
0x380b   :  { %3566 = vmatpush1.bf16.msra.mxu1 %v5204_v51 }
0x380c   :  { %3567 = vmatprep.subr.bf16.mxu1 %v5207_v40 }
0x380f   :  { %3568 = vmatpush1.bf16.msra.mxu1 %v5210_v56 }
0x3810   :  { %3569 = vmatprep.subr.bf16.mxu1 %v5213_v34 }
0x3813   :  { %3570 = vmatpush1.bf16.msra.mxu1 %v5216_v43 }
0x3814   :  { %3941 = vmatprep.subr.bf16.mxu1 %v4289_v26 }
0x38d9   :  { %v3435_v36 = vpop.f32.mrb[64].mxu1 }
0x38da   :  { %v3437_v41 = vpop.f32.mrb[65].mxu1 }
0x38db   :  { %v3444_v44 = vcombine.low %v3435_v36, %v3437_v41  ;;  %v3439_v16 = vpop.f32.mrb[66].mxu1  ;;  %v4014_v36 = vld [vmem:[%s5318_s7] sm:$0xff]  }
0x38dc   :  { %v3440_v45 = vpop.f32.mrb[67].mxu1  ;;  %v4018_v16 = vld [vmem:[%s5320_s9] sm:$0xff]  }
0x38dd   :  { %v3451_v0 = vrot.slane %v3444_v44, %v4559_v60  ;;  %v4017_v44 = vld [vmem:[%s5318_s7 + $0x18] sm:$0xff]  }
0x38df   :  { %v3453_v48 = vadd.f32 %v3451_v0, %v3396_v22 }
0x38e1   :  { %4136 = vtanh.f32 %v3453_v48 }
0x38eb   :  { %v4137_v32 = vpop.eup %4136 }
0x38ec   :  { %v3455_v18 = vmul.f32 %v4137_v32, %v4617_v52 }
0x38ee   :  { %v3456_v49 = vadd.f32 %v3455_v18, %v4620_v53 }
0x38f0   :  { %3468 = vrot.lane.b32.xlu0 %v3456_v49, %s4292_s3  ;;  %v3459_v51 = vrot.slane %v3456_v49, 2  ;;  %v3457_v56 = vmul.f32 %v3456_v49, %v3385_v33 }
0x38f2   :  { %v3461_v40 = vmul.f32 %v3459_v51, %v3456_v49 }
0x38f4   :  { %3463 = vrot.lane.b32.xlu1 %v3461_v40, %s4292_s3 }
0x3962   :  { %v3469_v24 = vpop.permute.xlu0 %3468 }
0x3963   :  { %v3470_v58 = vrot.slane %v3469_v24, 2 }
0x3966   :  { %v3464_v34 = vpop.permute.xlu1 %3463 }
0x3967   :  { %v3466_v43 = vadd.f32 %v3464_v34, %v3457_v56  ;;  %v3911_v56 = vld [vmem:[#allocation9] ss:$0 sm:$0xff] }
0x3969   :  { %4138 = vtanh.f32 %v3466_v43 }
0x3973   :  { %v4139_v50 = vpop.eup %4138 }
0x3974   :  { %3473 = vrot.lane.b32.xlu1 %v4139_v50, %s4292_s3 }
0x39e6   :  { %v3474_v19 = vpop.permute.xlu1 %3473 }
0x39e7   :  { %v3476_v62 = vmul.f32 %v3474_v19, %v3470_v58 }
0x39e9   :  { %v3478_v39 = vpack.c.bf16 %v3476_v62, %v3476_v62  ;;  %v3917_v62 = vld [vmem:[#allocation10] ss:$0 sm:$0xff] }
0x39eb   :  { %3909 = vmatmul.mubr.msk.bf16.vlgmr.msra.gmra.mrb[68].mxu0 %vm220_vm2, %v3478_v39 }
0x39ec   :  { %3930 = vmatpush3.bf16.msra.mxu0 %v4014_v36  ;;  %3937 = vmatprep.mubr.msk.bf16.mxu0 %vm4293_vm10, %v4289_v26 }
0x39ed   :  { %3931 = vmatprep.subr.bf16.mxu0 %v4289_v26 }
0x3abe   :  { %v3516_v46 = vpop.f32.mrb[68].mxu0 }
0x3abf   :  { %v3518_v1 = vpop.f32.mrb[69].mxu0 }
0x3ac0   :  { %v3525_v25 = vcombine.low %v3516_v46, %v3518_v1  ;;  %v3520_v27 = vpop.f32.mrb[70].mxu0 }
0x3ac1   :  { %v3521_v4 = vpop.f32.mrb[71].mxu0 }
0x3ac2   :  { %v3532_v35 = vrot.slane %v3525_v25, %v4559_v60 }
0x3ac4   :  { %v3534_v13 = vadd.f32 %v3532_v35, %v3477_v38 }
0x3ac6   :  { %4140 = vtanh.f32 %v3534_v13 }
0x3ad0   :  { %v4141_v42 = vpop.eup %4140 }
0x3ad1   :  { %v3536_v57 = vmul.f32 %v4141_v42, %v4617_v52 }
0x3ad3   :  { %v3537_v59 = vadd.f32 %v3536_v57, %v4620_v53 }
0x3ad5   :  { %3549 = vrot.lane.b32.xlu1 %v3537_v59, %s4292_s3  ;;  %v3540_v37 = vrot.slane %v3537_v59, 2  ;;  %v3538_v28 = vmul.f32 %v3537_v59, %v3466_v43 }
0x3ad7   :  { %v3542_v2 = vmul.f32 %v3540_v37, %v3537_v59 }
0x3ad9   :  { %3544 = vrot.lane.b32.xlu0 %v3542_v2, %s4292_s3 }
0x3b47   :  { %v3550_v9 = vpop.permute.xlu1 %3549 }
0x3b48   :  { %v3551_v10 = vrot.slane %v3550_v9, 2 }
0x3b4b   :  { %v3545_v3 = vpop.permute.xlu0 %3544 }
0x3b4c   :  { %v3547_v7 = vadd.f32 %v3545_v3, %v3538_v28 }
0x3b4e   :  { %4142 = vtanh.f32 %v3547_v7 }
0x3b58   :  { %v4143_v8 = vpop.eup %4142 }
0x3b59   :  { %3554 = vrot.lane.b32.xlu0 %v4143_v8, %s4292_s3 }
0x3bcb   :  { %v3555_v12 = vpop.permute.xlu0 %3554 }
0x3bcc   :  { %v3557_v63 = vmul.f32 %v3555_v12, %v3551_v10 }
0x3bce   :  { %v3559_v5 = vpack.c.bf16 %v3557_v63, %v3557_v63 }
0x3bd0   :  { %3910 = vmatmul.mubr.msk.bf16.vlgmr.msra.gmra.mrb[68].mxu1 %vm220_vm2, %v3559_v5 }
0x3bd1   :  { %3945 = vmatprep.mubr.msk.bf16.mxu1 %vm4293_vm10, %v4289_v26  ;;  %3942 = vmatpush3.bf16.msra.mxu1 %v4018_v16 }
0x3bd2   :  { %3943 = vmatprep.subr.bf16.mxu1 %v4289_v26 }
0x3ca3   :  { %v3597_v11 = vpop.f32.mrb[68].mxu1 }
0x3ca4   :  { %v3599_v23 = vpop.f32.mrb[69].mxu1 }
0x3ca5   :  { %v3606_v21 = vcombine.low %v3597_v11, %v3599_v23  ;;  %v3601_v55 = vpop.f32.mrb[70].mxu1 }
0x3ca6   :  { %v3602_v29 = vpop.f32.mrb[71].mxu1 }
0x3ca7   :  { %v3613_v30 = vrot.slane %v3606_v21, %v4559_v60 }
0x3ca9   :  { %v3615_v61 = vadd.f32 %v3613_v30, %v3558_v31 }
0x3cab   :  { %4144 = vtanh.f32 %v3615_v61 }
0x3cb5   :  { %v4145_v17 = vpop.eup %4144 }
0x3cb6   :  { %v3617_v33 = vmul.f32 %v4145_v17, %v4617_v52  ;;  %v4015_v52 = vld [vmem:[%s5318_s7 + $0x8] sm:$0xff]  }
0x3cb7   :  { %3932 = vmatpush3.bf16.msra.mxu0 %v4015_v52 }
0x3cb8   :  { %v3618_v6 = vadd.f32 %v3617_v33, %v4620_v53  ;;  %v4016_v53 = vld [vmem:[%s5318_s7 + $0x10] sm:$0xff]   ;;  %3933 = vmatprep.subr.bf16.mxu0 %v4289_v26  ;;  %s4294_s7 = smov 32  }
0x3cba   :  { %3630 = vrot.lane.b32.xlu0 %v3618_v6, %s4292_s3  ;;  %v3621_v47 = vrot.slane %v3618_v6, 2  ;;  %v3619_v54 = vmul.f32 %v3618_v6, %v3547_v7 }
0x3cbb   :  { %3934 = vmatpush3.bf16.msra.mxu0 %v4016_v53 }
0x3cbc   :  { %v3623_v14 = vmul.f32 %v3621_v47, %v3618_v6  ;;  %3935 = vmatprep.subr.bf16.mxu0 %v4289_v26  ;;  %v4019_v26 = vld [vmem:[%s5320_s9 + $0x8] sm:$0xff]   ;;  %s4252_s9 = scalar_lea.vmem %s3815_s28, 32 }
0x3cbd   :  { %3944 = vmatpush3.bf16.msra.mxu1 %v4019_v26  ;;  %p4253_p4 = scmp.ne.s32.totalorder %s3815_s28, %s4252_s9  ;;  %p4258_p6 = scmp.lt.s32.totalorder %s4252_s9, %s4252_s9 }
0x3cbe   :  { %3625 = vrot.lane.b32.xlu1 %v3623_v14, %s4292_s3 }
0x3cbf   :  { %3936 = vmatpush3.bf16.msra.mxu0 %v4017_v44  ;;  %p4259_p7 = por %p4258_p6, %p4257_p5 }
0x3cc1   :  { %p4260_p8 = pnand %p4259_p7, %p4253_p4 }
0x3d2c   :  { %v3631_v45 = vpop.permute.xlu0 %3630 }
0x3d2d   :  { %v3632_v0 = vrot.slane %v3631_v45, 2 }
0x3d30   :  { %v3626_v15 = vpop.permute.xlu1 %3625 }
0x3d31   :  { %v3628_v20 = vadd.f32 %v3626_v15, %v3619_v54 }
0x3d33   :  { %4146 = vtanh.f32 %v3628_v20 }
0x3d3d   :  { %v4147_v41 = vpop.eup %4146 }
0x3d3e   :  { %3635 = vrot.lane.b32.xlu1 %v4147_v41, %s4292_s3  ;;  %s4295_s3 = smov 96  }
0x3db0   :  { %v3636_v22 = vpop.permute.xlu1 %3635 }
0x3db1   :  { %v3638_v48 = vmul.f32 %v3636_v22, %v3632_v0 }
0x3db3   :  { %v3646_v32 = vrot.slane %v3638_v48, %v4559_v60 }
0x3db5   :  { %3650 = vrot.lane.b32.xlu1 %v3646_v32, %s4294_s7  ;;  %3647 = vrot.lane.b32.xlu0 %v3646_v32, %s4295_s3 }
0x3e27   :  { %v3651_v18 = vpop.permute.xlu1 %3650  ;;  %v3648_v49 = vpop.permute.xlu0 %3647 }
0x3e28   :  { %v3654_v51 = vsel %vm3653_vm11, %v3648_v49, %v3651_v18 }
0x3e29   :  { %v3655_v40 = vpack.c.bf16 %v3654_v51, %v3654_v51 }
0x3e2b   :  { %3938 = vmatmul.mubr.msk.bf16.vlgmr.msra.gmra.mrb[72].mxu0 %vm220_vm2, %v3655_v40 }
0x3efe   :  { %v3732_v34 = vpop.f32.mrb[72].mxu0 }
0x3eff   :  { %v3733_v60 = vadd.f32 %v3911_v56, %v3732_v34  ;;  %v3939_v43 = vpop.f32.mrb[73].mxu0 }
0x3f00   :  { %v3735_v50 = vpop.f32.mrb[74].mxu0 }
0x3f01   :  { %v3738_v24 = vmax.f32 %v3733_v60, 0.0  ;;  %v3940_v58 = vpop.f32.mrb[75].mxu0 }
0x3f03   :  { %v3739_v19 = vpack.c.bf16 %v3738_v24, %v3738_v24 }
0x3f05   :  { %3946 = vmatmul.mubr.msk.bf16.vlgmr.msra.gmra.mrb[72].mxu1 %vm3653_vm11, %v3739_v19 }
0x3fd8   :  { %v3800_v39 = vpop.f32.mrb[72].mxu1 }
0x3fd9   :  { %v3801_v46 = vadd.f32 %v3917_v62, %v3800_v39  ;;  %v3947_v1 = vpop.f32.mrb[73].mxu1 }
0x3fda   :  { %v3803_v25 = vpop.f32.mrb[74].mxu1 }
0x3fdb   :  { %v3948_v27 = vpop.f32.mrb[75].mxu1  ;;  %3807 = vst.msk [vmem:[#allocation12] sm:$0x3] %vm3806_vm12, %v3801_v46 }
0x3fdc   :  { %4263 = shalt.err (!%p4260_p8)
}
0x3fdd   :  { %s4264_s12 = scalar_lea.hbm %s5322_s11, 32 }
0x3fde   :  { %p4265_p9 = scmp.ne.s32.totalorder %s5322_s11, %s4264_s12  ;;  %p4268_p10 = scmp.lt.u32.totalorder %s4264_s12, %s5322_s11 }
0x3fe0   :  { %p4270_p11 = pnand %p4268_p10, %p4265_p9 }
0x3fe2   :  { %4273 = shalt.err (!%p4270_p11)
}
0x3fe3   :  { %3817 = dma.vmem_to_hbm [thread:$0]  %s3815_s28, 32, %s5322_s11, [#allocation6]  }
0x3fe4   :  { %4280 = dma.done.wait [#allocation6], 32  }
0x3fe5   :  { %4281 = vsyncadd [#allocation6], 4294967264 }
0x3fe6   :  { %3821 = vsyncpa [#allocation5], 1 }
0x3fe7   :  { %3822 = vsyncpa [#allocation8], 1 }
0x3fe8   :  { %3823 = vsyncpa [#allocation11], 1 }
0x3fe9   :  { %3824 = vsyncpa [#allocation6], 1 }

</bundles_post_ra>
